<compile_context>
chip_gen: v6e
topology: v6e:2x2x1
jax: 0.10.0
libtpu: 0.0.40
codegen_flags: <defaults>
</compile_context>

<pallas_src>
import jax
import jax.numpy as jnp
from jax.experimental import pallas as pl
from jax.experimental.pallas import tpu as pltpu

D_IN = 784
D_IN_PAD = 896          # 7 * 128: lane-aligned K for the first matmul
D1, D2, D3 = 512, 256, 128

LEAKY_SLOPE = 0.02      # matches nn.LeakyReLU(0.02) in the reference module
LN_EPS = 1e-5           # nn.LayerNorm default eps


def _leaky_relu(v):
    return jnp.where(v > 0, v, LEAKY_SLOPE * v)


def _layer_norm_two_pass(v, gamma, beta):
    # Used only by the plain-JAX references.
    mu = jnp.mean(v, axis=-1, keepdims=True)
    d = v - mu
    var = jnp.mean(d * d, axis=-1, keepdims=True)
    return d * jax.lax.rsqrt(var + LN_EPS) * gamma + beta


def discriminator_kernel(
    x_ref,
    w1_ref, b1_ref, g1_ref, be1_ref,
    w2_ref, b2_ref, g2_ref, be2_ref,
    w3_ref, b3_ref, g3_ref, be3_ref,
    w4_ref, b4_ref,
    o_ref,
):
    bt = x_ref.shape[0]
    # Two independent row sub-tiles so the MXU matmul of one half co-issues with
    # the VPU/XLU/EUP (leaky + layernorm) work of the other half. Each sub-tile
    # keeps the output store lane-dense (>=128 lanes), so only split when the
    # tile is a multiple of 256 rows.
    n_sub = 2 if (bt % 256 == 0 and bt >= 256) else 1
    sub = bt // n_sub

    def block(xa, w_ref, b_ref, g_ref, be_ref, to_bf16):
        # Linear -> LeakyReLU -> LayerNorm (single-pass moments, f32 accum).
        h = jnp.dot(xa, w_ref[...], preferred_element_type=jnp.float32)
        h = _leaky_relu(h + b_ref[...])
        n = h.shape[-1]
        s = jnp.sum(h, axis=-1, keepdims=True)
        sq = jnp.sum(h * h, axis=-1, keepdims=True)
        mu = s * (1.0 / n)
        var = jnp.maximum(sq * (1.0 / n) - mu * mu, 0.0)
        y = (h - mu) * jax.lax.rsqrt(var + LN_EPS) * g_ref[...] + be_ref[...]
        # Fuse the bf16 downcast for the next MXU matmul into the LN epilogue.
        return y.astype(jnp.bfloat16) if to_bf16 else y

    for si in range(n_sub):
        lo, hi = si * sub, (si + 1) * sub
        xa = x_ref[lo:hi, :]
        h = block(xa, w1_ref, b1_ref, g1_ref, be1_ref, True)
        h = block(h, w2_ref, b2_ref, g2_ref, be2_ref, True)
        h = block(h, w3_ref, b3_ref, g3_ref, be3_ref, False)
        # Head: Linear(128->1) as a VPU/XLU reduction (avoids an N=1 MXU matmul).
        logits = jnp.sum(h * w4_ref[...], axis=-1)[None, :] + b4_ref[...]
        o_ref[:, lo:hi] = jax.nn.sigmoid(logits)


def _choose_batch_tile(B):
    """Pick a 128-multiple batch tile; small-B clamp + prefer >=2 grid steps."""
    b_round = int(128 * pl.cdiv(B, 128))
    tile = min(1024, b_round)
    # If the whole (large-enough) batch fits in one step, halve the tile so the
    # grid has >=2 steps and both v7x TensorCores get work.
    if b_round // tile < 2 and b_round >= 256:
        tile = int(128 * max(1, (b_round // 2) // 128))
    return tile


def discriminator_forward(x, kparams, *, batch_tile=None, vmem_limit_bytes=None):
    """x: (B, 784) float; kparams: output of prepare_params(). Returns (B, 1)."""
    B, d_in = x.shape
    assert d_in == D_IN

    if batch_tile is None:
        batch_tile = _choose_batch_tile(B)
    assert batch_tile % 128 == 0

    B_pad = int(batch_tile * pl.cdiv(B, batch_tile))
    x_p = jnp.pad(x, ((0, B_pad - B), (0, D_IN_PAD - D_IN))).astype(jnp.bfloat16)

    grid = (B_pad // batch_tile,)

    in_specs = [pl.BlockSpec((batch_tile, D_IN_PAD), lambda i: (i, 0))]
    # Grid-invariant parameters: whole array resident in VMEM, single-buffered.
    in_specs += [pl.BlockSpec(memory_space=pltpu.MemorySpace.VMEM)
                 for _ in kparams]
    out_specs = pl.BlockSpec((1, batch_tile), lambda i: (0, i))

    param_bytes = sum(int(p.size) * p.dtype.itemsize for p in kparams)

    if vmem_limit_bytes is None:
        # Explicit budget (v7x has 64 MiB physical VMEM -> stay <= 48 MiB):
        #   double-buffered x tile + resident params + double-buffered out
        #   + rough f32/bf16 intermediate scratch, with 2x headroom.
        est = (2 * batch_tile * D_IN_PAD * 2
               + param_bytes
               + 2 * batch_tile * 4
               + batch_tile * (D1 + D2 + D3) * 6)
        vmem_limit_bytes = int(min(48 * 1024 * 1024,
                                   max(32 * 1024 * 1024, 2 * est)))

    cost = pl.CostEstimate(
        flops=2 * B_pad * (D_IN_PAD * D1 + D1 * D2 + D2 * D3 + D3),
        transcendentals=5 * B_pad,   # 3x rsqrt + sigmoid (exp + reciprocal)
        bytes_accessed=int(x_p.size) * 2 + param_bytes + B_pad * 4,
    )

    out = pl.pallas_call(
        discriminator_kernel,
        out_shape=jax.ShapeDtypeStruct((1, B_pad), jnp.float32),
        grid_spec=pltpu.PrefetchScalarGridSpec(
            num_scalar_prefetch=0,
            grid=grid,
            in_specs=in_specs,
            out_specs=out_specs,
        ),
        compiler_params=pltpu.CompilerParams(
            dimension_semantics=("parallel",),
            vmem_limit_bytes=vmem_limit_bytes,
        ),
        cost_estimate=cost,
    )(x_p, *kparams)

    # (1, B_pad) lane-dense slab -> (B, 1)
    return out.reshape(B_pad, 1)[:B]


def init_params(key):
    """Synthetic parameters matching nn.Linear / nn.LayerNorm shapes.

    Weights stored as (in, out) == W_pytorch.T; biases/gamma/beta as (1, D) rows.
    """
    dims = [(D_IN, D1), (D1, D2), (D2, D3), (D3, 1)]
    params = []
    keys = jax.random.split(key, len(dims) * 2)
    for li, (din, dout) in enumerate(dims):
        kw, kb = keys[2 * li], keys[2 * li + 1]
        bound = 1.0 / (din ** 0.5)   # PyTorch nn.Linear default init range
        params.append(jax.random.uniform(kw, (din, dout), jnp.float32, -bound, bound))
        params.append(jax.random.uniform(kb, (1, dout), jnp.float32, -bound, bound))
        if dout != 1:                # LayerNorm follows the first three linears only
            params.append(jnp.ones((1, dout), jnp.float32))   # gamma
            params.append(jnp.zeros((1, dout), jnp.float32))  # beta
    return tuple(params)


def prepare_params(params):
    """One-time kernel-side prep: bf16 matmul weights, pad w1 K to 896, w4 as row."""
    (w1, b1, g1, be1, w2, b2, g2, be2, w3, b3, g3, be3, w4, b4) = params
    w1p = jnp.pad(w1, ((0, D_IN_PAD - D_IN), (0, 0))).astype(jnp.bfloat16)
    return (w1p, b1, g1, be1,
            w2.astype(jnp.bfloat16), b2, g2, be2,
            w3.astype(jnp.bfloat16), b3, g3, be3,
            jnp.transpose(w4), b4)   # w4 -> (1, 128) f32 row for the VPU head


def reference_forward(x, params, *, bf16_matmul=True):
    """Plain-JAX reference. bf16_matmul=True mirrors the kernel numerics;
    bf16_matmul=False is the true-f32 PyTorch-equivalent forward."""
    (w1, b1, g1, be1, w2, b2, g2, be2, w3, b3, g3, be3, w4, b4) = params

    def mm(a, w):
        if bf16_matmul:
            return jnp.dot(a.astype(jnp.bfloat16), w.astype(jnp.bfloat16),
                           preferred_element_type=jnp.float32)
        return jnp.dot(a, w)

    h = _layer_norm_two_pass(_leaky_relu(mm(x, w1) + b1), g1, be1)
    h = _layer_norm_two_pass(_leaky_relu(mm(h, w2) + b2), g2, be2)
    h = _layer_norm_two_pass(_leaky_relu(mm(h, w3) + b3), g3, be3)
    return jax.nn.sigmoid(h @ w4 + b4)


if __name__ == "__main__":
    key = jax.random.PRNGKey(0)
    k_x, k_p, k_x2 = jax.random.split(key, 3)

    params = init_params(k_p)
    kparams = prepare_params(params)

    # Small-batch path (tile clamped to 128, single grid step, n_sub=1).
    B = 8
    x = jax.random.normal(k_x, (B, D_IN), jnp.float32)
    out = jax.block_until_ready(discriminator_forward(x, kparams))
    assert out.shape == (B, 1), out.shape

    ref_bf16 = reference_forward(x, params, bf16_matmul=True)
    ref_f32 = reference_forward(x, params, bf16_matmul=False)
    err_bf16 = float(jnp.max(jnp.abs(out - ref_bf16)))
    err_f32 = float(jnp.max(jnp.abs(out - ref_f32)))
    assert err_bf16 < 2e-3, err_bf16   # self-consistency with bf16-MXU numerics
    assert err_f32 < 1e-1, err_f32     # sanity vs. true f32 forward

    # Larger-batch path (multi-step grid + intra-tile sub-tile overlap).
    B2 = 512
    x2 = jax.random.normal(k_x2, (B2, D_IN), jnp.float32)
    out2 = jax.block_until_ready(discriminator_forward(x2, kparams))
    ref2 = reference_forward(x2, params, bf16_matmul=True)
    assert out2.shape == (B2, 1), out2.shape
    err2 = float(jnp.max(jnp.abs(out2 - ref2)))
    assert err2 < 2e-3, err2

    print("KERNEL_OK")
</pallas_src>

<mosaic_0001>
module attributes {stable_mosaic.version = 11 : i64} {
  func.func @discriminator_kernel(%arg0: i32, %arg1: memref<128x896xbf16, #tpu.memory_space<vmem>>, %arg2: memref<896x512xbf16, #tpu.memory_space<vmem>>, %arg3: memref<1x512xf32, #tpu.memory_space<vmem>>, %arg4: memref<1x512xf32, #tpu.memory_space<vmem>>, %arg5: memref<1x512xf32, #tpu.memory_space<vmem>>, %arg6: memref<512x256xbf16, #tpu.memory_space<vmem>>, %arg7: memref<1x256xf32, #tpu.memory_space<vmem>>, %arg8: memref<1x256xf32, #tpu.memory_space<vmem>>, %arg9: memref<1x256xf32, #tpu.memory_space<vmem>>, %arg10: memref<256x128xbf16, #tpu.memory_space<vmem>>, %arg11: memref<1x128xf32, #tpu.memory_space<vmem>>, %arg12: memref<1x128xf32, #tpu.memory_space<vmem>>, %arg13: memref<1x128xf32, #tpu.memory_space<vmem>>, %arg14: memref<1x128xf32, #tpu.memory_space<vmem>>, %arg15: memref<1x1xf32, #tpu.memory_space<vmem>>, %arg16: memref<1x128xf32, #tpu.memory_space<vmem>>) attributes {dimension_semantics = [#tpu.dimension_semantics<parallel>], iteration_bounds = array<i64: 1>, scalar_prefetch = 0 : i64, scratch_operands = 0 : i64, tpu.core_type = #tpu.core_type<tc>, window_params = [{transform_indices = @transform_0, window_bounds = array<i64: 128, 896>}, {pipeline_mode = #tpu.pipeline_mode<synchronous>, transform_indices = @transform_1, window_bounds = array<i64: 896, 512>}, {pipeline_mode = #tpu.pipeline_mode<synchronous>, transform_indices = @transform_2, window_bounds = array<i64: 1, 512>}, {pipeline_mode = #tpu.pipeline_mode<synchronous>, transform_indices = @transform_3, window_bounds = array<i64: 1, 512>}, {pipeline_mode = #tpu.pipeline_mode<synchronous>, transform_indices = @transform_4, window_bounds = array<i64: 1, 512>}, {pipeline_mode = #tpu.pipeline_mode<synchronous>, transform_indices = @transform_5, window_bounds = array<i64: 512, 256>}, {pipeline_mode = #tpu.pipeline_mode<synchronous>, transform_indices = @transform_6, window_bounds = array<i64: 1, 256>}, {pipeline_mode = #tpu.pipeline_mode<synchronous>, transform_indices = @transform_7, window_bounds = array<i64: 1, 256>}, {pipeline_mode = #tpu.pipeline_mode<synchronous>, transform_indices = @transform_8, window_bounds = array<i64: 1, 256>}, {pipeline_mode = #tpu.pipeline_mode<synchronous>, transform_indices = @transform_9, window_bounds = array<i64: 256, 128>}, {pipeline_mode = #tpu.pipeline_mode<synchronous>, transform_indices = @transform_10, window_bounds = array<i64: 1, 128>}, {pipeline_mode = #tpu.pipeline_mode<synchronous>, transform_indices = @transform_11, window_bounds = array<i64: 1, 128>}, {pipeline_mode = #tpu.pipeline_mode<synchronous>, transform_indices = @transform_12, window_bounds = array<i64: 1, 128>}, {pipeline_mode = #tpu.pipeline_mode<synchronous>, transform_indices = @transform_13, window_bounds = array<i64: 1, 128>}, {pipeline_mode = #tpu.pipeline_mode<synchronous>, transform_indices = @transform_14, window_bounds = array<i64: 1, 1>}, {transform_indices = @transform_15, window_bounds = array<i64: 1, 128>}]} {
    %c0 = arith.constant 0 : index
    %c0_0 = arith.constant 0 : index
    %0 = vector.load %arg1[%c0, %c0_0] : memref<128x896xbf16, #tpu.memory_space<vmem>>, vector<128x896xbf16>
    %c0_1 = arith.constant 0 : index
    %c0_2 = arith.constant 0 : index
    %1 = vector.load %arg2[%c0_1, %c0_2] : memref<896x512xbf16, #tpu.memory_space<vmem>>, vector<896x512xbf16>
    %cst = arith.constant dense<0.000000e+00> : vector<128x512xf32>
    %2 = tpu.matmul %0, %1, %cst {dimension_numbers = #tpu.dot_dimension_numbers<[1], [0], [0], [1], [0, 0, 1, 1], [], []>} : vector<128x896xbf16>, vector<896x512xbf16>, vector<128x512xf32> -> vector<128x512xf32>
    %c0_3 = arith.constant 0 : index
    %c0_4 = arith.constant 0 : index
    %3 = vector.load %arg3[%c0_3, %c0_4] : memref<1x512xf32, #tpu.memory_space<vmem>>, vector<1x512xf32>
    %4 = vector.broadcast %3 : vector<1x512xf32> to vector<128x512xf32>
    %5 = arith.addf %2, %4 : vector<128x512xf32>
    %cst_5 = arith.constant 0.000000e+00 : f32
    %6 = vector.broadcast %cst_5 : f32 to vector<128x512xf32>
    %7 = arith.cmpf ogt, %5, %6 : vector<128x512xf32>
    %cst_6 = arith.constant 2.000000e-02 : f32
    %8 = vector.broadcast %cst_6 : f32 to vector<128x512xf32>
    %9 = arith.mulf %8, %5 : vector<128x512xf32>
    %10 = arith.select %7, %5, %9 : vector<128x512xi1>, vector<128x512xf32>
    %cst_7 = arith.constant dense<0.000000e+00> : vector<128xf32>
    %11 = vector.multi_reduction <add>, %10, %cst_7 [1] : vector<128x512xf32> to vector<128xf32>
    %12 = vector.shape_cast %11 : vector<128xf32> to vector<128x1xf32>
    %13 = arith.mulf %10, %10 : vector<128x512xf32>
    %cst_8 = arith.constant dense<0.000000e+00> : vector<128xf32>
    %14 = vector.multi_reduction <add>, %13, %cst_8 [1] : vector<128x512xf32> to vector<128xf32>
    %15 = vector.shape_cast %14 : vector<128xf32> to vector<128x1xf32>
    %cst_9 = arith.constant 0.001953125 : f32
    %16 = vector.broadcast %cst_9 : f32 to vector<128x1xf32>
    %17 = arith.mulf %12, %16 : vector<128x1xf32>
    %cst_10 = arith.constant 0.001953125 : f32
    %18 = vector.broadcast %cst_10 : f32 to vector<128x1xf32>
    %19 = arith.mulf %15, %18 : vector<128x1xf32>
    %20 = arith.mulf %17, %17 : vector<128x1xf32>
    %21 = arith.subf %19, %20 : vector<128x1xf32>
    %cst_11 = arith.constant 0.000000e+00 : f32
    %22 = vector.broadcast %cst_11 : f32 to vector<128x1xf32>
    %23 = arith.maximumf %21, %22 : vector<128x1xf32>
    %24 = vector.broadcast %17 : vector<128x1xf32> to vector<128x512xf32>
    %25 = arith.subf %10, %24 : vector<128x512xf32>
    %cst_12 = arith.constant 9.99999974E-6 : f32
    %26 = vector.broadcast %cst_12 : f32 to vector<128x1xf32>
    %27 = arith.addf %23, %26 : vector<128x1xf32>
    %28 = math.rsqrt %27 : vector<128x1xf32>
    %29 = vector.broadcast %28 : vector<128x1xf32> to vector<128x512xf32>
    %30 = arith.mulf %25, %29 : vector<128x512xf32>
    %c0_13 = arith.constant 0 : index
    %c0_14 = arith.constant 0 : index
    %31 = vector.load %arg4[%c0_13, %c0_14] : memref<1x512xf32, #tpu.memory_space<vmem>>, vector<1x512xf32>
    %32 = vector.broadcast %31 : vector<1x512xf32> to vector<128x512xf32>
    %33 = arith.mulf %30, %32 : vector<128x512xf32>
    %c0_15 = arith.constant 0 : index
    %c0_16 = arith.constant 0 : index
    %34 = vector.load %arg5[%c0_15, %c0_16] : memref<1x512xf32, #tpu.memory_space<vmem>>, vector<1x512xf32>
    %35 = vector.broadcast %34 : vector<1x512xf32> to vector<128x512xf32>
    %36 = arith.addf %33, %35 : vector<128x512xf32>
    %37 = arith.truncf %36 : vector<128x512xf32> to vector<128x512xbf16>
    %c0_17 = arith.constant 0 : index
    %c0_18 = arith.constant 0 : index
    %38 = vector.load %arg6[%c0_17, %c0_18] : memref<512x256xbf16, #tpu.memory_space<vmem>>, vector<512x256xbf16>
    %cst_19 = arith.constant dense<0.000000e+00> : vector<128x256xf32>
    %39 = tpu.matmul %37, %38, %cst_19 {dimension_numbers = #tpu.dot_dimension_numbers<[1], [0], [0], [1], [0, 0, 1, 1], [], []>} : vector<128x512xbf16>, vector<512x256xbf16>, vector<128x256xf32> -> vector<128x256xf32>
    %c0_20 = arith.constant 0 : index
    %c0_21 = arith.constant 0 : index
    %40 = vector.load %arg7[%c0_20, %c0_21] : memref<1x256xf32, #tpu.memory_space<vmem>>, vector<1x256xf32>
    %41 = vector.broadcast %40 : vector<1x256xf32> to vector<128x256xf32>
    %42 = arith.addf %39, %41 : vector<128x256xf32>
    %cst_22 = arith.constant 0.000000e+00 : f32
    %43 = vector.broadcast %cst_22 : f32 to vector<128x256xf32>
    %44 = arith.cmpf ogt, %42, %43 : vector<128x256xf32>
    %cst_23 = arith.constant 2.000000e-02 : f32
    %45 = vector.broadcast %cst_23 : f32 to vector<128x256xf32>
    %46 = arith.mulf %45, %42 : vector<128x256xf32>
    %47 = arith.select %44, %42, %46 : vector<128x256xi1>, vector<128x256xf32>
    %cst_24 = arith.constant dense<0.000000e+00> : vector<128xf32>
    %48 = vector.multi_reduction <add>, %47, %cst_24 [1] : vector<128x256xf32> to vector<128xf32>
    %49 = vector.shape_cast %48 : vector<128xf32> to vector<128x1xf32>
    %50 = arith.mulf %47, %47 : vector<128x256xf32>
    %cst_25 = arith.constant dense<0.000000e+00> : vector<128xf32>
    %51 = vector.multi_reduction <add>, %50, %cst_25 [1] : vector<128x256xf32> to vector<128xf32>
    %52 = vector.shape_cast %51 : vector<128xf32> to vector<128x1xf32>
    %cst_26 = arith.constant 3.906250e-03 : f32
    %53 = vector.broadcast %cst_26 : f32 to vector<128x1xf32>
    %54 = arith.mulf %49, %53 : vector<128x1xf32>
    %cst_27 = arith.constant 3.906250e-03 : f32
    %55 = vector.broadcast %cst_27 : f32 to vector<128x1xf32>
    %56 = arith.mulf %52, %55 : vector<128x1xf32>
    %57 = arith.mulf %54, %54 : vector<128x1xf32>
    %58 = arith.subf %56, %57 : vector<128x1xf32>
    %cst_28 = arith.constant 0.000000e+00 : f32
    %59 = vector.broadcast %cst_28 : f32 to vector<128x1xf32>
    %60 = arith.maximumf %58, %59 : vector<128x1xf32>
    %61 = vector.broadcast %54 : vector<128x1xf32> to vector<128x256xf32>
    %62 = arith.subf %47, %61 : vector<128x256xf32>
    %cst_29 = arith.constant 9.99999974E-6 : f32
    %63 = vector.broadcast %cst_29 : f32 to vector<128x1xf32>
    %64 = arith.addf %60, %63 : vector<128x1xf32>
    %65 = math.rsqrt %64 : vector<128x1xf32>
    %66 = vector.broadcast %65 : vector<128x1xf32> to vector<128x256xf32>
    %67 = arith.mulf %62, %66 : vector<128x256xf32>
    %c0_30 = arith.constant 0 : index
    %c0_31 = arith.constant 0 : index
    %68 = vector.load %arg8[%c0_30, %c0_31] : memref<1x256xf32, #tpu.memory_space<vmem>>, vector<1x256xf32>
    %69 = vector.broadcast %68 : vector<1x256xf32> to vector<128x256xf32>
    %70 = arith.mulf %67, %69 : vector<128x256xf32>
    %c0_32 = arith.constant 0 : index
    %c0_33 = arith.constant 0 : index
    %71 = vector.load %arg9[%c0_32, %c0_33] : memref<1x256xf32, #tpu.memory_space<vmem>>, vector<1x256xf32>
    %72 = vector.broadcast %71 : vector<1x256xf32> to vector<128x256xf32>
    %73 = arith.addf %70, %72 : vector<128x256xf32>
    %74 = arith.truncf %73 : vector<128x256xf32> to vector<128x256xbf16>
    %c0_34 = arith.constant 0 : index
    %c0_35 = arith.constant 0 : index
    %75 = vector.load %arg10[%c0_34, %c0_35] : memref<256x128xbf16, #tpu.memory_space<vmem>>, vector<256x128xbf16>
    %cst_36 = arith.constant dense<0.000000e+00> : vector<128x128xf32>
    %76 = tpu.matmul %74, %75, %cst_36 {dimension_numbers = #tpu.dot_dimension_numbers<[1], [0], [0], [1], [0, 0, 1, 1], [], []>} : vector<128x256xbf16>, vector<256x128xbf16>, vector<128x128xf32> -> vector<128x128xf32>
    %c0_37 = arith.constant 0 : index
    %c0_38 = arith.constant 0 : index
    %77 = vector.load %arg11[%c0_37, %c0_38] : memref<1x128xf32, #tpu.memory_space<vmem>>, vector<1x128xf32>
    %78 = vector.broadcast %77 : vector<1x128xf32> to vector<128x128xf32>
    %79 = arith.addf %76, %78 : vector<128x128xf32>
    %cst_39 = arith.constant 0.000000e+00 : f32
    %80 = vector.broadcast %cst_39 : f32 to vector<128x128xf32>
    %81 = arith.cmpf ogt, %79, %80 : vector<128x128xf32>
    %cst_40 = arith.constant 2.000000e-02 : f32
    %82 = vector.broadcast %cst_40 : f32 to vector<128x128xf32>
    %83 = arith.mulf %82, %79 : vector<128x128xf32>
    %84 = arith.select %81, %79, %83 : vector<128x128xi1>, vector<128x128xf32>
    %cst_41 = arith.constant dense<0.000000e+00> : vector<128xf32>
    %85 = vector.multi_reduction <add>, %84, %cst_41 [1] : vector<128x128xf32> to vector<128xf32>
    %86 = vector.shape_cast %85 : vector<128xf32> to vector<128x1xf32>
    %87 = arith.mulf %84, %84 : vector<128x128xf32>
    %cst_42 = arith.constant dense<0.000000e+00> : vector<128xf32>
    %88 = vector.multi_reduction <add>, %87, %cst_42 [1] : vector<128x128xf32> to vector<128xf32>
    %89 = vector.shape_cast %88 : vector<128xf32> to vector<128x1xf32>
    %cst_43 = arith.constant 7.812500e-03 : f32
    %90 = vector.broadcast %cst_43 : f32 to vector<128x1xf32>
    %91 = arith.mulf %86, %90 : vector<128x1xf32>
    %cst_44 = arith.constant 7.812500e-03 : f32
    %92 = vector.broadcast %cst_44 : f32 to vector<128x1xf32>
    %93 = arith.mulf %89, %92 : vector<128x1xf32>
    %94 = arith.mulf %91, %91 : vector<128x1xf32>
    %95 = arith.subf %93, %94 : vector<128x1xf32>
    %cst_45 = arith.constant 0.000000e+00 : f32
    %96 = vector.broadcast %cst_45 : f32 to vector<128x1xf32>
    %97 = arith.maximumf %95, %96 : vector<128x1xf32>
    %98 = vector.broadcast %91 : vector<128x1xf32> to vector<128x128xf32>
    %99 = arith.subf %84, %98 : vector<128x128xf32>
    %cst_46 = arith.constant 9.99999974E-6 : f32
    %100 = vector.broadcast %cst_46 : f32 to vector<128x1xf32>
    %101 = arith.addf %97, %100 : vector<128x1xf32>
    %102 = math.rsqrt %101 : vector<128x1xf32>
    %103 = vector.broadcast %102 : vector<128x1xf32> to vector<128x128xf32>
    %104 = arith.mulf %99, %103 : vector<128x128xf32>
    %c0_47 = arith.constant 0 : index
    %c0_48 = arith.constant 0 : index
    %105 = vector.load %arg12[%c0_47, %c0_48] : memref<1x128xf32, #tpu.memory_space<vmem>>, vector<1x128xf32>
    %106 = vector.broadcast %105 : vector<1x128xf32> to vector<128x128xf32>
    %107 = arith.mulf %104, %106 : vector<128x128xf32>
    %c0_49 = arith.constant 0 : index
    %c0_50 = arith.constant 0 : index
    %108 = vector.load %arg13[%c0_49, %c0_50] : memref<1x128xf32, #tpu.memory_space<vmem>>, vector<1x128xf32>
    %109 = vector.broadcast %108 : vector<1x128xf32> to vector<128x128xf32>
    %110 = arith.addf %107, %109 : vector<128x128xf32>
    %c0_51 = arith.constant 0 : index
    %c0_52 = arith.constant 0 : index
    %111 = vector.load %arg14[%c0_51, %c0_52] : memref<1x128xf32, #tpu.memory_space<vmem>>, vector<1x128xf32>
    %112 = vector.broadcast %111 : vector<1x128xf32> to vector<128x128xf32>
    %113 = arith.mulf %110, %112 : vector<128x128xf32>
    %cst_53 = arith.constant dense<0.000000e+00> : vector<128xf32>
    %114 = vector.multi_reduction <add>, %113, %cst_53 [1] : vector<128x128xf32> to vector<128xf32>
    %115 = vector.shape_cast %114 : vector<128xf32> to vector<1x128xf32>
    %c0_54 = arith.constant 0 : index
    %c0_55 = arith.constant 0 : index
    %116 = vector.load %arg15[%c0_54, %c0_55] : memref<1x1xf32, #tpu.memory_space<vmem>>, vector<1x1xf32>
    %117 = vector.broadcast %116 : vector<1x1xf32> to vector<1x128xf32>
    %118 = arith.addf %115, %117 : vector<1x128xf32>
    %119 = arith.negf %118 : vector<1x128xf32>
    %120 = math.exp %119 : vector<1x128xf32>
    %cst_56 = arith.constant 1.000000e+00 : f32
    %121 = vector.broadcast %cst_56 : f32 to vector<1x128xf32>
    %122 = arith.addf %121, %120 : vector<1x128xf32>
    %123 = arith.divf %121, %122 : vector<1x128xf32>
    %c0_57 = arith.constant 0 : index
    %c0_58 = arith.constant 0 : index
    %124 = vector.load %arg16[%c0_57, %c0_58] : memref<1x128xf32, #tpu.memory_space<vmem>>, vector<1x128xf32>
    tpu.vector_store %arg16[%c0_57, %c0_58], %123 {strides = array<i32>} : memref<1x128xf32, #tpu.memory_space<vmem>>, vector<1x128xf32>,
    return
  }
  func.func @transform_0(%arg0: i32) -> (i32, i32) {
    %c0_i32 = arith.constant 0 : i32
    %c0_i32_0 = arith.constant 0 : i32
    return %arg0, %c0_i32 : i32, i32
  }
  func.func @transform_1(%arg0: i32) -> (i32, i32) {
    %c0_i32 = arith.constant 0 : i32
    %c0_i32_0 = arith.constant 0 : i32
    %c0_i32_1 = arith.constant 0 : i32
    return %c0_i32, %c0_i32_0 : i32, i32
  }
  func.func @transform_2(%arg0: i32) -> (i32, i32) {
    %c0_i32 = arith.constant 0 : i32
    %c0_i32_0 = arith.constant 0 : i32
    %c0_i32_1 = arith.constant 0 : i32
    return %c0_i32, %c0_i32_0 : i32, i32
  }
  func.func @transform_3(%arg0: i32) -> (i32, i32) {
    %c0_i32 = arith.constant 0 : i32
    %c0_i32_0 = arith.constant 0 : i32
    %c0_i32_1 = arith.constant 0 : i32
    return %c0_i32, %c0_i32_0 : i32, i32
  }
  func.func @transform_4(%arg0: i32) -> (i32, i32) {
    %c0_i32 = arith.constant 0 : i32
    %c0_i32_0 = arith.constant 0 : i32
    %c0_i32_1 = arith.constant 0 : i32
    return %c0_i32, %c0_i32_0 : i32, i32
  }
  func.func @transform_5(%arg0: i32) -> (i32, i32) {
    %c0_i32 = arith.constant 0 : i32
    %c0_i32_0 = arith.constant 0 : i32
    %c0_i32_1 = arith.constant 0 : i32
    return %c0_i32, %c0_i32_0 : i32, i32
  }
  func.func @transform_6(%arg0: i32) -> (i32, i32) {
    %c0_i32 = arith.constant 0 : i32
    %c0_i32_0 = arith.constant 0 : i32
    %c0_i32_1 = arith.constant 0 : i32
    return %c0_i32, %c0_i32_0 : i32, i32
  }
  func.func @transform_7(%arg0: i32) -> (i32, i32) {
    %c0_i32 = arith.constant 0 : i32
    %c0_i32_0 = arith.constant 0 : i32
    %c0_i32_1 = arith.constant 0 : i32
    return %c0_i32, %c0_i32_0 : i32, i32
  }
  func.func @transform_8(%arg0: i32) -> (i32, i32) {
    %c0_i32 = arith.constant 0 : i32
    %c0_i32_0 = arith.constant 0 : i32
    %c0_i32_1 = arith.constant 0 : i32
    return %c0_i32, %c0_i32_0 : i32, i32
  }
  func.func @transform_9(%arg0: i32) -> (i32, i32) {
    %c0_i32 = arith.constant 0 : i32
    %c0_i32_0 = arith.constant 0 : i32
    %c0_i32_1 = arith.constant 0 : i32
    return %c0_i32, %c0_i32_0 : i32, i32
  }
  func.func @transform_10(%arg0: i32) -> (i32, i32) {
    %c0_i32 = arith.constant 0 : i32
    %c0_i32_0 = arith.constant 0 : i32
    %c0_i32_1 = arith.constant 0 : i32
    return %c0_i32, %c0_i32_0 : i32, i32
  }
  func.func @transform_11(%arg0: i32) -> (i32, i32) {
    %c0_i32 = arith.constant 0 : i32
    %c0_i32_0 = arith.constant 0 : i32
    %c0_i32_1 = arith.constant 0 : i32
    return %c0_i32, %c0_i32_0 : i32, i32
  }
  func.func @transform_12(%arg0: i32) -> (i32, i32) {
    %c0_i32 = arith.constant 0 : i32
    %c0_i32_0 = arith.constant 0 : i32
    %c0_i32_1 = arith.constant 0 : i32
    return %c0_i32, %c0_i32_0 : i32, i32
  }
  func.func @transform_13(%arg0: i32) -> (i32, i32) {
    %c0_i32 = arith.constant 0 : i32
    %c0_i32_0 = arith.constant 0 : i32
    %c0_i32_1 = arith.constant 0 : i32
    return %c0_i32, %c0_i32_0 : i32, i32
  }
  func.func @transform_14(%arg0: i32) -> (i32, i32) {
    %c0_i32 = arith.constant 0 : i32
    %c0_i32_0 = arith.constant 0 : i32
    %c0_i32_1 = arith.constant 0 : i32
    return %c0_i32, %c0_i32_0 : i32, i32
  }
  func.func @transform_15(%arg0: i32) -> (i32, i32) {
    %c0_i32 = arith.constant 0 : i32
    %c0_i32_0 = arith.constant 0 : i32
    return %c0_i32, %arg0 : i32, i32
  }
}

</mosaic_0001>

<bundles_post_ra>
// kernel: tpu_custom_call.1
= control target key start
LH: loop header
LB: loop body
LE: loop exit
PB: predicated region body
PF: predicated region fallthrough
CT: control target
= control target key end

     0   :  { %s9528_s0 = inlined_call_operand.hbm [shape: bf16[128,896], index: 0, kind: input, shape index: {}]   ;;  %s9529_s1 = inlined_call_operand.hbm [shape: bf16[896,512], index: 1, kind: input, shape index: {}]   ;;  %s9530_s2 = inlined_call_operand.vmem [shape: f32[1,512], index: 2, kind: input, shape index: {}]   ;;  %s9531_s3 = inlined_call_operand.hbm [shape: f32[1,512], index: 3, kind: input, shape index: {}]   ;;  %s9532_s4 = inlined_call_operand.vmem [shape: f32[1,512], index: 4, kind: input, shape index: {}]   ;;  %s9533_s5 = inlined_call_operand.hbm [shape: bf16[512,256], index: 5, kind: input, shape index: {}]   ;;  %s9534_s6 = inlined_call_operand.vmem [shape: f32[1,256], index: 6, kind: input, shape index: {}]   ;;  %s9535_s7 = inlined_call_operand.vmem [shape: f32[1,256], index: 7, kind: input, shape index: {}]   ;;  %s9536_s8 = inlined_call_operand.vmem [shape: f32[1,256], index: 8, kind: input, shape index: {}]   ;;  %s9537_s9 = inlined_call_operand.hbm [shape: bf16[256,128], index: 9, kind: input, shape index: {}]   ;;  %s9538_s10 = inlined_call_operand.vmem [shape: f32[1,128], index: 10, kind: input, shape index: {}]   ;;  %s9539_s11 = inlined_call_operand.vmem [shape: f32[1,128], index: 11, kind: input, shape index: {}]   ;;  %s9540_s12 = inlined_call_operand.vmem [shape: f32[1,128], index: 12, kind: input, shape index: {}]   ;;  %s9541_s13 = inlined_call_operand.vmem [shape: f32[1,128], index: 13, kind: input, shape index: {}]   ;;  %s9542_s14 = inlined_call_operand.<no memory space> [shape: f32[1,1], index: 14, kind: input, shape index: {}]   ;;  %s9543_s15 = inlined_call_operand.hbm [shape: f32[1,128], index: 15, kind: output, shape index: {}]  }
   0x1   :  { %v20_v0 = vstv %s9542_s14 }
   0x2   :  { %21 = vst [vmem:[#allocation2] sm:$0x1] %v20_v0 }
   0x3   :  { %22 = vsyncpa [#allocation4], 0 }
   0x4   :  { %23 = vsyncpa [#allocation7], 0 }
   0x5   :  { %24 = vsyncpa [#allocation10], 0 }
   0x6   :  { %25 = vsyncpa [#allocation5], 0  ;;  %s6927_s20 = smov [#allocation6]  }
   0x7   :  { %s43_s21 = sshll.u32 %s6927_s20, 4  ;;  %s44_s21 = int_to_ptr.vmem [resolvable:$true] %s43_s21 }
   0x8   :  { %s6807_s22 = scalar_lea.vmem %s44_s21, 28672  ;;  %p6812_p1 = scmp.lt.s32.totalorder %s44_s21, %s44_s21 }
   0x9   :  { %p6808_p0 = scmp.ne.s32.totalorder %s44_s21, %s6807_s22  ;;  %p6813_p2 = scmp.lt.s32.totalorder %s6807_s22, %s6807_s22 }
   0xb   :  { %p6814_p3 = por %p6813_p2, %p6812_p1 }
   0xd   :  { %p6815_p4 = pnand %p6814_p3, %p6808_p0 }
   0xf   :  { %6818 = shalt.err (!%p6815_p4)
}
  0x10   :  { %s6928_s23 = smov 256   ;;  %s6929_s24 = smov 16  }
  0x11   :  { %49 = dma.hbm_to_vmem [thread:$0]  %s9529_s1, 28672, %s44_s21, [#allocation7], %s6928_s23, %s6928_s23, %s6929_s24  }
  0x12   :  { %s6930_s14 = smov [#allocation9]  }
  0x13   :  { %s69_s27 = sshll.u32 %s6930_s14, 4  ;;  %s70_s27 = int_to_ptr.vmem [resolvable:$true] %s69_s27 }
  0x14   :  { %s6827_s28 = scalar_lea.vmem %s70_s27, 8192  ;;  %p6832_p6 = scmp.lt.s32.totalorder %s70_s27, %s70_s27 }
  0x15   :  { %p6828_p5 = scmp.ne.s32.totalorder %s70_s27, %s6827_s28  ;;  %p6833_p7 = scmp.lt.s32.totalorder %s6827_s28, %s6827_s28 }
  0x17   :  { %p6834_p8 = por %p6833_p7, %p6832_p6 }
  0x19   :  { %p6835_p9 = pnand %p6834_p8, %p6828_p5 }
  0x1b   :  { %6838 = shalt.err (!%p6835_p9)
}
  0x1c   :  { %s6931_s29 = smov 128   ;;  %s6932_s30 = smov 8  }
  0x1d   :  { %75 = dma.hbm_to_vmem [thread:$0]  %s9533_s5, 8192, %s70_s27, [#allocation10], %s6931_s29, %s6931_s29, %s6932_s30  }
  0x1e   :  { %s6933_s18 = smov [#allocation3]  }
  0x1f   :  { %s31_s19 = sshll.u32 %s6933_s18, 4  ;;  %s32_s19 = int_to_ptr.vmem [resolvable:$true] %s31_s19 }
  0x20   :  { %s6847_s1 = scalar_lea.vmem %s32_s19, 7168  ;;  %p6852_p11 = scmp.lt.s32.totalorder %s32_s19, %s32_s19 }
  0x21   :  { %p6848_p10 = scmp.ne.s32.totalorder %s32_s19, %s6847_s1  ;;  %p6853_p12 = scmp.lt.s32.totalorder %s6847_s1, %s6847_s1 }
  0x23   :  { %p6854_p13 = por %p6853_p12, %p6852_p11 }
  0x25   :  { %p6855_p0 = pnand %p6854_p13, %p6848_p10 }
  0x27   :  { %6858 = shalt.err (!%p6855_p0)
}
  0x28   :  { %s6934_s20 = smov 448   ;;  %s6935_s21 = smov 28  }
  0x29   :  { %37 = dma.hbm_to_vmem [thread:$0]  %s9528_s0, 7168, %s32_s19, [#allocation4], %s6934_s20, %s6934_s20, %s6935_s21  }
  0x2a   :  { %s6936_s24 = smov [#allocation8]   ;;  %s6937_s5 = smov [#allocation11]  }
  0x2b   :  { %s58_s25 = sshll.u32 %s6936_s24, 4  ;;  %s87_s26 = sshll.u32 %s6937_s5, 4  ;;  %s59_s25 = int_to_ptr.vmem [resolvable:$true] %s58_s25  ;;  %s88_s26 = int_to_ptr.vmem [resolvable:$true] %s87_s26 }
  0x2c   :  { %s6867_s14 = scalar_lea.vmem %s59_s25, 64  ;;  %p6872_p2 = scmp.lt.s32.totalorder %s59_s25, %s59_s25 }
  0x2d   :  { %p6868_p1 = scmp.ne.s32.totalorder %s59_s25, %s6867_s14  ;;  %p6873_p3 = scmp.lt.s32.totalorder %s6867_s14, %s6867_s14 }
  0x2f   :  { %p6874_p4 = por %p6873_p3, %p6872_p2 }
  0x31   :  { %p6875_p5 = pnand %p6874_p4, %p6868_p1 }
  0x33   :  { %6878 = shalt.err (!%p6875_p5)
}
  0x34   :  { %61 = dma.hbm_to_vmem [thread:$0]  %s9531_s3, 64, %s59_s25, [#allocation7]  }
  0x35   :  { %s6887_s29 = scalar_lea.vmem %s88_s26, 2048  ;;  %p6892_p7 = scmp.lt.s32.totalorder %s88_s26, %s88_s26 }
  0x36   :  { %p6888_p6 = scmp.ne.s32.totalorder %s88_s26, %s6887_s29  ;;  %p6893_p8 = scmp.lt.s32.totalorder %s6887_s29, %s6887_s29 }
  0x38   :  { %p6894_p9 = por %p6893_p8, %p6892_p7 }
  0x3a   :  { %p6895_p10 = pnand %p6894_p9, %p6888_p6 }
  0x3c   :  { %6898 = shalt.err (!%p6895_p10)
}
  0x3d   :  { %s6938_s0 = smov 64   ;;  %s6939_s30 = smov 4  }
  0x3e   :  { %93 = dma.hbm_to_vmem [thread:$0]  %s9537_s9, 2048, %s88_s26, [#allocation10], %s6938_s0, %s6938_s0, %s6939_s30  }
  0x3f   :  { %6919 = dma.done.wait [#allocation4], 7168  }
  0x40   :  { %6920 = vsyncadd [#allocation4], 4294960128 }
  0x41   :  { %6921 = dma.done.wait [#allocation7], 28736  }
  0x42   :  { %6922 = vsyncadd [#allocation7], 4294938560 }
  0x43   :  { %6923 = dma.done.wait [#allocation10], 10240  }
  0x44   :  { %6924 = vsyncadd [#allocation10], 4294957056  ;;  %v6078_v1 = vld [vmem:[#allocation6 + $0xe4] ss:$16 sps:$4 sm:$0xff]   ;;  %v6940_v3 = vmov 0  }
  0x45   :  { %v6080_v2 = vld [vmem:[#allocation6 + $0x2e4] ss:$16 sps:$4 sm:$0xff]   ;;  %6076 = vset.pattern.permute.xlu1 %v6940_v3  ;;  %6077 = vset.pattern.permute.xlu0 %v6940_v3  ;;  %v6082_v4 = vld [vmem:[#allocation6 + $0xe0] ss:$16 sps:$4 sm:$0xff]   ;;  %v6179_v53 = vld [vmem:[#allocation3 + $0xc] ss:$28 sps:$4 sm:$0xff]  }
  0x46   :  { %1838 = vmatprep.subr.bf16.mxu0 %v6078_v1  ;;  %v6083_v5 = vld [vmem:[#allocation6 + $0x2e0] ss:$16 sps:$4 sm:$0xff]   ;;  %1951 = vmatprep.subr.bf16.mxu1 %v6080_v2  ;;  %v6084_v6 = vld [vmem:[#allocation6 + $0xc4] ss:$16 sps:$4 sm:$0xff]  }
  0x47   :  { %1839 = vmatpush1.bf16.msra.mxu0 %v6082_v4  ;;  %1952 = vmatpush1.bf16.msra.mxu1 %v6083_v5  ;;  %v6086_v7 = vld [vmem:[#allocation6 + $0x2c4] ss:$16 sps:$4 sm:$0xff]   ;;  %v6088_v8 = vld [vmem:[#allocation6 + $0xc0] ss:$16 sps:$4 sm:$0xff]  }
  0x48   :  { %1840 = vmatprep.subr.bf16.mxu0 %v6084_v6  ;;  %v6089_v9 = vld [vmem:[#allocation6 + $0x2c0] ss:$16 sps:$4 sm:$0xff]   ;;  %1953 = vmatprep.subr.bf16.mxu1 %v6086_v7  ;;  %v6090_v10 = vld [vmem:[#allocation6 + $0xa4] ss:$16 sps:$4 sm:$0xff]  }
  0x49   :  { %v6092_v11 = vld [vmem:[#allocation6 + $0x2a4] ss:$16 sps:$4 sm:$0xff]   ;;  %v6094_v12 = vld [vmem:[#allocation6 + $0xa0] ss:$16 sps:$4 sm:$0xff]   ;;  %1983 = vmatprep.mubr.bf16.mxu1 %v6179_v53 }
  0x4a   :  { %v6095_v13 = vld [vmem:[#allocation6 + $0x2a0] ss:$16 sps:$4 sm:$0xff]   ;;  %v6096_v14 = vld [vmem:[#allocation6 + $0x84] ss:$16 sps:$4 sm:$0xff]  }
  0x4b   :  { %1841 = vmatpush1.bf16.msra.mxu0 %v6088_v8  ;;  %1954 = vmatpush1.bf16.msra.mxu1 %v6089_v9  ;;  %v6098_v15 = vld [vmem:[#allocation6 + $0x284] ss:$16 sps:$4 sm:$0xff]   ;;  %v6100_v16 = vld [vmem:[#allocation6 + $0x80] ss:$16 sps:$4 sm:$0xff]  }
  0x4c   :  { %1842 = vmatprep.subr.bf16.mxu0 %v6090_v10  ;;  %1955 = vmatprep.subr.bf16.mxu1 %v6092_v11  ;;  %v6101_v17 = vld [vmem:[#allocation6 + $0x280] ss:$16 sps:$4 sm:$0xff]   ;;  %v6102_v18 = vld [vmem:[#allocation6 + $0x64] ss:$16 sps:$4 sm:$0xff]  }
  0x4d   :  { %v6104_v19 = vld [vmem:[#allocation6 + $0x264] ss:$16 sps:$4 sm:$0xff]   ;;  %v6106_v20 = vld [vmem:[#allocation6 + $0x60] ss:$16 sps:$4 sm:$0xff]  }
  0x4e   :  { %v6107_v21 = vld [vmem:[#allocation6 + $0x260] ss:$16 sps:$4 sm:$0xff]   ;;  %v6108_v22 = vld [vmem:[#allocation6 + $0x44] ss:$16 sps:$4 sm:$0xff]  }
  0x4f   :  { %1843 = vmatpush1.bf16.msra.mxu0 %v6094_v12  ;;  %1956 = vmatpush1.bf16.msra.mxu1 %v6095_v13  ;;  %v6110_v23 = vld [vmem:[#allocation6 + $0x244] ss:$16 sps:$4 sm:$0xff]   ;;  %v6112_v24 = vld [vmem:[#allocation6 + $0x40] ss:$16 sps:$4 sm:$0xff]   ;;  %v6189_v12 = vld [vmem:[#allocation3 + $0x3c] ss:$28 sps:$4 sm:$0xff]  }
  0x50   :  { %1844 = vmatprep.subr.bf16.mxu0 %v6096_v14  ;;  %1957 = vmatprep.subr.bf16.mxu1 %v6098_v15  ;;  %v6113_v25 = vld [vmem:[#allocation6 + $0x240] ss:$16 sps:$4 sm:$0xff]   ;;  %v6114_v26 = vld [vmem:[#allocation6 + $0x24] ss:$16 sps:$4 sm:$0xff]  }
  0x51   :  { %v6116_v27 = vld [vmem:[#allocation6 + $0x224] ss:$16 sps:$4 sm:$0xff]   ;;  %v6118_v28 = vld [vmem:[#allocation6 + $0x20] ss:$16 sps:$4 sm:$0xff]  }
  0x52   :  { %v6119_v29 = vld [vmem:[#allocation6 + $0x220] ss:$16 sps:$4 sm:$0xff]   ;;  %v6120_v30 = vld [vmem:[#allocation6 + $0x4] ss:$16 sps:$4 sm:$0xff]  }
  0x53   :  { %1845 = vmatpush1.bf16.msra.mxu0 %v6100_v16  ;;  %1958 = vmatpush1.bf16.msra.mxu1 %v6101_v17  ;;  %v6122_v31 = vld [vmem:[#allocation6 + $0x204] ss:$16 sps:$4 sm:$0xff]   ;;  %v6124_v32 = vld [vmem:[#allocation6] ss:$16 sps:$4 sm:$0xff]  }
  0x54   :  { %1846 = vmatprep.subr.bf16.mxu0 %v6102_v18  ;;  %1959 = vmatprep.subr.bf16.mxu1 %v6104_v19  ;;  %v6125_v33 = vld [vmem:[#allocation6 + $0x200] ss:$16 sps:$4 sm:$0xff]   ;;  %v6126_v34 = vld [vmem:[#allocation6 + $0x1e4] ss:$16 sps:$4 sm:$0xff]  }
  0x55   :  { %v6128_v35 = vld [vmem:[#allocation6 + $0x3e4] ss:$16 sps:$4 sm:$0xff]   ;;  %v6130_v36 = vld [vmem:[#allocation6 + $0x1e0] ss:$16 sps:$4 sm:$0xff]  }
  0x56   :  { %v6131_v37 = vld [vmem:[#allocation6 + $0x3e0] ss:$16 sps:$4 sm:$0xff]   ;;  %v6132_v38 = vld [vmem:[#allocation6 + $0x1c4] ss:$16 sps:$4 sm:$0xff]  }
  0x57   :  { %1847 = vmatpush1.bf16.msra.mxu0 %v6106_v20  ;;  %1960 = vmatpush1.bf16.msra.mxu1 %v6107_v21  ;;  %v6134_v39 = vld [vmem:[#allocation6 + $0x3c4] ss:$16 sps:$4 sm:$0xff]   ;;  %v6136_v40 = vld [vmem:[#allocation6 + $0x1c0] ss:$16 sps:$4 sm:$0xff]  }
  0x58   :  { %1848 = vmatprep.subr.bf16.mxu0 %v6108_v22  ;;  %1961 = vmatprep.subr.bf16.mxu1 %v6110_v23  ;;  %v6137_v41 = vld [vmem:[#allocation6 + $0x3c0] ss:$16 sps:$4 sm:$0xff]   ;;  %v6138_v42 = vld [vmem:[#allocation6 + $0x1a4] ss:$16 sps:$4 sm:$0xff]  }
  0x59   :  { %v6140_v43 = vld [vmem:[#allocation6 + $0x3a4] ss:$16 sps:$4 sm:$0xff]   ;;  %v6142_v44 = vld [vmem:[#allocation6 + $0x1a0] ss:$16 sps:$4 sm:$0xff]  }
  0x5a   :  { %v6143_v45 = vld [vmem:[#allocation6 + $0x3a0] ss:$16 sps:$4 sm:$0xff]   ;;  %v6144_v46 = vld [vmem:[#allocation6 + $0x184] ss:$16 sps:$4 sm:$0xff]  }
  0x5b   :  { %1849 = vmatpush1.bf16.msra.mxu0 %v6112_v24  ;;  %1962 = vmatpush1.bf16.msra.mxu1 %v6113_v25  ;;  %v6146_v47 = vld [vmem:[#allocation6 + $0x384] ss:$16 sps:$4 sm:$0xff]   ;;  %v6148_v48 = vld [vmem:[#allocation6 + $0x180] ss:$16 sps:$4 sm:$0xff]   ;;  %v6206_v24 = vld [vmem:[#allocation3 + $0x7c] ss:$28 sps:$4 sm:$0xff]  }
  0x5c   :  { %1850 = vmatprep.subr.bf16.mxu0 %v6114_v26  ;;  %1963 = vmatprep.subr.bf16.mxu1 %v6116_v27  ;;  %v6149_v49 = vld [vmem:[#allocation6 + $0x380] ss:$16 sps:$4 sm:$0xff]   ;;  %v6150_v50 = vld [vmem:[#allocation6 + $0x164] ss:$16 sps:$4 sm:$0xff]  }
  0x5d   :  { %v6176_v51 = vld [vmem:[#allocation3 + $0x4] ss:$28 sps:$4 sm:$0xff]   ;;  %v6193_v19 = vld [vmem:[#allocation3 + $0x38] ss:$28 sps:$4 sm:$0xff]  }
  0x5e   :  { %v6152_v52 = vld [vmem:[#allocation6 + $0x364] ss:$16 sps:$4 sm:$0xff]   ;;  %1870 = vmatprep.mubr.bf16.mxu0 %v6176_v51  ;;  %v6154_v54 = vld [vmem:[#allocation6 + $0x160] ss:$16 sps:$4 sm:$0xff]  }
  0x5f   :  { %1851 = vmatpush1.bf16.msra.mxu0 %v6118_v28  ;;  %1964 = vmatpush1.bf16.msra.mxu1 %v6119_v29  ;;  %v6155_v55 = vld [vmem:[#allocation6 + $0x360] ss:$16 sps:$4 sm:$0xff]   ;;  %v6156_v56 = vld [vmem:[#allocation6 + $0x144] ss:$16 sps:$4 sm:$0xff]  }
  0x60   :  { %1852 = vmatprep.subr.bf16.mxu0 %v6120_v30  ;;  %1965 = vmatprep.subr.bf16.mxu1 %v6122_v31  ;;  %v6158_v57 = vld [vmem:[#allocation6 + $0x344] ss:$16 sps:$4 sm:$0xff]   ;;  %v6160_v58 = vld [vmem:[#allocation6 + $0x140] ss:$16 sps:$4 sm:$0xff]  }
  0x61   :  { %v6161_v59 = vld [vmem:[#allocation6 + $0x340] ss:$16 sps:$4 sm:$0xff]   ;;  %v6162_v60 = vld [vmem:[#allocation6 + $0x124] ss:$16 sps:$4 sm:$0xff]  }
  0x62   :  { %v6164_v61 = vld [vmem:[#allocation6 + $0x324] ss:$16 sps:$4 sm:$0xff]   ;;  %v6166_v62 = vld [vmem:[#allocation6 + $0x120] ss:$16 sps:$4 sm:$0xff]  }
  0x63   :  { %1853 = vmatpush1.bf16.msra.mxu0 %v6124_v32  ;;  %1966 = vmatpush1.bf16.msra.mxu1 %v6125_v33  ;;  %v6167_v63 = vld [vmem:[#allocation6 + $0x320] ss:$16 sps:$4 sm:$0xff]   ;;  %v6168_v0 = vld [vmem:[#allocation6 + $0x104] ss:$16 sps:$4 sm:$0xff]  }
  0x64   :  { %1854 = vmatprep.subr.bf16.mxu0 %v6126_v34  ;;  %1967 = vmatprep.subr.bf16.mxu1 %v6128_v35  ;;  %v6170_v1 = vld [vmem:[#allocation6 + $0x304] ss:$16 sps:$4 sm:$0xff]   ;;  %v6172_v2 = vld [vmem:[#allocation6 + $0x100] ss:$16 sps:$4 sm:$0xff]   ;;  %v6219_v34 = vld [vmem:[#allocation3 + $0xac] ss:$28 sps:$4 sm:$0xff]  }
  0x65   :  { %v6173_v4 = vld [vmem:[#allocation6 + $0x300] ss:$16 sps:$4 sm:$0xff]   ;;  %v6182_v5 = vld [vmem:[#allocation6 + $0x4e4] ss:$16 sps:$4 sm:$0xff]  }
  0x66   :  { %v6185_v6 = vld [vmem:[#allocation6 + $0x6e4] ss:$16 sps:$4 sm:$0xff]   ;;  %v6174_v7 = vld [vmem:[#allocation3] ss:$28 sps:$4 sm:$0xff]   ;;  %v6208_v28 = vld [vmem:[#allocation3 + $0x70] ss:$28 sps:$4 sm:$0xff]  }
  0x67   :  { %1855 = vmatpush2.bf16.msra.mxu0 %v6130_v36  ;;  %1968 = vmatpush2.bf16.msra.mxu1 %v6131_v37  ;;  %v6177_v8 = vld [vmem:[#allocation3 + $0x8] ss:$28 sps:$4 sm:$0xff]   ;;  %v6180_v9 = vld [vmem:[#allocation6 + $0x4e0] ss:$16 sps:$4 sm:$0xff]   ;;  %v6209_v30 = vld [vmem:[#allocation3 + $0x78] ss:$28 sps:$4 sm:$0xff]  }
  0x68   :  { %1856 = vmatprep.subr.bf16.mxu0 %v6132_v38  ;;  %1969 = vmatprep.subr.bf16.mxu1 %v6134_v39  ;;  %v6183_v10 = vld [vmem:[#allocation6 + $0x6e0] ss:$16 sps:$4 sm:$0xff]   ;;  %v6188_v11 = vld [vmem:[#allocation6 + $0x4c4] ss:$16 sps:$4 sm:$0xff]  }
  0x69   :  { %v6191_v13 = vld [vmem:[#allocation3 + $0x44] ss:$28 sps:$4 sm:$0xff]   ;;  %v6204_v23 = vld [vmem:[#allocation3 + $0x74] ss:$28 sps:$4 sm:$0xff]  }
  0x6a   :  { %v6200_v14 = vld [vmem:[#allocation6 + $0x6c4] ss:$16 sps:$4 sm:$0xff]   ;;  %v6186_v15 = vld [vmem:[#allocation6 + $0x4c0] ss:$16 sps:$4 sm:$0xff]  }
  0x6b   :  { %1857 = vmatpush2.bf16.msra.mxu0 %v6136_v40  ;;  %1970 = vmatpush2.bf16.msra.mxu1 %v6137_v41  ;;  %v6197_v16 = vld [vmem:[#allocation6 + $0x4a4] ss:$16 sps:$4 sm:$0xff]   ;;  %v6198_v17 = vld [vmem:[#allocation6 + $0x6c0] ss:$16 sps:$4 sm:$0xff]  }
  0x6c   :  { %1858 = vmatprep.subr.bf16.mxu0 %v6138_v42  ;;  %1971 = vmatprep.subr.bf16.mxu1 %v6140_v43  ;;  %v6215_v18 = vld [vmem:[#allocation6 + $0x6a4] ss:$16 sps:$4 sm:$0xff]   ;;  %v6194_v20 = vld [vmem:[#allocation3 + $0x40] ss:$28 sps:$4 sm:$0xff]   ;;  %v6224_v42 = vld [vmem:[#allocation3 + $0xb0] ss:$28 sps:$4 sm:$0xff]  }
  0x6d   :  { %v6195_v21 = vld [vmem:[#allocation6 + $0x4a0] ss:$16 sps:$4 sm:$0xff]   ;;  %v6203_v22 = vld [vmem:[#allocation6 + $0x484] ss:$16 sps:$4 sm:$0xff]  }
  0x6e   :  { %v6213_v25 = vld [vmem:[#allocation6 + $0x6a0] ss:$16 sps:$4 sm:$0xff]   ;;  %v6230_v26 = vld [vmem:[#allocation6 + $0x684] ss:$16 sps:$4 sm:$0xff]  }
  0x6f   :  { %1859 = vmatpush2.bf16.msra.mxu0 %v6142_v44  ;;  %1972 = vmatpush2.bf16.msra.mxu1 %v6143_v45  ;;  %v6201_v27 = vld [vmem:[#allocation6 + $0x480] ss:$16 sps:$4 sm:$0xff]   ;;  %v6212_v29 = vld [vmem:[#allocation6 + $0x464] ss:$16 sps:$4 sm:$0xff]  }
  0x70   :  { %1860 = vmatprep.subr.bf16.mxu0 %v6144_v46  ;;  %1973 = vmatprep.subr.bf16.mxu1 %v6146_v47  ;;  %v6228_v31 = vld [vmem:[#allocation6 + $0x680] ss:$16 sps:$4 sm:$0xff]   ;;  %v6218_v33 = vld [vmem:[#allocation6 + $0x444] ss:$16 sps:$4 sm:$0xff]   ;;  %v6236_v46 = vld [vmem:[#allocation3 + $0xec] ss:$28 sps:$4 sm:$0xff]  }
  0x71   :  { %v6210_v32 = vld [vmem:[#allocation6 + $0x460] ss:$16 sps:$4 sm:$0xff]   ;;  %v6245_v36 = vld [vmem:[#allocation6 + $0x664] ss:$16 sps:$4 sm:$0xff]  }
  0x72   :  { %v6221_v35 = vld [vmem:[#allocation3 + $0xb4] ss:$28 sps:$4 sm:$0xff]   ;;  %v6223_v41 = vld [vmem:[#allocation3 + $0xa8] ss:$28 sps:$4 sm:$0xff]  }
  0x73   :  { %1861 = vmatpush2.bf16.msra.mxu0 %v6148_v48  ;;  %1974 = vmatpush2.bf16.msra.mxu1 %v6149_v49  ;;  %v6243_v37 = vld [vmem:[#allocation6 + $0x660] ss:$16 sps:$4 sm:$0xff]   ;;  %v6260_v39 = vld [vmem:[#allocation6 + $0x644] ss:$16 sps:$4 sm:$0xff]  }
  0x74   :  { %1862 = vmatprep.subr.bf16.mxu0 %v6150_v50  ;;  %1975 = vmatprep.subr.bf16.mxu1 %v6152_v52  ;;  %v6216_v38 = vld [vmem:[#allocation6 + $0x440] ss:$16 sps:$4 sm:$0xff]   ;;  %v6227_v40 = vld [vmem:[#allocation6 + $0x424] ss:$16 sps:$4 sm:$0xff]  }
  0x75   :  { %v6225_v43 = vld [vmem:[#allocation6 + $0x420] ss:$16 sps:$4 sm:$0xff]   ;;  %v6233_v44 = vld [vmem:[#allocation6 + $0x404] ss:$16 sps:$4 sm:$0xff]  }
  0x76   :  { %v6234_v45 = vld [vmem:[#allocation3 + $0xe4] ss:$28 sps:$4 sm:$0xff]  }
  0x77   :  { %1863 = vmatpush2.bf16.msra.mxu0 %v6154_v54  ;;  %1976 = vmatpush2.bf16.msra.mxu1 %v6155_v55  ;;  %v6258_v47 = vld [vmem:[#allocation6 + $0x640] ss:$16 sps:$4 sm:$0xff]   ;;  %v6275_v48 = vld [vmem:[#allocation6 + $0x624] ss:$16 sps:$4 sm:$0xff]  }
  0x78   :  { %1864 = vmatprep.subr.bf16.mxu0 %v6156_v56  ;;  %1977 = vmatprep.subr.bf16.mxu1 %v6158_v57  ;;  %v6231_v49 = vld [vmem:[#allocation6 + $0x400] ss:$16 sps:$4 sm:$0xff]   ;;  %v6242_v51 = vld [vmem:[#allocation6 + $0x5e4] ss:$16 sps:$4 sm:$0xff]   ;;  %v6249_v56 = vld [vmem:[#allocation3 + $0x11c] ss:$28 sps:$4 sm:$0xff]  }
  0x79   :  { %v6238_v50 = vld [vmem:[#allocation3 + $0xe0] ss:$28 sps:$4 sm:$0xff]   ;;  %v6239_v52 = vld [vmem:[#allocation3 + $0xe8] ss:$28 sps:$4 sm:$0xff]  }
  0x7a   :  { %v6273_v53 = vld [vmem:[#allocation6 + $0x620] ss:$16 sps:$4 sm:$0xff]   ;;  %v6248_v55 = vld [vmem:[#allocation6 + $0x5c4] ss:$16 sps:$4 sm:$0xff]  }
  0x7b   :  { %1865 = vmatpush2.bf16.msra.mxu0 %v6160_v58  ;;  %1978 = vmatpush2.bf16.msra.mxu1 %v6161_v59  ;;  %v6240_v54 = vld [vmem:[#allocation6 + $0x5e0] ss:$16 sps:$4 sm:$0xff]   ;;  %v6290_v58 = vld [vmem:[#allocation6 + $0x604] ss:$16 sps:$4 sm:$0xff]  }
  0x7c   :  { %1866 = vmatprep.subr.bf16.mxu0 %v6162_v60  ;;  %1979 = vmatprep.subr.bf16.mxu1 %v6164_v61  ;;  %v6251_v57 = vld [vmem:[#allocation3 + $0x124] ss:$28 sps:$4 sm:$0xff]   ;;  %v6303_v61 = vld [vmem:[#allocation6 + $0x2ec] ss:$16 sps:$4 sm:$0xff]  }
  0x7d   :  { %v6288_v59 = vld [vmem:[#allocation6 + $0x600] ss:$16 sps:$4 sm:$0xff]  }
  0x7e   :  { %v6246_v60 = vld [vmem:[#allocation6 + $0x5c0] ss:$16 sps:$4 sm:$0xff]  }
  0x7f   :  { %1867 = vmatpush2.bf16.msra.mxu0 %v6166_v62  ;;  %1980 = vmatpush2.bf16.msra.mxu1 %v6167_v63  ;;  %v6257_v62 = vld [vmem:[#allocation6 + $0x5a4] ss:$16 sps:$4 sm:$0xff]  }
  0x80   :  { %1868 = vmatprep.subr.bf16.mxu0 %v6168_v0  ;;  %1981 = vmatprep.subr.bf16.mxu1 %v6170_v1  ;;  %v6253_v63 = vld [vmem:[#allocation3 + $0x118] ss:$28 sps:$4 sm:$0xff]   ;;  %v6254_v0 = vld [vmem:[#allocation3 + $0x120] ss:$28 sps:$4 sm:$0xff]  }
  0x81   :  { %v6255_v1 = vld [vmem:[#allocation6 + $0x5a0] ss:$16 sps:$4 sm:$0xff]  }
  0x83   :  { %1869 = vmatpush2.bf16.msra.mxu0 %v6172_v2  ;;  %1982 = vmatpush2.bf16.msra.mxu1 %v6173_v4  ;;  %v6263_v2 = vld [vmem:[#allocation6 + $0x584] ss:$16 sps:$4 sm:$0xff]  }
  0x84   :  { %2064 = vmatprep.subr.bf16.mxu0 %v6182_v5  ;;  %2177 = vmatprep.subr.bf16.mxu1 %v6185_v6  ;;  %v6264_v4 = vld [vmem:[#allocation3 + $0x154] ss:$28 sps:$4 sm:$0xff]   ;;  %v6266_v5 = vld [vmem:[#allocation3 + $0x15c] ss:$28 sps:$4 sm:$0xff]  }
  0x85   :  { %v6261_v6 = vld [vmem:[#allocation6 + $0x580] ss:$16 sps:$4 sm:$0xff]  }
  0x86   :  { %1871 = vmatmul.mubr.bf16.vlgmr.msra.gmra.mxu0 %v6174_v7  ;;  %1984 = vmatmul.mubr.bf16.vlgmr.msra.gmra.mxu1 %v6177_v8  ;;  %v6268_v7 = vld [vmem:[#allocation3 + $0x150] ss:$28 sps:$4 sm:$0xff]   ;;  %v6272_v8 = vld [vmem:[#allocation6 + $0x564] ss:$16 sps:$4 sm:$0xff]  }
  0x87   :  { %2065 = vmatpush1.bf16.msra.mxu0 %v6180_v9  ;;  %2178 = vmatpush1.bf16.msra.mxu1 %v6183_v10  ;;  %v6269_v9 = vld [vmem:[#allocation3 + $0x158] ss:$28 sps:$4 sm:$0xff]   ;;  %v6270_v10 = vld [vmem:[#allocation6 + $0x560] ss:$16 sps:$4 sm:$0xff]  }
  0x88   :  { %2066 = vmatprep.subr.bf16.mxu0 %v6188_v11  ;;  %1880 = vmatprep.mubr.bf16.mxu0 %v6189_v12  ;;  %v6278_v11 = vld [vmem:[#allocation6 + $0x544] ss:$16 sps:$4 sm:$0xff]   ;;  %v6279_v12 = vld [vmem:[#allocation3 + $0x18c] ss:$28 sps:$4 sm:$0xff]  }
  0x89   :  { %1993 = vmatprep.mubr.bf16.mxu1 %v6191_v13  ;;  %2179 = vmatprep.subr.bf16.mxu1 %v6200_v14  ;;  %v6281_v13 = vld [vmem:[#allocation3 + $0x194] ss:$28 sps:$4 sm:$0xff]  }
  0x8a   :  { %v6276_v14 = vld [vmem:[#allocation6 + $0x540] ss:$16 sps:$4 sm:$0xff]  }
  0x8b   :  { %2067 = vmatpush1.bf16.msra.mxu0 %v6186_v15  ;;  %2180 = vmatpush1.bf16.msra.mxu1 %v6198_v17  ;;  %v6287_v15 = vld [vmem:[#allocation6 + $0x524] ss:$16 sps:$4 sm:$0xff]   ;;  %v6284_v17 = vld [vmem:[#allocation3 + $0x190] ss:$28 sps:$4 sm:$0xff]  }
  0x8c   :  { %2068 = vmatprep.subr.bf16.mxu0 %v6197_v16  ;;  %2181 = vmatprep.subr.bf16.mxu1 %v6215_v18  ;;  %v6283_v16 = vld [vmem:[#allocation3 + $0x188] ss:$28 sps:$4 sm:$0xff]   ;;  %v6285_v18 = vld [vmem:[#allocation6 + $0x520] ss:$16 sps:$4 sm:$0xff]  }
  0x8e   :  { %1881 = vmatmul.mubr.bf16.gmra.mxu0 %v6193_v19  ;;  %1994 = vmatmul.mubr.bf16.gmra.mxu1 %v6194_v20  ;;  %v6296_v19 = vld [vmem:[#allocation3 + $0x14] ss:$28 sps:$4 sm:$0xff]  }
  0x8f   :  { %2069 = vmatpush1.bf16.msra.mxu0 %v6195_v21  ;;  %1890 = vmatprep.mubr.bf16.mxu0 %v6204_v23  ;;  %v6293_v20 = vld [vmem:[#allocation6 + $0x504] ss:$16 sps:$4 sm:$0xff]   ;;  %v6291_v21 = vld [vmem:[#allocation6 + $0x500] ss:$16 sps:$4 sm:$0xff]  }
  0x90   :  { %2070 = vmatprep.subr.bf16.mxu0 %v6203_v22  ;;  %2003 = vmatprep.mubr.bf16.mxu1 %v6206_v24  ;;  %v6300_v22 = vld [vmem:[#allocation6 + $0xec] ss:$16 sps:$4 sm:$0xff]   ;;  %v7045_v24 = vld [vmem:[#allocation3 + $0x18] ss:$28 sps:$4 sm:$0xff]  }
  0x91   :  { %2182 = vmatpush1.bf16.msra.mxu1 %v6213_v25  ;;  %v7043_v23 = vld [vmem:[#allocation3 + $0x10] ss:$28 sps:$4 sm:$0xff]   ;;  %v6298_v25 = vld [vmem:[#allocation6 + $0xe8] ss:$16 sps:$4 sm:$0xff]  }
  0x92   :  { %2183 = vmatprep.subr.bf16.mxu1 %v6230_v26  ;;  %v6301_v26 = vld [vmem:[#allocation6 + $0x2e8] ss:$16 sps:$4 sm:$0xff]  }
  0x93   :  { %2071 = vmatpush1.bf16.msra.mxu0 %v6201_v27  ;;  %v6306_v27 = vld [vmem:[#allocation6 + $0xcc] ss:$16 sps:$4 sm:$0xff]  }
  0x94   :  { %2072 = vmatprep.subr.bf16.mxu0 %v6212_v29  ;;  %v7047_v29 = vld [vmem:[#allocation3 + $0x4c] ss:$28 sps:$4 sm:$0xff]  }
  0x95   :  { %2184 = vmatpush1.bf16.msra.mxu1 %v6228_v31  ;;  %v6307_v31 = vld [vmem:[#allocation6 + $0x2c8] ss:$16 sps:$4 sm:$0xff]  }
  0x96   :  { %1891 = vmatmul.mubr.bf16.gmra.mxu0 %v6208_v28  ;;  %2004 = vmatmul.mubr.bf16.gmra.mxu1 %v6209_v30  ;;  %v6309_v28 = vld [vmem:[#allocation6 + $0x2cc] ss:$16 sps:$4 sm:$0xff]   ;;  %v6304_v30 = vld [vmem:[#allocation6 + $0xc8] ss:$16 sps:$4 sm:$0xff]  }
  0x97   :  { %2073 = vmatpush1.bf16.msra.mxu0 %v6210_v32  ;;  %1900 = vmatprep.mubr.bf16.mxu0 %v6219_v34  ;;  %v6316_v32 = vld [vmem:[#allocation6 + $0xac] ss:$16 sps:$4 sm:$0xff]   ;;  %v7053_v34 = vld [vmem:[#allocation3 + $0x48] ss:$28 sps:$4 sm:$0xff]  }
  0x98   :  { %2074 = vmatprep.subr.bf16.mxu0 %v6218_v33  ;;  %2013 = vmatprep.mubr.bf16.mxu1 %v6221_v35  ;;  %v6319_v33 = vld [vmem:[#allocation6 + $0x2ac] ss:$16 sps:$4 sm:$0xff]  }
  0x99   :  { %2185 = vmatprep.subr.bf16.mxu1 %v6245_v36  ;;  %v7055_v35 = vld [vmem:[#allocation3 + $0x50] ss:$28 sps:$4 sm:$0xff]   ;;  %v6314_v36 = vld [vmem:[#allocation6 + $0xa8] ss:$16 sps:$4 sm:$0xff]  }
  0x9a   :  { %2186 = vmatpush1.bf16.msra.mxu1 %v6243_v37  ;;  %v6317_v37 = vld [vmem:[#allocation6 + $0x2a8] ss:$16 sps:$4 sm:$0xff]  }
  0x9b   :  { %2075 = vmatpush1.bf16.msra.mxu0 %v6216_v38  ;;  %2187 = vmatprep.subr.bf16.mxu1 %v6260_v39  ;;  %v6322_v38 = vld [vmem:[#allocation6 + $0x8c] ss:$16 sps:$4 sm:$0xff]  }
  0x9c   :  { %2076 = vmatprep.subr.bf16.mxu0 %v6227_v40  ;;  %v6325_v39 = vld [vmem:[#allocation6 + $0x28c] ss:$16 sps:$4 sm:$0xff]   ;;  %v7057_v40 = vld [vmem:[#allocation3 + $0x84] ss:$28 sps:$4 sm:$0xff]  }
  0x9e   :  { %1901 = vmatmul.mubr.bf16.gmra.mxu0 %v6223_v41  ;;  %2014 = vmatmul.mubr.bf16.gmra.mxu1 %v6224_v42  ;;  %v6320_v41 = vld [vmem:[#allocation6 + $0x88] ss:$16 sps:$4 sm:$0xff]  }
  0x9f   :  { %2077 = vmatpush1.bf16.msra.mxu0 %v6225_v43  ;;  %1910 = vmatprep.mubr.bf16.mxu0 %v6234_v45  ;;  %v6323_v42 = vld [vmem:[#allocation6 + $0x288] ss:$16 sps:$4 sm:$0xff]   ;;  %v7061_v43 = vld [vmem:[#allocation3 + $0x80] ss:$28 sps:$4 sm:$0xff]  }
  0xa0   :  { %2078 = vmatprep.subr.bf16.mxu0 %v6233_v44  ;;  %2023 = vmatprep.mubr.bf16.mxu1 %v6236_v46  ;;  %v6332_v44 = vld [vmem:[#allocation6 + $0x6c] ss:$16 sps:$4 sm:$0xff]   ;;  %v7065_v46 = vld [vmem:[#allocation3 + $0x88] ss:$28 sps:$4 sm:$0xff]  }
  0xa1   :  { %2188 = vmatpush1.bf16.msra.mxu1 %v6258_v47  ;;  %v6335_v45 = vld [vmem:[#allocation6 + $0x26c] ss:$16 sps:$4 sm:$0xff]   ;;  %v6330_v47 = vld [vmem:[#allocation6 + $0x68] ss:$16 sps:$4 sm:$0xff]  }
  0xa2   :  { %2189 = vmatprep.subr.bf16.mxu1 %v6275_v48  ;;  %v6333_v48 = vld [vmem:[#allocation6 + $0x268] ss:$16 sps:$4 sm:$0xff]  }
  0xa3   :  { %2079 = vmatpush1.bf16.msra.mxu0 %v6231_v49  ;;  %v6338_v49 = vld [vmem:[#allocation6 + $0x4c] ss:$16 sps:$4 sm:$0xff]  }
  0xa4   :  { %2080 = vmatprep.subr.bf16.mxu0 %v6242_v51  ;;  %v7067_v51 = vld [vmem:[#allocation3 + $0xbc] ss:$28 sps:$4 sm:$0xff]  }
  0xa5   :  { %2190 = vmatpush1.bf16.msra.mxu1 %v6273_v53  ;;  %v6339_v53 = vld [vmem:[#allocation6 + $0x248] ss:$16 sps:$4 sm:$0xff]  }
  0xa6   :  { %1911 = vmatmul.mubr.bf16.gmra.mxu0 %v6238_v50  ;;  %2024 = vmatmul.mubr.bf16.gmra.mxu1 %v6239_v52  ;;  %v6341_v50 = vld [vmem:[#allocation6 + $0x24c] ss:$16 sps:$4 sm:$0xff]   ;;  %v6336_v52 = vld [vmem:[#allocation6 + $0x48] ss:$16 sps:$4 sm:$0xff]  }
  0xa7   :  { %2081 = vmatpush2.bf16.msra.mxu0 %v6240_v54  ;;  %1920 = vmatprep.mubr.bf16.mxu0 %v6249_v56  ;;  %v7071_v54 = vld [vmem:[#allocation3 + $0xb8] ss:$28 sps:$4 sm:$0xff]   ;;  %v6351_v56 = vld [vmem:[#allocation6 + $0x22c] ss:$16 sps:$4 sm:$0xff]  }
  0xa8   :  { %2082 = vmatprep.subr.bf16.mxu0 %v6248_v55  ;;  %2033 = vmatprep.mubr.bf16.mxu1 %v6251_v57  ;;  %v6348_v55 = vld [vmem:[#allocation6 + $0x2c] ss:$16 sps:$4 sm:$0xff]  }
  0xa9   :  { %2191 = vmatprep.subr.bf16.mxu1 %v6290_v58  ;;  %v7075_v57 = vld [vmem:[#allocation3 + $0xc0] ss:$28 sps:$4 sm:$0xff]   ;;  %v6346_v58 = vld [vmem:[#allocation6 + $0x28] ss:$16 sps:$4 sm:$0xff]  }
  0xaa   :  { %2192 = vmatpush1.bf16.msra.mxu1 %v6288_v59  ;;  %v6349_v59 = vld [vmem:[#allocation6 + $0x228] ss:$16 sps:$4 sm:$0xff]  }
  0xab   :  { %2083 = vmatpush2.bf16.msra.mxu0 %v6246_v60  ;;  %2403 = vmatprep.subr.bf16.mxu1 %v6303_v61  ;;  %v6354_v60 = vld [vmem:[#allocation6 + $0xc] ss:$16 sps:$4 sm:$0xff]  }
  0xac   :  { %2084 = vmatprep.subr.bf16.mxu0 %v6257_v62  ;;  %v6357_v61 = vld [vmem:[#allocation6 + $0x20c] ss:$16 sps:$4 sm:$0xff]   ;;  %v7077_v62 = vld [vmem:[#allocation3 + $0xf4] ss:$28 sps:$4 sm:$0xff]  }
  0xae   :  { %1921 = vmatmul.mubr.bf16.gmra.mxu0 %v6253_v63  ;;  %2034 = vmatmul.mubr.bf16.gmra.mxu1 %v6254_v0  ;;  %v6352_v63 = vld [vmem:[#allocation6 + $0x8] ss:$16 sps:$4 sm:$0xff]  }
  0xaf   :  { %2085 = vmatpush2.bf16.msra.mxu0 %v6255_v1  ;;  %1930 = vmatprep.mubr.bf16.mxu0 %v6264_v4  ;;  %v6355_v0 = vld [vmem:[#allocation6 + $0x208] ss:$16 sps:$4 sm:$0xff]   ;;  %v6364_v1 = vld [vmem:[#allocation6 + $0x1ec] ss:$16 sps:$4 sm:$0xff]  }
  0xb0   :  { %2086 = vmatprep.subr.bf16.mxu0 %v6263_v2  ;;  %2043 = vmatprep.mubr.bf16.mxu1 %v6266_v5  ;;  %v6367_v2 = vld [vmem:[#allocation6 + $0x3ec] ss:$16 sps:$4 sm:$0xff]   ;;  %v7085_v5 = vld [vmem:[#allocation3 + $0xf8] ss:$28 sps:$4 sm:$0xff]  }
  0xb1   :  { %v7083_v4 = vld [vmem:[#allocation3 + $0xf0] ss:$28 sps:$4 sm:$0xff]  }
  0xb3   :  { %2087 = vmatpush2.bf16.msra.mxu0 %v6261_v6  ;;  %v6362_v6 = vld [vmem:[#allocation6 + $0x1e8] ss:$16 sps:$4 sm:$0xff]  }
  0xb4   :  { %2088 = vmatprep.subr.bf16.mxu0 %v6272_v8  ;;  %v6370_v8 = vld [vmem:[#allocation6 + $0x1cc] ss:$16 sps:$4 sm:$0xff]  }
  0xb6   :  { %1931 = vmatmul.mubr.bf16.gmra.mxu0 %v6268_v7  ;;  %2044 = vmatmul.mubr.bf16.gmra.mxu1 %v6269_v9  ;;  %v6365_v7 = vld [vmem:[#allocation6 + $0x3e8] ss:$16 sps:$4 sm:$0xff]   ;;  %v6373_v9 = vld [vmem:[#allocation6 + $0x3cc] ss:$16 sps:$4 sm:$0xff]  }
  0xb7   :  { %2089 = vmatpush2.bf16.msra.mxu0 %v6270_v10  ;;  %1940 = vmatprep.mubr.bf16.mxu0 %v6279_v12  ;;  %v7087_v10 = vld [vmem:[#allocation3 + $0x12c] ss:$28 sps:$4 sm:$0xff]  }
  0xb8   :  { %2090 = vmatprep.subr.bf16.mxu0 %v6278_v11  ;;  %2053 = vmatprep.mubr.bf16.mxu1 %v6281_v13  ;;  %v6368_v11 = vld [vmem:[#allocation6 + $0x1c8] ss:$16 sps:$4 sm:$0xff]   ;;  %v6380_v13 = vld [vmem:[#allocation6 + $0x1ac] ss:$16 sps:$4 sm:$0xff]  }
  0xb9   :  { %v6371_v12 = vld [vmem:[#allocation6 + $0x3c8] ss:$16 sps:$4 sm:$0xff]  }
  0xbb   :  { %2091 = vmatpush2.bf16.msra.mxu0 %v6276_v14  ;;  %v6383_v14 = vld [vmem:[#allocation6 + $0x3ac] ss:$16 sps:$4 sm:$0xff]  }
  0xbc   :  { %2092 = vmatprep.subr.bf16.mxu0 %v6287_v15  ;;  %v7093_v15 = vld [vmem:[#allocation3 + $0x128] ss:$28 sps:$4 sm:$0xff]  }
  0xbe   :  { %1941 = vmatmul.mubr.bf16.gmra.mxu0 %v6283_v16  ;;  %2054 = vmatmul.mubr.bf16.gmra.mxu1 %v6284_v17  ;;  %v7095_v16 = vld [vmem:[#allocation3 + $0x130] ss:$28 sps:$4 sm:$0xff]   ;;  %v6378_v17 = vld [vmem:[#allocation6 + $0x1a8] ss:$16 sps:$4 sm:$0xff]  }
  0xbf   :  { %2093 = vmatpush2.bf16.msra.mxu0 %v6285_v18  ;;  %2096 = vmatprep.mubr.bf16.mxu0 %v6296_v19  ;;  %v6381_v18 = vld [vmem:[#allocation6 + $0x3a8] ss:$16 sps:$4 sm:$0xff]   ;;  %v6386_v19 = vld [vmem:[#allocation6 + $0x18c] ss:$16 sps:$4 sm:$0xff]  }
  0xc0   :  { %2094 = vmatprep.subr.bf16.mxu0 %v6293_v20  ;;  %2209 = vmatprep.mubr.bf16.mxu1 %v6940_v3  ;;  %v6389_v20 = vld [vmem:[#allocation6 + $0x38c] ss:$16 sps:$4 sm:$0xff]  }
  0xc3   :  { %2095 = vmatpush2.bf16.msra.mxu0 %v6291_v21  ;;  %v7097_v21 = vld [vmem:[#allocation3 + $0x164] ss:$28 sps:$4 sm:$0xff]  }
  0xc4   :  { %2290 = vmatprep.subr.bf16.mxu0 %v6300_v22  ;;  %v6384_v22 = vld [vmem:[#allocation6 + $0x188] ss:$16 sps:$4 sm:$0xff]  }
  0xc6   :  { %2097 = vmatmul.mubr.bf16.vlgmr.msra.gmra.mxu0 %v7043_v23  ;;  %2210 = vmatmul.mubr.bf16.vlgmr.msra.gmra.mxu1 %v7045_v24 }
  0xc7   :  { %2291 = vmatpush1.bf16.msra.mxu0 %v6298_v25  ;;  %2404 = vmatpush1.bf16.msra.mxu1 %v6301_v26  ;;  %v6387_v25 = vld [vmem:[#allocation6 + $0x388] ss:$16 sps:$4 sm:$0xff]   ;;  %v6396_v26 = vld [vmem:[#allocation6 + $0x16c] ss:$16 sps:$4 sm:$0xff]  }
  0xc8   :  { %2292 = vmatprep.subr.bf16.mxu0 %v6306_v27  ;;  %2405 = vmatprep.subr.bf16.mxu1 %v6309_v28  ;;  %v6399_v27 = vld [vmem:[#allocation6 + $0x36c] ss:$16 sps:$4 sm:$0xff]  }
  0xc9   :  { %2106 = vmatprep.mubr.bf16.mxu0 %v7047_v29  ;;  %2219 = vmatprep.mubr.bf16.mxu1 %v6940_v3  ;;  %v7103_v28 = vld [vmem:[#allocation3 + $0x160] ss:$28 sps:$4 sm:$0xff]  }
  0xcb   :  { %2293 = vmatpush1.bf16.msra.mxu0 %v6304_v30  ;;  %2406 = vmatpush1.bf16.msra.mxu1 %v6307_v31  ;;  %v7105_v30 = vld [vmem:[#allocation3 + $0x168] ss:$28 sps:$4 sm:$0xff]  }
  0xcc   :  { %2294 = vmatprep.subr.bf16.mxu0 %v6316_v32  ;;  %2407 = vmatprep.subr.bf16.mxu1 %v6319_v33  ;;  %v6394_v31 = vld [vmem:[#allocation6 + $0x168] ss:$16 sps:$4 sm:$0xff]   ;;  %v6402_v33 = vld [vmem:[#allocation6 + $0x14c] ss:$16 sps:$4 sm:$0xff]  }
  0xcd   :  { %v6397_v32 = vld [vmem:[#allocation6 + $0x368] ss:$16 sps:$4 sm:$0xff]  }
  0xce   :  { %2107 = vmatmul.mubr.bf16.gmra.mxu0 %v7053_v34  ;;  %2220 = vmatmul.mubr.bf16.gmra.mxu1 %v7055_v35 }
  0xcf   :  { %2295 = vmatpush1.bf16.msra.mxu0 %v6314_v36  ;;  %2408 = vmatpush1.bf16.msra.mxu1 %v6317_v37  ;;  %v6405_v36 = vld [vmem:[#allocation6 + $0x34c] ss:$16 sps:$4 sm:$0xff]  }
  0xd0   :  { %2296 = vmatprep.subr.bf16.mxu0 %v6322_v38  ;;  %2409 = vmatprep.subr.bf16.mxu1 %v6325_v39  ;;  %v7107_v37 = vld [vmem:[#allocation3 + $0x19c] ss:$28 sps:$4 sm:$0xff]  }
  0xd1   :  { %2116 = vmatprep.mubr.bf16.mxu0 %v7057_v40  ;;  %2229 = vmatprep.mubr.bf16.mxu1 %v6940_v3  ;;  %v6400_v38 = vld [vmem:[#allocation6 + $0x148] ss:$16 sps:$4 sm:$0xff]  }
  0xd2   :  { %v6403_v39 = vld [vmem:[#allocation6 + $0x348] ss:$16 sps:$4 sm:$0xff]  }
  0xd3   :  { %2297 = vmatpush1.bf16.msra.mxu0 %v6320_v41  ;;  %2410 = vmatpush1.bf16.msra.mxu1 %v6323_v42  ;;  %v6412_v41 = vld [vmem:[#allocation6 + $0x12c] ss:$16 sps:$4 sm:$0xff]  }
  0xd4   :  { %2298 = vmatprep.subr.bf16.mxu0 %v6332_v44  ;;  %2411 = vmatprep.subr.bf16.mxu1 %v6335_v45  ;;  %v6415_v42 = vld [vmem:[#allocation6 + $0x32c] ss:$16 sps:$4 sm:$0xff]   ;;  %v7113_v44 = vld [vmem:[#allocation3 + $0x198] ss:$28 sps:$4 sm:$0xff]  }
  0xd5   :  { %v7115_v45 = vld [vmem:[#allocation3 + $0x1a0] ss:$28 sps:$4 sm:$0xff]  }
  0xd6   :  { %2117 = vmatmul.mubr.bf16.gmra.mxu0 %v7061_v43  ;;  %2230 = vmatmul.mubr.bf16.gmra.mxu1 %v7065_v46 }
  0xd7   :  { %2299 = vmatpush1.bf16.msra.mxu0 %v6330_v47  ;;  %2412 = vmatpush1.bf16.msra.mxu1 %v6333_v48  ;;  %v6410_v47 = vld [vmem:[#allocation6 + $0x128] ss:$16 sps:$4 sm:$0xff]  }
  0xd8   :  { %2300 = vmatprep.subr.bf16.mxu0 %v6338_v49  ;;  %2413 = vmatprep.subr.bf16.mxu1 %v6341_v50  ;;  %v6413_v48 = vld [vmem:[#allocation6 + $0x328] ss:$16 sps:$4 sm:$0xff]   ;;  %v6418_v49 = vld [vmem:[#allocation6 + $0x10c] ss:$16 sps:$4 sm:$0xff]  }
  0xd9   :  { %2126 = vmatprep.mubr.bf16.mxu0 %v7067_v51  ;;  %2239 = vmatprep.mubr.bf16.mxu1 %v6940_v3  ;;  %v6421_v50 = vld [vmem:[#allocation6 + $0x30c] ss:$16 sps:$4 sm:$0xff]  }
  0xdb   :  { %2301 = vmatpush1.bf16.msra.mxu0 %v6336_v52  ;;  %2414 = vmatpush1.bf16.msra.mxu1 %v6339_v53  ;;  %v6416_v52 = vld [vmem:[#allocation6 + $0x108] ss:$16 sps:$4 sm:$0xff]  }
  0xdc   :  { %2302 = vmatprep.subr.bf16.mxu0 %v6348_v55  ;;  %2415 = vmatprep.subr.bf16.mxu1 %v6351_v56  ;;  %v6419_v53 = vld [vmem:[#allocation6 + $0x308] ss:$16 sps:$4 sm:$0xff]   ;;  %v6424_v55 = vld [vmem:[#allocation6 + $0x4ec] ss:$16 sps:$4 sm:$0xff]  }
  0xdd   :  { %v6427_v56 = vld [vmem:[#allocation6 + $0x6ec] ss:$16 sps:$4 sm:$0xff]  }
  0xde   :  { %2127 = vmatmul.mubr.bf16.gmra.mxu0 %v7071_v54  ;;  %2240 = vmatmul.mubr.bf16.gmra.mxu1 %v7075_v57 }
  0xdf   :  { %2303 = vmatpush1.bf16.msra.mxu0 %v6346_v58  ;;  %2416 = vmatpush1.bf16.msra.mxu1 %v6349_v59  ;;  %v6766_v58 = vld [vmem:[#allocation3 + $0x4] ss:$28 sps:$4 sm:$0xff]   ;;  %v6767_v59 = vld [vmem:[#allocation3 + $0xc] ss:$28 sps:$4 sm:$0xff]  }
  0xe0   :  { %2304 = vmatprep.subr.bf16.mxu0 %v6354_v60  ;;  %2417 = vmatprep.subr.bf16.mxu1 %v6357_v61  ;;  %v6422_v60 = vld [vmem:[#allocation6 + $0x4e8] ss:$16 sps:$4 sm:$0xff]  }
  0xe1   :  { %2136 = vmatprep.mubr.bf16.mxu0 %v7077_v62  ;;  %2249 = vmatprep.mubr.bf16.mxu1 %v6940_v3  ;;  %v6425_v61 = vld [vmem:[#allocation6 + $0x6e8] ss:$16 sps:$4 sm:$0xff]  }
  0xe3   :  { %2305 = vmatpush1.bf16.msra.mxu0 %v6352_v63  ;;  %2418 = vmatpush1.bf16.msra.mxu1 %v6355_v0  ;;  %v6430_v63 = vld [vmem:[#allocation6 + $0x4cc] ss:$16 sps:$4 sm:$0xff]  }
  0xe4   :  { %2306 = vmatprep.subr.bf16.mxu0 %v6364_v1  ;;  %2419 = vmatprep.subr.bf16.mxu1 %v6367_v2  ;;  %v6436_v0 = vld [vmem:[#allocation6 + $0x6cc] ss:$16 sps:$4 sm:$0xff]   ;;  %v6428_v1 = vld [vmem:[#allocation6 + $0x4c8] ss:$16 sps:$4 sm:$0xff]  }
  0xe5   :  { %v6434_v2 = vld [vmem:[#allocation6 + $0x6c8] ss:$16 sps:$4 sm:$0xff]  }
  0xe6   :  { %2137 = vmatmul.mubr.bf16.gmra.mxu0 %v7083_v4  ;;  %2250 = vmatmul.mubr.bf16.gmra.mxu1 %v7085_v5 }
  0xe7   :  { %2307 = vmatpush2.bf16.msra.mxu0 %v6362_v6  ;;  %2420 = vmatpush2.bf16.msra.mxu1 %v6365_v7  ;;  %v6768_v6 = vld [vmem:[#allocation3] ss:$28 sps:$4 sm:$0xff]   ;;  %v6769_v7 = vld [vmem:[#allocation3 + $0x8] ss:$28 sps:$4 sm:$0xff]  }
  0xe8   :  { %2308 = vmatprep.subr.bf16.mxu0 %v6370_v8  ;;  %2421 = vmatprep.subr.bf16.mxu1 %v6373_v9  ;;  %v6433_v8 = vld [vmem:[#allocation6 + $0x4ac] ss:$16 sps:$4 sm:$0xff]  }
  0xe9   :  { %2146 = vmatprep.mubr.bf16.mxu0 %v7087_v10  ;;  %2259 = vmatprep.mubr.bf16.mxu1 %v6940_v3  ;;  %v6445_v9 = vld [vmem:[#allocation6 + $0x6ac] ss:$16 sps:$4 sm:$0xff]  }
  0xeb   :  { %2309 = vmatpush2.bf16.msra.mxu0 %v6368_v11  ;;  %2422 = vmatpush2.bf16.msra.mxu1 %v6371_v12  ;;  %v6770_v11 = vld [vmem:[#allocation3 + $0x3c] ss:$28 sps:$4 sm:$0xff]   ;;  %v6771_v12 = vld [vmem:[#allocation3 + $0x44] ss:$28 sps:$4 sm:$0xff]  }
  0xec   :  { %2310 = vmatprep.subr.bf16.mxu0 %v6380_v13  ;;  %2423 = vmatprep.subr.bf16.mxu1 %v6383_v14  ;;  %v6431_v13 = vld [vmem:[#allocation6 + $0x4a8] ss:$16 sps:$4 sm:$0xff]   ;;  %v6439_v14 = vld [vmem:[#allocation6 + $0x48c] ss:$16 sps:$4 sm:$0xff]  }
  0xee   :  { %2147 = vmatmul.mubr.bf16.gmra.mxu0 %v7093_v15  ;;  %2260 = vmatmul.mubr.bf16.gmra.mxu1 %v7095_v16 }
  0xef   :  { %2311 = vmatpush2.bf16.msra.mxu0 %v6378_v17  ;;  %2424 = vmatpush2.bf16.msra.mxu1 %v6381_v18  ;;  %v6443_v17 = vld [vmem:[#allocation6 + $0x6a8] ss:$16 sps:$4 sm:$0xff]   ;;  %v6454_v18 = vld [vmem:[#allocation6 + $0x68c] ss:$16 sps:$4 sm:$0xff]  }
  0xf0   :  { %2312 = vmatprep.subr.bf16.mxu0 %v6386_v19  ;;  %2425 = vmatprep.subr.bf16.mxu1 %v6389_v20  ;;  %v6437_v19 = vld [vmem:[#allocation6 + $0x488] ss:$16 sps:$4 sm:$0xff]  }
  0xf1   :  { %2156 = vmatprep.mubr.bf16.mxu0 %v7097_v21  ;;  %2269 = vmatprep.mubr.bf16.mxu1 %v6940_v3  ;;  %v6772_v20 = vld [vmem:[#allocation3 + $0x38] ss:$28 sps:$4 sm:$0xff]  }
  0xf3   :  { %2313 = vmatpush2.bf16.msra.mxu0 %v6384_v22  ;;  %2426 = vmatpush2.bf16.msra.mxu1 %v6387_v25  ;;  %v6773_v22 = vld [vmem:[#allocation3 + $0x40] ss:$28 sps:$4 sm:$0xff]  }
  0xf4   :  { %2314 = vmatprep.subr.bf16.mxu0 %v6396_v26  ;;  %2427 = vmatprep.subr.bf16.mxu1 %v6399_v27  ;;  %v6442_v25 = vld [vmem:[#allocation6 + $0x46c] ss:$16 sps:$4 sm:$0xff]   ;;  %v6774_v26 = vld [vmem:[#allocation3 + $0x74] ss:$28 sps:$4 sm:$0xff]   ;;  %v6452_v27 = vld [vmem:[#allocation6 + $0x688] ss:$16 sps:$4 sm:$0xff]  }
  0xf6   :  { %2157 = vmatmul.mubr.bf16.gmra.mxu0 %v7103_v28  ;;  %2270 = vmatmul.mubr.bf16.gmra.mxu1 %v7105_v30 }
  0xf7   :  { %2315 = vmatpush2.bf16.msra.mxu0 %v6394_v31  ;;  %2428 = vmatpush2.bf16.msra.mxu1 %v6397_v32  ;;  %v6775_v31 = vld [vmem:[#allocation3 + $0x7c] ss:$28 sps:$4 sm:$0xff]  }
  0xf8   :  { %2316 = vmatprep.subr.bf16.mxu0 %v6402_v33  ;;  %2429 = vmatprep.subr.bf16.mxu1 %v6405_v36  ;;  %v6440_v32 = vld [vmem:[#allocation6 + $0x468] ss:$16 sps:$4 sm:$0xff]   ;;  %v6448_v33 = vld [vmem:[#allocation6 + $0x44c] ss:$16 sps:$4 sm:$0xff]  }
  0xf9   :  { %2166 = vmatprep.mubr.bf16.mxu0 %v7107_v37  ;;  %2279 = vmatprep.mubr.bf16.mxu1 %v6940_v3  ;;  %v6463_v36 = vld [vmem:[#allocation6 + $0x66c] ss:$16 sps:$4 sm:$0xff]  }
  0xfb   :  { %2317 = vmatpush2.bf16.msra.mxu0 %v6400_v38  ;;  %2430 = vmatpush2.bf16.msra.mxu1 %v6403_v39  ;;  %v6461_v38 = vld [vmem:[#allocation6 + $0x668] ss:$16 sps:$4 sm:$0xff]  }
  0xfc   :  { %2318 = vmatprep.subr.bf16.mxu0 %v6412_v41  ;;  %2431 = vmatprep.subr.bf16.mxu1 %v6415_v42  ;;  %v6446_v39 = vld [vmem:[#allocation6 + $0x448] ss:$16 sps:$4 sm:$0xff]   ;;  %v6472_v41 = vld [vmem:[#allocation6 + $0x64c] ss:$16 sps:$4 sm:$0xff]  }
  0xfd   :  { %v6776_v42 = vld [vmem:[#allocation3 + $0x70] ss:$28 sps:$4 sm:$0xff]  }
  0xfe   :  { %2167 = vmatmul.mubr.bf16.gmra.mxu0 %v7113_v44  ;;  %2280 = vmatmul.mubr.bf16.gmra.mxu1 %v7115_v45 }
  0xff   :  { %2319 = vmatpush2.bf16.msra.mxu0 %v6410_v47  ;;  %2432 = vmatpush2.bf16.msra.mxu1 %v6413_v48  ;;  %v6777_v47 = vld [vmem:[#allocation3 + $0x78] ss:$28 sps:$4 sm:$0xff]   ;;  %v6451_v48 = vld [vmem:[#allocation6 + $0x42c] ss:$16 sps:$4 sm:$0xff]  }
 0x100   :  { %2320 = vmatprep.subr.bf16.mxu0 %v6418_v49  ;;  %2433 = vmatprep.subr.bf16.mxu1 %v6421_v50  ;;  %v6778_v49 = vld [vmem:[#allocation3 + $0xac] ss:$28 sps:$4 sm:$0xff]   ;;  %v6779_v50 = vld [vmem:[#allocation3 + $0xb4] ss:$28 sps:$4 sm:$0xff]  }
 0x101   :  { %2322 = vmatprep.mubr.bf16.mxu0 %v6766_v58  ;;  %2435 = vmatprep.mubr.bf16.mxu1 %v6767_v59  ;;  %v6455_v58 = vld [vmem:[#allocation6 + $0x408] ss:$16 sps:$4 sm:$0xff]  }
 0x102   :  { %v6780_v59 = vld [vmem:[#allocation3 + $0xa8] ss:$28 sps:$4 sm:$0xff]  }
 0x103   :  { %2321 = vmatpush2.bf16.msra.mxu0 %v6416_v52  ;;  %2434 = vmatpush2.bf16.msra.mxu1 %v6419_v53  ;;  %v6449_v52 = vld [vmem:[#allocation6 + $0x428] ss:$16 sps:$4 sm:$0xff]   ;;  %v6457_v53 = vld [vmem:[#allocation6 + $0x40c] ss:$16 sps:$4 sm:$0xff]  }
 0x104   :  { %2516 = vmatprep.subr.bf16.mxu0 %v6424_v55  ;;  %2629 = vmatprep.subr.bf16.mxu1 %v6427_v56  ;;  %v6470_v55 = vld [vmem:[#allocation6 + $0x648] ss:$16 sps:$4 sm:$0xff]   ;;  %v6481_v56 = vld [vmem:[#allocation6 + $0x62c] ss:$16 sps:$4 sm:$0xff]  }
 0x106   :  { %2323 = vmatmul.mubr.bf16.vlgmr.msra.gmra.mxu0 %v6768_v6  ;;  %2436 = vmatmul.mubr.bf16.vlgmr.msra.gmra.mxu1 %v6769_v7  ;;  %v6466_v6 = vld [vmem:[#allocation6 + $0x5cc] ss:$16 sps:$4 sm:$0xff]  }
 0x107   :  { %2517 = vmatpush1.bf16.msra.mxu0 %v6422_v60  ;;  %2630 = vmatpush1.bf16.msra.mxu1 %v6425_v61  ;;  %v6781_v60 = vld [vmem:[#allocation3 + $0xb0] ss:$28 sps:$4 sm:$0xff]   ;;  %v6782_v61 = vld [vmem:[#allocation3 + $0xe4] ss:$28 sps:$4 sm:$0xff]  }
 0x108   :  { %2518 = vmatprep.subr.bf16.mxu0 %v6430_v63  ;;  %2332 = vmatprep.mubr.bf16.mxu0 %v6770_v11  ;;  %v6783_v63 = vld [vmem:[#allocation3 + $0xec] ss:$28 sps:$4 sm:$0xff]  }
 0x109   :  { %2445 = vmatprep.mubr.bf16.mxu1 %v6771_v12  ;;  %2631 = vmatprep.subr.bf16.mxu1 %v6436_v0  ;;  %v6460_v0 = vld [vmem:[#allocation6 + $0x5ec] ss:$16 sps:$4 sm:$0xff]   ;;  %v6488_v11 = vld [vmem:[#allocation6 + $0x608] ss:$16 sps:$4 sm:$0xff]  }
 0x10a   :  { %v6490_v7 = vld [vmem:[#allocation6 + $0x60c] ss:$16 sps:$4 sm:$0xff]   ;;  %v6464_v12 = vld [vmem:[#allocation6 + $0x5c8] ss:$16 sps:$4 sm:$0xff]  }
 0x10b   :  { %2519 = vmatpush1.bf16.msra.mxu0 %v6428_v1  ;;  %2632 = vmatpush1.bf16.msra.mxu1 %v6434_v2  ;;  %v6479_v1 = vld [vmem:[#allocation6 + $0x628] ss:$16 sps:$4 sm:$0xff]  }
 0x10c   :  { %2520 = vmatprep.subr.bf16.mxu0 %v6433_v8  ;;  %2633 = vmatprep.subr.bf16.mxu1 %v6445_v9  ;;  %v6458_v2 = vld [vmem:[#allocation6 + $0x5e8] ss:$16 sps:$4 sm:$0xff]   ;;  %v6784_v8 = vld [vmem:[#allocation3 + $0xe0] ss:$28 sps:$4 sm:$0xff]  }
 0x10d   :  { %v6785_v9 = vld [vmem:[#allocation3 + $0xe8] ss:$28 sps:$4 sm:$0xff]  }
 0x10e   :  { %2333 = vmatmul.mubr.bf16.gmra.mxu0 %v6772_v20  ;;  %2446 = vmatmul.mubr.bf16.gmra.mxu1 %v6773_v22  ;;  %v6788_v20 = vld [vmem:[#allocation3 + $0x118] ss:$28 sps:$4 sm:$0xff]   ;;  %v6789_v22 = vld [vmem:[#allocation3 + $0x120] ss:$28 sps:$4 sm:$0xff]  }
 0x10f   :  { %2521 = vmatpush1.bf16.msra.mxu0 %v6431_v13  ;;  %2342 = vmatprep.mubr.bf16.mxu0 %v6774_v26  ;;  %v6786_v13 = vld [vmem:[#allocation3 + $0x11c] ss:$28 sps:$4 sm:$0xff]   ;;  %v6790_v26 = vld [vmem:[#allocation3 + $0x154] ss:$28 sps:$4 sm:$0xff]  }
 0x110   :  { %2522 = vmatprep.subr.bf16.mxu0 %v6439_v14  ;;  %2455 = vmatprep.mubr.bf16.mxu1 %v6775_v31  ;;  %v6787_v14 = vld [vmem:[#allocation3 + $0x124] ss:$28 sps:$4 sm:$0xff]   ;;  %v6478_v31 = vld [vmem:[#allocation6 + $0x56c] ss:$16 sps:$4 sm:$0xff]  }
 0x111   :  { %2634 = vmatpush1.bf16.msra.mxu1 %v6443_v17  ;;  %v6469_v17 = vld [vmem:[#allocation6 + $0x5ac] ss:$16 sps:$4 sm:$0xff]  }
 0x112   :  { %2635 = vmatprep.subr.bf16.mxu1 %v6454_v18  ;;  %v6467_v18 = vld [vmem:[#allocation6 + $0x5a8] ss:$16 sps:$4 sm:$0xff]  }
 0x113   :  { %2523 = vmatpush1.bf16.msra.mxu0 %v6437_v19  ;;  %v6475_v19 = vld [vmem:[#allocation6 + $0x58c] ss:$16 sps:$4 sm:$0xff]  }
 0x114   :  { %2524 = vmatprep.subr.bf16.mxu0 %v6442_v25  ;;  %v6473_v25 = vld [vmem:[#allocation6 + $0x588] ss:$16 sps:$4 sm:$0xff]  }
 0x115   :  { %2636 = vmatpush1.bf16.msra.mxu1 %v6452_v27  ;;  %v6791_v27 = vld [vmem:[#allocation3 + $0x15c] ss:$28 sps:$4 sm:$0xff]  }
 0x116   :  { %2343 = vmatmul.mubr.bf16.gmra.mxu0 %v6776_v42  ;;  %2456 = vmatmul.mubr.bf16.gmra.mxu1 %v6777_v47  ;;  %v9544_v42 = vlaneseq  ;;  %v6795_v47 = vld [vmem:[#allocation3 + $0x194] ss:$28 sps:$4 sm:$0xff]  }
 0x117   :  { %2525 = vmatpush1.bf16.msra.mxu0 %v6440_v32  ;;  %2352 = vmatprep.mubr.bf16.mxu0 %v6778_v49  ;;  %v6476_v32 = vld [vmem:[#allocation6 + $0x568] ss:$16 sps:$4 sm:$0xff]  }
 0x118   :  { %2526 = vmatprep.subr.bf16.mxu0 %v6448_v33  ;;  %2465 = vmatprep.mubr.bf16.mxu1 %v6779_v50  ;;  %v6484_v33 = vld [vmem:[#allocation6 + $0x54c] ss:$16 sps:$4 sm:$0xff]   ;;  %v6485_v49 = vld [vmem:[#allocation6 + $0x528] ss:$16 sps:$4 sm:$0xff]   ;;  %v7120_v50 = vshrl.u32 %v9544_v42, 7 }
 0x119   :  { %2637 = vmatprep.subr.bf16.mxu1 %v6463_v36  ;;  %v6792_v36 = vld [vmem:[#allocation3 + $0x150] ss:$28 sps:$4 sm:$0xff]  }
 0x11a   :  { %2638 = vmatpush1.bf16.msra.mxu1 %v6461_v38  ;;  %v6793_v38 = vld [vmem:[#allocation3 + $0x158] ss:$28 sps:$4 sm:$0xff]   ;;  %9629 = vst [vmem:[#allocation17_spill] sm:$0xff] %v7120_v50 }
 0x11b   :  { %2527 = vmatpush1.bf16.msra.mxu0 %v6446_v39  ;;  %2639 = vmatprep.subr.bf16.mxu1 %v6472_v41  ;;  %v6482_v39 = vld [vmem:[#allocation6 + $0x548] ss:$16 sps:$4 sm:$0xff]  }
 0x11c   :  { %2528 = vmatprep.subr.bf16.mxu0 %v6451_v48  ;;  %v6794_v41 = vld [vmem:[#allocation3 + $0x18c] ss:$28 sps:$4 sm:$0xff]  }
 0x11d   :  { %v6487_v48 = vld [vmem:[#allocation6 + $0x52c] ss:$16 sps:$4 sm:$0xff]  }
 0x11e   :  { %2353 = vmatmul.mubr.bf16.gmra.mxu0 %v6780_v59  ;;  %2466 = vmatmul.mubr.bf16.gmra.mxu1 %v6781_v60  ;;  %v7123_v59 = vsub.s32 0, %v7120_v50  ;;  %v7129_v60 = vld [vmem:[%s9530_s2] sm:$0xf] }
 0x11f   :  { %2529 = vmatpush1.bf16.msra.mxu0 %v6449_v52  ;;  %2362 = vmatprep.mubr.bf16.mxu0 %v6782_v61  ;;  %v6493_v52 = vld [vmem:[#allocation6 + $0x50c] ss:$16 sps:$4 sm:$0xff]   ;;  %v7132_v61 = vsub.s32 1, %v7120_v50 }
 0x120   :  { %2530 = vmatprep.subr.bf16.mxu0 %v6457_v53  ;;  %2475 = vmatprep.mubr.bf16.mxu1 %v6783_v63  ;;  %v6796_v53 = vld [vmem:[#allocation3 + $0x188] ss:$28 sps:$4 sm:$0xff]   ;;  %9630 = vst [vmem:[#allocation18_spill] sm:$0xff] %v7123_v59  ;;  %v7136_v63 = vrot.slane %v7129_v60, %v7123_v59 }
 0x121   :  { %2640 = vmatpush1.bf16.msra.mxu1 %v6470_v55  ;;  %v6797_v55 = vld [vmem:[#allocation3 + $0x190] ss:$28 sps:$4 sm:$0xff]   ;;  %9631 = vst [vmem:[#allocation19_spill] sm:$0xff] %v7132_v61 }
 0x122   :  { %2641 = vmatprep.subr.bf16.mxu1 %v6481_v56  ;;  %v6491_v56 = vld [vmem:[#allocation6 + $0x508] ss:$16 sps:$4 sm:$0xff]  }
 0x123   :  { %2531 = vmatpush1.bf16.msra.mxu0 %v6455_v58  ;;  %v6798_v58 = vld [vmem:[#allocation3 + $0x14] ss:$28 sps:$4 sm:$0xff]  }
 0x124   :  { %2532 = vmatprep.subr.bf16.mxu0 %v6460_v0  ;;  %v7140_v0 = vrot.slane %v7129_v60, %v7132_v61 }
 0x125   :  { %2642 = vmatpush1.bf16.msra.mxu1 %v6479_v1 }
 0x126   :  { %2363 = vmatmul.mubr.bf16.gmra.mxu0 %v6784_v8  ;;  %2476 = vmatmul.mubr.bf16.gmra.mxu1 %v6785_v9 }
 0x127   :  { %2533 = vmatpush2.bf16.msra.mxu0 %v6458_v2  ;;  %2372 = vmatprep.mubr.bf16.mxu0 %v6786_v13 }
 0x128   :  { %2534 = vmatprep.subr.bf16.mxu0 %v6466_v6  ;;  %2485 = vmatprep.mubr.bf16.mxu1 %v6787_v14 }
 0x129   :  { %2643 = vmatprep.subr.bf16.mxu1 %v6490_v7 }
 0x12a   :  { %2644 = vmatpush1.bf16.msra.mxu1 %v6488_v11 }
 0x12b   :  { %2535 = vmatpush2.bf16.msra.mxu0 %v6464_v12 }
 0x12c   :  { %2536 = vmatprep.subr.bf16.mxu0 %v6469_v17 }
 0x12e   :  { %2373 = vmatmul.mubr.bf16.gmra.mxu0 %v6788_v20  ;;  %2486 = vmatmul.mubr.bf16.gmra.mxu1 %v6789_v22 }
 0x12f   :  { %2537 = vmatpush2.bf16.msra.mxu0 %v6467_v18  ;;  %2382 = vmatprep.mubr.bf16.mxu0 %v6790_v26 }
 0x130   :  { %2538 = vmatprep.subr.bf16.mxu0 %v6475_v19  ;;  %2495 = vmatprep.mubr.bf16.mxu1 %v6791_v27 }
 0x133   :  { %2539 = vmatpush2.bf16.msra.mxu0 %v6473_v25 }
 0x134   :  { %2540 = vmatprep.subr.bf16.mxu0 %v6478_v31 }
 0x136   :  { %2383 = vmatmul.mubr.bf16.gmra.mxu0 %v6792_v36  ;;  %2496 = vmatmul.mubr.bf16.gmra.mxu1 %v6793_v38 }
 0x137   :  { %2541 = vmatpush2.bf16.msra.mxu0 %v6476_v32  ;;  %2392 = vmatprep.mubr.bf16.mxu0 %v6794_v41 }
 0x138   :  { %2542 = vmatprep.subr.bf16.mxu0 %v6484_v33  ;;  %2505 = vmatprep.mubr.bf16.mxu1 %v6795_v47 }
 0x13b   :  { %2543 = vmatpush2.bf16.msra.mxu0 %v6482_v39 }
 0x13c   :  { %2544 = vmatprep.subr.bf16.mxu0 %v6487_v48 }
 0x13e   :  { %2393 = vmatmul.mubr.bf16.gmra.mxu0 %v6796_v53  ;;  %2506 = vmatmul.mubr.bf16.gmra.mxu1 %v6797_v55 }
 0x13f   :  { %2545 = vmatpush2.bf16.msra.mxu0 %v6485_v49  ;;  %2548 = vmatprep.mubr.bf16.mxu0 %v6798_v58 }
 0x140   :  { %2546 = vmatprep.subr.bf16.mxu0 %v6493_v52  ;;  %2661 = vmatprep.mubr.bf16.mxu1 %v6940_v3 }
 0x143   :  { %2547 = vmatpush2.bf16.msra.mxu0 %v6491_v56 }
 0x146   :  { %v1872_v1 = vpop.f32.mrf.mxu0  ;;  %v1985_v2 = vpop.f32.mrf.mxu1  ;;  %2549 = vmatmul.mubr.bf16.vlgmr.msra.gmra.mxu0 %v7043_v23  ;;  %2662 = vmatmul.mubr.bf16.vlgmr.msra.gmra.mxu1 %v7045_v24 }
 0x147   :  { %v1873_v6 = vadd.f32 %v1872_v1, %v7136_v63  ;;  %2558 = vmatprep.mubr.bf16.mxu0 %v7047_v29  ;;  %2671 = vmatprep.mubr.bf16.mxu1 %v6940_v3 }
 0x148   :  { %v1874_v7 = vpop.f32.mrf.mxu0  ;;  %v1987_v8 = vpop.f32.mrf.mxu1 }
 0x149   :  { %v7147_v9 = vadd.f32 %v1985_v2, %v1873_v6  ;;  %v1875_v11 = vadd.f32 %v1874_v7, %v7140_v0 }
 0x14a   :  { %v1876_v12 = vpop.f32.mrf.mxu0  ;;  %v1989_v13 = vpop.f32.mrf.mxu1 }
 0x14b   :  { %v7150_v14 = vadd.f32 %v1987_v8, %v1875_v11  ;;  %v1877_v23 = vadd.f32 %v1876_v12, %v7136_v63 }
 0x14c   :  { %v1878_v17 = vpop.f32.mrf.mxu0  ;;  %v1991_v24 = vpop.f32.mrf.mxu1 }
 0x14d   :  { %v7153_v18 = vadd.f32 %v1989_v13, %v1877_v23  ;;  %v1879_v29 = vadd.f32 %v1878_v17, %v7140_v0 }
 0x14e   :  { %v1882_v19 = vpop.f32.mrf.mxu0  ;;  %v1995_v20 = vpop.f32.mrf.mxu1  ;;  %2559 = vmatmul.mubr.bf16.gmra.mxu0 %v7053_v34  ;;  %2672 = vmatmul.mubr.bf16.gmra.mxu1 %v7055_v35 }
 0x14f   :  { %v7158_v22 = vadd.f32 %v1991_v24, %v1879_v29  ;;  %v1883_v25 = vadd.f32 %v1882_v19, %v7136_v63  ;;  %2568 = vmatprep.mubr.bf16.mxu0 %v7057_v40  ;;  %2681 = vmatprep.mubr.bf16.mxu1 %v6940_v3 }
 0x150   :  { %v1884_v26 = vpop.f32.mrf.mxu0  ;;  %v1997_v27 = vpop.f32.mrf.mxu1 }
 0x151   :  { %v7163_v31 = vadd.f32 %v1995_v20, %v1883_v25  ;;  %v1885_v32 = vadd.f32 %v1884_v26, %v7140_v0 }
 0x152   :  { %v1886_v33 = vpop.f32.mrf.mxu0  ;;  %v1999_v36 = vpop.f32.mrf.mxu1 }
 0x153   :  { %v7166_v38 = vadd.f32 %v1997_v27, %v1885_v32  ;;  %v1887_v34 = vadd.f32 %v1886_v33, %v7136_v63 }
 0x154   :  { %v1888_v35 = vpop.f32.mrf.mxu0  ;;  %v2001_v39 = vpop.f32.mrf.mxu1 }
 0x155   :  { %v7169_v41 = vadd.f32 %v1999_v36, %v1887_v34  ;;  %v1889_v40 = vadd.f32 %v1888_v35, %v7140_v0 }
 0x156   :  { %v1892_v47 = vpop.f32.mrf.mxu0  ;;  %v2005_v48 = vpop.f32.mrf.mxu1  ;;  %2569 = vmatmul.mubr.bf16.gmra.mxu0 %v7061_v43  ;;  %2682 = vmatmul.mubr.bf16.gmra.mxu1 %v7065_v46 }
 0x157   :  { %v7174_v49 = vadd.f32 %v2001_v39, %v1889_v40  ;;  %v1893_v52 = vadd.f32 %v1892_v47, %v7136_v63  ;;  %2578 = vmatprep.mubr.bf16.mxu0 %v7067_v51  ;;  %2691 = vmatprep.mubr.bf16.mxu1 %v6940_v3 }
 0x158   :  { %v1894_v53 = vpop.f32.mrf.mxu0  ;;  %v2007_v55 = vpop.f32.mrf.mxu1 }
 0x159   :  { %v7179_v56 = vadd.f32 %v2005_v48, %v1893_v52  ;;  %v1895_v58 = vadd.f32 %v1894_v53, %v7140_v0 }
 0x15a   :  { %v1896_v1 = vpop.f32.mrf.mxu0  ;;  %v2009_v2 = vpop.f32.mrf.mxu1 }
 0x15b   :  { %v7182_v6 = vadd.f32 %v2007_v55, %v1895_v58  ;;  %v1897_v43 = vadd.f32 %v1896_v1, %v7136_v63 }
 0x15c   :  { %v1898_v46 = vpop.f32.mrf.mxu0  ;;  %v2011_v7 = vpop.f32.mrf.mxu1 }
 0x15d   :  { %v7185_v8 = vadd.f32 %v2009_v2, %v1897_v43  ;;  %v1899_v51 = vadd.f32 %v1898_v46, %v7140_v0 }
 0x15e   :  { %v1902_v11 = vpop.f32.mrf.mxu0  ;;  %v2015_v12 = vpop.f32.mrf.mxu1  ;;  %2579 = vmatmul.mubr.bf16.gmra.mxu0 %v7071_v54  ;;  %2692 = vmatmul.mubr.bf16.gmra.mxu1 %v7075_v57 }
 0x15f   :  { %v7190_v13 = vadd.f32 %v2011_v7, %v1899_v51  ;;  %v1903_v23 = vadd.f32 %v1902_v11, %v7136_v63  ;;  %2588 = vmatprep.mubr.bf16.mxu0 %v7077_v62  ;;  %2701 = vmatprep.mubr.bf16.mxu1 %v6940_v3 }
 0x160   :  { %v1904_v17 = vpop.f32.mrf.mxu0  ;;  %v2017_v24 = vpop.f32.mrf.mxu1 }
 0x161   :  { %v7195_v29 = vadd.f32 %v2015_v12, %v1903_v23  ;;  %v1905_v19 = vadd.f32 %v1904_v17, %v7140_v0 }
 0x162   :  { %v1906_v20 = vpop.f32.mrf.mxu0  ;;  %v2019_v25 = vpop.f32.mrf.mxu1 }
 0x163   :  { %v7198_v26 = vadd.f32 %v2017_v24, %v1905_v19  ;;  %v1907_v54 = vadd.f32 %v1906_v20, %v7136_v63 }
 0x164   :  { %v1908_v57 = vpop.f32.mrf.mxu0  ;;  %v2021_v27 = vpop.f32.mrf.mxu1 }
 0x165   :  { %v7201_v32 = vadd.f32 %v2019_v25, %v1907_v54  ;;  %v1909_v62 = vadd.f32 %v1908_v57, %v7140_v0 }
 0x166   :  { %v1912_v33 = vpop.f32.mrf.mxu0  ;;  %v2025_v36 = vpop.f32.mrf.mxu1  ;;  %2589 = vmatmul.mubr.bf16.gmra.mxu0 %v7083_v4  ;;  %2702 = vmatmul.mubr.bf16.gmra.mxu1 %v7085_v5 }
 0x167   :  { %v7206_v34 = vadd.f32 %v2021_v27, %v1909_v62  ;;  %v1913_v35 = vadd.f32 %v1912_v33, %v7136_v63  ;;  %2598 = vmatprep.mubr.bf16.mxu0 %v7087_v10  ;;  %2711 = vmatprep.mubr.bf16.mxu1 %v6940_v3 }
 0x168   :  { %v1914_v39 = vpop.f32.mrf.mxu0  ;;  %v2027_v40 = vpop.f32.mrf.mxu1 }
 0x169   :  { %v7211_v47 = vadd.f32 %v2025_v36, %v1913_v35  ;;  %v1915_v48 = vadd.f32 %v1914_v39, %v7140_v0 }
 0x16a   :  { %v1916_v52 = vpop.f32.mrf.mxu0  ;;  %v2029_v53 = vpop.f32.mrf.mxu1 }
 0x16b   :  { %v7214_v55 = vadd.f32 %v2027_v40, %v1915_v48  ;;  %v1917_v4 = vadd.f32 %v1916_v52, %v7136_v63 }
 0x16c   :  { %v7217_v5 = vpop.f32.mrf.mxu0  ;;  %v7219_v58 = vpop.f32.mrf.mxu1 }
 0x16d   :  { %v7221_v1 = vadd.f32 %v2029_v53, %v1917_v4 }
 0x16e   :  { %v1922_v10 = vpop.f32.mrf.mxu0  ;;  %v2035_v2 = vpop.f32.mrf.mxu1  ;;  %2599 = vmatmul.mubr.bf16.gmra.mxu0 %v7093_v15  ;;  %2712 = vmatmul.mubr.bf16.gmra.mxu1 %v7095_v16 }
 0x16f   :  { %v1923_v43 = vadd.f32 %v1922_v10, %v7136_v63  ;;  %2608 = vmatprep.mubr.bf16.mxu0 %v7097_v21  ;;  %2721 = vmatprep.mubr.bf16.mxu1 %v6940_v3 }
 0x170   :  { %v1924_v46 = vpop.f32.mrf.mxu0  ;;  %v2037_v7 = vpop.f32.mrf.mxu1 }
 0x171   :  { %v7228_v51 = vadd.f32 %v2035_v2, %v1923_v43  ;;  %v1925_v11 = vadd.f32 %v1924_v46, %v7140_v0 }
 0x172   :  { %v1926_v12 = vpop.f32.mrf.mxu0  ;;  %v2039_v23 = vpop.f32.mrf.mxu1 }
 0x173   :  { %v7231_v17 = vadd.f32 %v2037_v7, %v1925_v11  ;;  %v1927_v15 = vadd.f32 %v1926_v12, %v7136_v63 }
 0x174   :  { %v7234_v24 = vpop.f32.mrf.mxu0  ;;  %v7236_v16 = vpop.f32.mrf.mxu1 }
 0x175   :  { %v7238_v19 = vadd.f32 %v2039_v23, %v1927_v15 }
 0x176   :  { %v1932_v21 = vpop.f32.mrf.mxu0  ;;  %v2045_v20 = vpop.f32.mrf.mxu1  ;;  %2609 = vmatmul.mubr.bf16.gmra.mxu0 %v7103_v28  ;;  %2722 = vmatmul.mubr.bf16.gmra.mxu1 %v7105_v30 }
 0x177   :  { %v1933_v25 = vadd.f32 %v1932_v21, %v7136_v63  ;;  %2618 = vmatprep.mubr.bf16.mxu0 %v7107_v37  ;;  %2731 = vmatprep.mubr.bf16.mxu1 %v6940_v3 }
 0x178   :  { %v1934_v54 = vpop.f32.mrf.mxu0  ;;  %v2047_v57 = vpop.f32.mrf.mxu1 }
 0x179   :  { %v7245_v27 = vadd.f32 %v2045_v20, %v1933_v25  ;;  %v1935_v62 = vadd.f32 %v1934_v54, %v7140_v0 }
 0x17a   :  { %v1936_v33 = vpop.f32.mrf.mxu0  ;;  %v2049_v36 = vpop.f32.mrf.mxu1 }
 0x17b   :  { %v7248_v35 = vadd.f32 %v2047_v57, %v1935_v62  ;;  %v1937_v28 = vadd.f32 %v1936_v33, %v7136_v63 }
 0x17c   :  { %v7251_v39 = vpop.f32.mrf.mxu0  ;;  %v7253_v30 = vpop.f32.mrf.mxu1 }
 0x17d   :  { %v7255_v40 = vadd.f32 %v2049_v36, %v1937_v28 }
 0x17e   :  { %v1942_v37 = vpop.f32.mrf.mxu0  ;;  %v2055_v3 = vpop.f32.mrf.mxu1  ;;  %2619 = vmatmul.mubr.bf16.gmra.mxu0 %v7113_v44  ;;  %2732 = vmatmul.mubr.bf16.gmra.mxu1 %v7115_v45 }
 0x17f   :  { %v1943_v48 = vadd.f32 %v1942_v37, %v7136_v63 }
 0x180   :  { %v1944_v52 = vpop.f32.mrf.mxu0  ;;  %v2057_v53 = vpop.f32.mrf.mxu1 }
 0x181   :  { %v7260_v4 = vadd.f32 %v2055_v3, %v1943_v48  ;;  %v1945_v10 = vadd.f32 %v1944_v52, %v7140_v0 }
 0x182   :  { %v1946_v2 = vpop.f32.mrf.mxu0  ;;  %v2059_v43 = vpop.f32.mrf.mxu1 }
 0x183   :  { %v7263_v46 = vadd.f32 %v2057_v53, %v1945_v10  ;;  %v1947_v7 = vadd.f32 %v1946_v2, %v7136_v63 }
 0x184   :  { %v7266_v11 = vpop.f32.mrf.mxu0  ;;  %v7268_v12 = vpop.f32.mrf.mxu1 }
 0x185   :  { %v7270_v44 = vadd.f32 %v2059_v43, %v1947_v7 }
 0x186   :  { %v2098_v45 = vpop.f32.mrf.mxu0  ;;  %v2211_v23 = vpop.f32.mrf.mxu1 }
 0x187   :  { %v2099_v15 = vadd.f32 %v2098_v45, %v7147_v9 }
 0x188   :  { %v2100_v21 = vpop.f32.mrf.mxu0  ;;  %v2213_v20 = vpop.f32.mrf.mxu1 }
 0x189   :  { %v7273_v25 = vadd.f32 %v2211_v23, %v2099_v15  ;;  %v2101_v54 = vadd.f32 %v2100_v21, %v7150_v14 }
 0x18a   :  { %v2102_v57 = vpop.f32.mrf.mxu0  ;;  %v2215_v62 = vpop.f32.mrf.mxu1 }
 0x18b   :  { %v7276_v33 = vadd.f32 %v2213_v20, %v2101_v54  ;;  %v2103_v63 = vadd.f32 %v2102_v57, %v7153_v18  ;;  %vm2742_vm0 = vcmp.gt.f32.partialorder %v7273_v25, 0.0 }
 0x18c   :  { %v7279_v36 = vpop.f32.mrf.mxu0  ;;  %v7281_v28 = vpop.f32.mrf.mxu1 }
 0x18d   :  { %v7283_v37 = vadd.f32 %v2215_v62, %v2103_v63  ;;  %vm2743_vm1 = vcmp.gt.f32.partialorder %v7276_v33, 0.0 }
 0x18e   :  { %v2108_v3 = vpop.f32.mrf.mxu0  ;;  %v2221_v9 = vpop.f32.mrf.mxu1 }
 0x18f   :  { %v2109_v48 = vadd.f32 %v2108_v3, %v7163_v31  ;;  %vm2746_vm2 = vcmp.gt.f32.partialorder %v7283_v37, 0.0 }
 0x190   :  { %v2110_v52 = vpop.f32.mrf.mxu0  ;;  %v2223_v53 = vpop.f32.mrf.mxu1 }
 0x191   :  { %v7286_v10 = vadd.f32 %v2221_v9, %v2109_v48  ;;  %v2111_v14 = vadd.f32 %v2110_v52, %v7166_v38 }
 0x192   :  { %v2112_v2 = vpop.f32.mrf.mxu0  ;;  %v2225_v43 = vpop.f32.mrf.mxu1 }
 0x193   :  { %v7289_v7 = vadd.f32 %v2223_v53, %v2111_v14  ;;  %v2113_v18 = vadd.f32 %v2112_v2, %v7169_v41  ;;  %vm2750_vm4 = vcmp.gt.f32.partialorder %v7286_v10, 0.0 }
 0x194   :  { %v7292_v45 = vpop.f32.mrf.mxu0  ;;  %v7294_v23 = vpop.f32.mrf.mxu1 }
 0x195   :  { %v7296_v15 = vadd.f32 %v2225_v43, %v2113_v18  ;;  %vm2751_vm5 = vcmp.gt.f32.partialorder %v7289_v7, 0.0 }
 0x196   :  { %v2118_v21 = vpop.f32.mrf.mxu0  ;;  %v2231_v31 = vpop.f32.mrf.mxu1 }
 0x197   :  { %v2119_v20 = vadd.f32 %v2118_v21, %v7179_v56  ;;  %vm2754_vm7 = vcmp.gt.f32.partialorder %v7296_v15, 0.0 }
 0x198   :  { %v2120_v54 = vpop.f32.mrf.mxu0  ;;  %v2233_v57 = vpop.f32.mrf.mxu1 }
 0x199   :  { %v7299_v62 = vadd.f32 %v2231_v31, %v2119_v20  ;;  %v2121_v38 = vadd.f32 %v2120_v54, %v7182_v6 }
 0x19a   :  { %v2122_v63 = vpop.f32.mrf.mxu0  ;;  %v2235_v3 = vpop.f32.mrf.mxu1 }
 0x19b   :  { %v7302_v9 = vadd.f32 %v2233_v57, %v2121_v38  ;;  %v2123_v41 = vadd.f32 %v2122_v63, %v7185_v8  ;;  %vm2758_vm8 = vcmp.gt.f32.partialorder %v7299_v62, 0.0 }
 0x19c   :  { %v7305_v48 = vpop.f32.mrf.mxu0  ;;  %v7307_v52 = vpop.f32.mrf.mxu1 }
 0x19d   :  { %v7309_v53 = vadd.f32 %v2235_v3, %v2123_v41  ;;  %vm2759_vm9 = vcmp.gt.f32.partialorder %v7302_v9, 0.0 }
 0x19e   :  { %v2128_v14 = vpop.f32.mrf.mxu0  ;;  %v2241_v56 = vpop.f32.mrf.mxu1 }
 0x19f   :  { %v2129_v2 = vadd.f32 %v2128_v14, %v7195_v29  ;;  %vm2762_vm11 = vcmp.gt.f32.partialorder %v7309_v53, 0.0 }
 0x1a0   :  { %v2130_v43 = vpop.f32.mrf.mxu0  ;;  %v2243_v18 = vpop.f32.mrf.mxu1 }
 0x1a1   :  { %v7312_v21 = vadd.f32 %v2241_v56, %v2129_v2  ;;  %v2131_v6 = vadd.f32 %v2130_v43, %v7198_v26 }
 0x1a2   :  { %v2132_v31 = vpop.f32.mrf.mxu0  ;;  %v2245_v20 = vpop.f32.mrf.mxu1 }
 0x1a3   :  { %v7315_v54 = vadd.f32 %v2243_v18, %v2131_v6  ;;  %v2133_v8 = vadd.f32 %v2132_v31, %v7201_v32  ;;  %vm2766_vm12 = vcmp.gt.f32.partialorder %v7312_v21, 0.0 }
 0x1a4   :  { %v7318_v57 = vpop.f32.mrf.mxu0  ;;  %v7320_v38 = vpop.f32.mrf.mxu1 }
 0x1a5   :  { %v7322_v63 = vadd.f32 %v2245_v20, %v2133_v8  ;;  %vm2767_vm13 = vcmp.gt.f32.partialorder %v7315_v54, 0.0 }
 0x1a6   :  { %v2138_v3 = vpop.f32.mrf.mxu0  ;;  %v2251_v29 = vpop.f32.mrf.mxu1 }
 0x1a7   :  { %v2139_v41 = vadd.f32 %v2138_v3, %v7211_v47  ;;  %vm2770_vm14 = vcmp.gt.f32.partialorder %v7322_v63, 0.0 }
 0x1a8   :  { %v2140_v14 = vpop.f32.mrf.mxu0  ;;  %v2253_v56 = vpop.f32.mrf.mxu1 }
 0x1a9   :  { %v7325_v2 = vadd.f32 %v2251_v29, %v2139_v41  ;;  %v2141_v26 = vadd.f32 %v2140_v14, %v7214_v55 }
 0x1aa   :  { %v2142_v43 = vpop.f32.mrf.mxu0  ;;  %v2255_v18 = vpop.f32.mrf.mxu1 }
 0x1ab   :  { %v7328_v6 = vadd.f32 %v2253_v56, %v2141_v26  ;;  %v2143_v32 = vadd.f32 %v2142_v43, %v7221_v1 }
 0x1ac   :  { %v7331_v31 = vpop.f32.mrf.mxu0  ;;  %v7333_v20 = vpop.f32.mrf.mxu1 }
 0x1ad   :  { %v7335_v8 = vadd.f32 %v2255_v18, %v2143_v32 }
 0x1ae   :  { %v2148_v42 = vpop.f32.mrf.mxu0  ;;  %v2261_v47 = vpop.f32.mrf.mxu1 }
 0x1af   :  { %v2149_v3 = vadd.f32 %v2148_v42, %v7228_v51 }
 0x1b0   :  { %v2150_v29 = vpop.f32.mrf.mxu0  ;;  %v2263_v41 = vpop.f32.mrf.mxu1 }
 0x1b1   :  { %v7338_v61 = vadd.f32 %v2261_v47, %v2149_v3  ;;  %v2151_v55 = vadd.f32 %v2150_v29, %v7231_v17 }
 0x1b2   :  { %v2152_v14 = vpop.f32.mrf.mxu0  ;;  %v2265_v56 = vpop.f32.mrf.mxu1 }
 0x1b3   :  { %9632 = vst [vmem:[#allocation20_spill] sm:$0xff] %v7338_v61  ;;  %v7341_v26 = vadd.f32 %v2263_v41, %v2151_v55  ;;  %v2153_v1 = vadd.f32 %v2152_v14, %v7238_v19 }
 0x1b4   :  { %v7344_v43 = vpop.f32.mrf.mxu0  ;;  %v7346_v18 = vpop.f32.mrf.mxu1 }
 0x1b5   :  { %v7348_v32 = vadd.f32 %v2265_v56, %v2153_v1 }
 0x1b6   :  { %v2158_v59 = vpop.f32.mrf.mxu0  ;;  %v2271_v42 = vpop.f32.mrf.mxu1 }
 0x1b7   :  { %9633 = vst [vmem:[#allocation21_spill] sm:$0xff] %v7348_v32  ;;  %v2159_v51 = vadd.f32 %v2158_v59, %v7245_v27 }
 0x1b8   :  { %v2160_v47 = vpop.f32.mrf.mxu0  ;;  %v2273_v3 = vpop.f32.mrf.mxu1 }
 0x1b9   :  { %v7351_v61 = vadd.f32 %v2271_v42, %v2159_v51  ;;  %v2161_v17 = vadd.f32 %v2160_v47, %v7248_v35 }
 0x1ba   :  { %v2162_v29 = vpop.f32.mrf.mxu0  ;;  %v2275_v41 = vpop.f32.mrf.mxu1 }
 0x1bb   :  { %9634 = vst [vmem:[#allocation22_spill] sm:$0xff] %v7351_v61  ;;  %v7354_v55 = vadd.f32 %v2273_v3, %v2161_v17  ;;  %v2163_v19 = vadd.f32 %v2162_v29, %v7255_v40 }
 0x1bc   :  { %v7357_v14 = vpop.f32.mrf.mxu0  ;;  %v7359_v56 = vpop.f32.mrf.mxu1 }
 0x1bd   :  { %v7361_v1 = vadd.f32 %v2275_v41, %v2163_v19 }
 0x1be   :  { %v2168_v32 = vpop.f32.mrf.mxu0  ;;  %v2281_v59 = vpop.f32.mrf.mxu1 }
 0x1bf   :  { %9635 = vst [vmem:[#allocation23_spill] sm:$0xff] %v7361_v1  ;;  %v2169_v27 = vadd.f32 %v2168_v32, %v7260_v4  ;;  %v2105_v32 = vadd.f32 %v7279_v36, %v7158_v22  ;;  %v1919_v22 = vadd.f32 %v7217_v5, %v7140_v0  ;;  %v2806_v36 = vmul.f32 0.02, %v7273_v25 }
 0x1c0   :  { %v2170_v42 = vpop.f32.mrf.mxu0  ;;  %v2283_v51 = vpop.f32.mrf.mxu1  ;;  %v1939_v5 = vadd.f32 %v7251_v39, %v7140_v0 }
 0x1c1   :  { %v7364_v61 = vadd.f32 %v2281_v59, %v2169_v27  ;;  %v2171_v35 = vadd.f32 %v2170_v42, %v7263_v46  ;;  %v2218_v42 = vadd.f32 %v7281_v28, %v2105_v32  ;;  %v7429_v39 = vsel %vm2742_vm0, %v7273_v25, %v2806_v36 }
 0x1c2   :  { %v2172_v47 = vpop.f32.mrf.mxu0  ;;  %v2285_v3 = vpop.f32.mrf.mxu1  ;;  %9647 = vst [vmem:[#allocation35_spill] sm:$0xff] %v7429_v39  ;;  %v7447_v25 = vadd.f32 %v7219_v58, %v1919_v22  ;;  %v2815_v36 = vmul.f32 0.02, %v7289_v7  ;;  %v6505_v22 = vld [vmem:[#allocation9 + $0x164] ss:$8 sps:$4 sm:$0xff]   ;;  %vm2774_vm0 = vcmp.gt.f32.partialorder %v7325_v2, 0.0 }
 0x1c3   :  { %v7367_v17 = vadd.f32 %v2283_v51, %v2171_v35  ;;  %v2173_v40 = vadd.f32 %v2172_v47, %v7270_v44  ;;  %v2115_v47 = vadd.f32 %v7292_v45, %v7174_v49  ;;  %v1929_v49 = vadd.f32 %v7234_v24, %v7140_v0 }
 0x1c4   :  { %v7370_v29 = vpop.f32.mrf.mxu0  ;;  %v7372_v41 = vpop.f32.mrf.mxu1  ;;  %v2811_v45 = vmul.f32 0.02, %v2218_v42  ;;  %vm2747_vm3 = vcmp.gt.f32.partialorder %v2218_v42, 0.0  ;;  %v2810_v24 = vmul.f32 0.02, %v7283_v37 }
 0x1c5   :  { %v7374_v19 = vadd.f32 %v2285_v3, %v2173_v40  ;;  %v7398_v3 = vsub.s32 2, %v7120_v50  ;;  %v2807_v40 = vmul.f32 0.02, %v7276_v33 }
 0x1c6   :  { %v7376_v1 = vpop.f32.mrf.mxu0  ;;  %v7378_v4 = vpop.f32.mrf.mxu1 }
 0x1c7   :  { %9636 = vst [vmem:[#allocation24_spill] sm:$0xff] %v7378_v4  ;;  %9641 = vst [vmem:[#allocation29_spill] sm:$0xff] %v7398_v3  ;;  %v2228_v4 = vadd.f32 %v7294_v23, %v2115_v47  ;;  %v6496_v23 = vld [vmem:[#allocation9 + $0x74] ss:$8 sps:$4 sm:$0xff]   ;;  %v6497_v47 = vld [vmem:[#allocation9 + $0x170] ss:$8 sps:$4 sm:$0xff]  }
 0x1c8   :  { %v7382_v46 = vpop.f32.mrf.mxu0  ;;  %v7384_v59 = vpop.f32.mrf.mxu1  ;;  %3998 = vmatprep.subr.bf16.mxu0 %v6496_v23  ;;  %v2822_v23 = vmul.f32 0.02, %v7299_v62 }
 0x1c9   :  { %9637 = vst [vmem:[#allocation25_spill] sm:$0xff] %v7384_v59  ;;  %v2814_v59 = vmul.f32 0.02, %v7286_v10  ;;  %vm2755_vm6 = vcmp.gt.f32.partialorder %v2228_v4, 0.0 }
 0x1ca   :  { %v7386_v27 = vpop.f32.mrf.mxu0  ;;  %v7388_v44 = vpop.f32.mrf.mxu1 }
 0x1cb   :  { %9638 = vst [vmem:[#allocation26_spill] sm:$0xff] %v7388_v44  ;;  %v7405_v44 = vsub.s32 3, %v7120_v50 }
 0x1cc   :  { %v7391_v51 = vpop.f32.mrf.mxu0  ;;  %v7393_v35 = vpop.f32.mrf.mxu1 }
 0x1cd   :  { %9639 = vst [vmem:[#allocation27_spill] sm:$0xff] %v7391_v51  ;;  %9640 = vst [vmem:[#allocation28_spill] sm:$0xff] %v7393_v35  ;;  %v1949_v35 = vadd.f32 %v7266_v11, %v7140_v0  ;;  %v7432_v0 = vsel %vm2743_vm1, %v7276_v33, %v2807_v40  ;;  %v7436_v11 = vrot.slane %v7129_v60, %v7398_v3  ;;  %v6494_v51 = vld [vmem:[#allocation9 + $0x70] ss:$8 sps:$4 sm:$0xff]   ;;  %vm2775_vm1 = vcmp.gt.f32.partialorder %v7328_v6, 0.0 }
 0x1ce   :  { %9642 = vst [vmem:[#allocation30_spill] sm:$0xff] %v7405_v44  ;;  %v7407_v28 = vpop.f32.mrf.mxu0  ;;  %v7409_v32 = vpop.f32.mrf.mxu1  ;;  %9648 = vst [vmem:[#allocation36_spill] sm:$0xff] %v7432_v0  ;;  %v7450_v33 = vsel %vm2747_vm3, %v2218_v42, %v2811_v45  ;;  %v2125_v40 = vadd.f32 %v7305_v48, %v7190_v13  ;;  %v7456_v3 = vadd.f32 %v7236_v16, %v1929_v49  ;;  %v2819_v16 = vmul.f32 0.02, %v2228_v4  ;;  %v6500_v48 = vld [vmem:[#allocation9 + $0x60] ss:$8 sps:$4 sm:$0xff]  }
 0x1cf   :  { %9643 = vst [vmem:[#allocation31_spill] sm:$0xff] %v7407_v28  ;;  %9644 = vst [vmem:[#allocation32_spill] sm:$0xff] %v7409_v32  ;;  %v7472_v13 = vsel %vm2746_vm2, %v7283_v37, %v2810_v24  ;;  %3999 = vmatpush1.bf16.msra.mxu0 %v6494_v51  ;;  %v7489_v45 = vadd.f32 %v7432_v0, %v7429_v39  ;;  %v6503_v51 = vld [vmem:[#allocation9 + $0x160] ss:$8 sps:$4 sm:$0xff]   ;;  %v6508_v24 = vld [vmem:[#allocation9 + $0x54] ss:$8 sps:$4 sm:$0xff]  }
 0x1d0   :  { %v7420_v50 = vpop.f32.mrf.mxu0  ;;  %v7422_v32 = vpop.f32.mrf.mxu1  ;;  %9651 = vst [vmem:[#allocation39_spill] sm:$0xff] %v7450_v33  ;;  %9652 = vst [vmem:[#allocation40_spill] sm:$0xff] %v7472_v13  ;;  %vm2778_vm2 = vcmp.gt.f32.partialorder %v7335_v8, 0.0 }
 0x1d1   :  { %9645 = vst [vmem:[#allocation33_spill] sm:$0xff] %v7420_v50  ;;  %9646 = vst [vmem:[#allocation34_spill] sm:$0xff] %v7422_v32  ;;  %v7440_v32 = vrot.slane %v7129_v60, %v7405_v44  ;;  %v6499_v60 = vld [vmem:[#allocation9 + $0x174] ss:$8 sps:$4 sm:$0xff]   ;;  %v6502_v44 = vld [vmem:[#allocation9 + $0x64] ss:$8 sps:$4 sm:$0xff]  }
 0x1d2   :  { %v7442_v50 = vpop.f32.mrf.mxu0  ;;  %v7444_v28 = vpop.f32.mrf.mxu1  ;;  %4111 = vmatprep.subr.bf16.mxu1 %v6499_v60  ;;  %9655 = vst [vmem:[#allocation43_spill] sm:$0xff] %v7489_v45  ;;  %4000 = vmatprep.subr.bf16.mxu0 %v6502_v44  ;;  %v2238_v60 = vadd.f32 %v7307_v52, %v2125_v40  ;;  %v2135_v44 = vadd.f32 %v7318_v57, %v7206_v34  ;;  %v2823_v40 = vmul.f32 0.02, %v7302_v9  ;;  %v6506_v45 = vld [vmem:[#allocation9 + $0x50] ss:$8 sps:$4 sm:$0xff]  }
 0x1d3   :  { %9649 = vst [vmem:[#allocation37_spill] sm:$0xff] %v7442_v50  ;;  %9650 = vst [vmem:[#allocation38_spill] sm:$0xff] %v7444_v28  ;;  %v7459_v28 = vadd.f32 %v7253_v30, %v1939_v5  ;;  %v7462_v50 = vadd.f32 %v7268_v12, %v1949_v35  ;;  %v3014_v30 = vmul.f32 %v7429_v39, %v7429_v39  ;;  %4112 = vmatpush1.bf16.msra.mxu1 %v6497_v47 }
 0x1d4   :  { %v7465_v58 = vpop.f32.mrf.mxu0  ;;  %v7467_v42 = vpop.f32.mrf.mxu1  ;;  %v3015_v12 = vmul.f32 %v7432_v0, %v7432_v0  ;;  %v7481_v35 = vsel %vm2750_vm4, %v7286_v10, %v2814_v59  ;;  %v3019_v5 = vmul.f32 %v7450_v33, %v7450_v33  ;;  %v7496_v10 = vsel %vm2751_vm5, %v7289_v7, %v2815_v36  ;;  %4113 = vmatprep.subr.bf16.mxu1 %v6505_v22  ;;  %v6511_v0 = vld [vmem:[#allocation9 + $0x154] ss:$8 sps:$4 sm:$0xff]  }
 0x1d5   :  { %9653 = vst [vmem:[#allocation41_spill] sm:$0xff] %v7481_v35  ;;  %9656 = vst [vmem:[#allocation44_spill] sm:$0xff] %v7496_v10  ;;  %v2818_v59 = vmul.f32 0.02, %v7296_v15  ;;  %v3018_v39 = vmul.f32 %v7472_v13, %v7472_v13  ;;  %v3022_v36 = vmul.f32 %v7481_v35, %v7481_v35  ;;  %v7514_v52 = vsel %vm2755_vm6, %v2228_v4, %v2819_v16  ;;  %v6509_v16 = vld [vmem:[#allocation9 + $0x150] ss:$8 sps:$4 sm:$0xff]  }
 0x1d6   :  { %v7483_v49 = vpop.f32.mrf.mxu0  ;;  %v7485_v37 = vpop.f32.mrf.mxu1  ;;  %9658 = vst [vmem:[#allocation46_spill] sm:$0xff] %v7514_v52  ;;  %v7517_v22 = vadd.f32 %v3015_v12, %v3014_v30  ;;  %4001 = vmatpush1.bf16.msra.mxu0 %v6500_v48  ;;  %v6514_v30 = vld [vmem:[#allocation9 + $0x44] ss:$8 sps:$4 sm:$0xff]   ;;  %v7540_v48 = vsel %vm2758_vm8, %v7299_v62, %v2822_v23  ;;  %vm2763_vm10 = vcmp.gt.f32.partialorder %v2238_v60, 0.0  ;;  %v3027_v62 = vmul.f32 %v7514_v52, %v7514_v52 }
 0x1d7   :  { %9654 = vst [vmem:[#allocation42_spill] sm:$0xff] %v7485_v37  ;;  %v3023_v37 = vmul.f32 %v7496_v10, %v7496_v10  ;;  %v7530_v4 = vadd.f32 %v3019_v5, %v3018_v39  ;;  %4114 = vmatpush1.bf16.msra.mxu1 %v6503_v51  ;;  %4002 = vmatprep.subr.bf16.mxu0 %v6508_v24  ;;  %9663 = vst [vmem:[#allocation51_spill] sm:$0xff] %v7540_v48  ;;  %v6517_v39 = vld [vmem:[#allocation9 + $0x144] ss:$8 sps:$4 sm:$0xff]   ;;  %v2826_v5 = vmul.f32 0.02, %v7309_v53 }
 0x1d8   :  { %v7507_v7 = vpop.f32.mrf.mxu0  ;;  %v7509_v47 = vpop.f32.mrf.mxu1  ;;  %9659 = vst [vmem:[#allocation47_spill] sm:$0xff] %v7517_v22  ;;  %v7535_v12 = vsel %vm2754_vm7, %v7296_v15, %v2818_v59  ;;  %v2827_v22 = vmul.f32 0.02, %v2238_v60  ;;  %4115 = vmatprep.subr.bf16.mxu1 %v6511_v0  ;;  %v2248_v51 = vadd.f32 %v7320_v38, %v2135_v44  ;;  %v7557_v59 = vsel %vm2759_vm9, %v7302_v9, %v2823_v40  ;;  %v6512_v38 = vld [vmem:[#allocation9 + $0x40] ss:$8 sps:$4 sm:$0xff]  }
 0x1d9   :  { %9657 = vst [vmem:[#allocation45_spill] sm:$0xff] %v7509_v47  ;;  %v7528_v47 = vadd.f32 %v7450_v33, %v7472_v13  ;;  %9661 = vst [vmem:[#allocation49_spill] sm:$0xff] %v7530_v4  ;;  %v7544_v33 = vadd.f32 %v7496_v10, %v7481_v35  ;;  %v2830_v0 = vmul.f32 0.02, %v7312_v21  ;;  %v3026_v23 = vmul.f32 %v7535_v12, %v7535_v12  ;;  %v6515_v13 = vld [vmem:[#allocation9 + $0x140] ss:$8 sps:$4 sm:$0xff]  }
 0x1da   :  { %v7522_v34 = vpop.f32.mrf.mxu0  ;;  %v7524_v57 = vpop.f32.mrf.mxu1  ;;  %9662 = vst [vmem:[#allocation50_spill] sm:$0xff] %v7535_v12  ;;  %9666 = vst [vmem:[#allocation54_spill] sm:$0xff] %v7557_v59  ;;  %4003 = vmatpush1.bf16.msra.mxu0 %v6506_v45  ;;  %v3030_v44 = vmul.f32 %v7540_v48, %v7540_v48  ;;  %v2831_v10 = vmul.f32 0.02, %v7315_v54  ;;  %v7571_v40 = vadd.f32 %v3023_v37, %v3022_v36  ;;  %v2834_v4 = vmul.f32 0.02, %v7322_v63 }
 0x1db   :  { %9660 = vst [vmem:[#allocation48_spill] sm:$0xff] %v7528_v47  ;;  %9664 = vst [vmem:[#allocation52_spill] sm:$0xff] %v7544_v33  ;;  %4116 = vmatpush1.bf16.msra.mxu1 %v6509_v16  ;;  %4004 = vmatprep.subr.bf16.mxu0 %v6514_v30  ;;  %v6520_v33 = vld [vmem:[#allocation9 + $0x34] ss:$8 sps:$4 sm:$0xff]   ;;  %v7574_v45 = vsel %vm2763_vm10, %v2238_v60, %v2827_v22  ;;  %v2145_v47 = vadd.f32 %v7331_v31, %v7447_v25  ;;  %v2835_v60 = vmul.f32 0.02, %v2248_v51 }
 0x1dc   :  { %v7548_v24 = vpop.f32.mrf.mxu0  ;;  %v7550_v15 = vpop.f32.mrf.mxu1  ;;  %9667 = vst [vmem:[#allocation55_spill] sm:$0xff] %v7571_v40  ;;  %9668 = vst [vmem:[#allocation56_spill] sm:$0xff] %v7574_v45  ;;  %4117 = vmatprep.subr.bf16.mxu1 %v6517_v39  ;;  %v3031_v37 = vmul.f32 %v7557_v59, %v7557_v59  ;;  %v7585_v36 = vsel %vm2762_vm11, %v7309_v53, %v2826_v5  ;;  %v7595_v31 = vsel %vm2766_vm12, %v7312_v21, %v2830_v0  ;;  %v6518_v53 = vld [vmem:[#allocation9 + $0x30] ss:$8 sps:$4 sm:$0xff]  }
 0x1dd   :  { %9665 = vst [vmem:[#allocation53_spill] sm:$0xff] %v7550_v15  ;;  %v6523_v15 = vld [vmem:[#allocation9 + $0x134] ss:$8 sps:$4 sm:$0xff]   ;;  %9669 = vst [vmem:[#allocation57_spill] sm:$0xff] %v7585_v36  ;;  %vm2771_vm15 = vcmp.gt.f32.partialorder %v2248_v51, 0.0  ;;  %v7599_v25 = vadd.f32 %v7514_v52, %v7535_v12  ;;  %v7601_v30 = vadd.f32 %v3027_v62, %v3026_v23  ;;  %v7606_v39 = vsel %vm2767_vm13, %v7315_v54, %v2831_v10 }
 0x1de   :  { %v7567_v35 = vpop.f32.mrf.mxu0  ;;  %v7569_v9 = vpop.f32.mrf.mxu1  ;;  %9670 = vst [vmem:[#allocation58_spill] sm:$0xff] %v7595_v31  ;;  %4005 = vmatpush1.bf16.msra.mxu0 %v6512_v38  ;;  %9673 = vst [vmem:[#allocation61_spill] sm:$0xff] %v7606_v39  ;;  %v2838_v5 = vmul.f32 0.02, %v7325_v2  ;;  %v7615_v0 = vadd.f32 %v7557_v59, %v7540_v48  ;;  %v3035_v62 = vmul.f32 %v7574_v45, %v7574_v45  ;;  %v6521_v38 = vld [vmem:[#allocation9 + $0x130] ss:$8 sps:$4 sm:$0xff]  }
 0x1df   :  { %9671 = vst [vmem:[#allocation59_spill] sm:$0xff] %v7599_v25  ;;  %9672 = vst [vmem:[#allocation60_spill] sm:$0xff] %v7601_v30  ;;  %4118 = vmatpush1.bf16.msra.mxu1 %v6515_v13  ;;  %4006 = vmatprep.subr.bf16.mxu0 %v6520_v33  ;;  %v6526_v23 = vld [vmem:[#allocation9 + $0x24] ss:$8 sps:$4 sm:$0xff]   ;;  %v3034_v54 = vmul.f32 %v7585_v36, %v7585_v36  ;;  %v7624_v10 = vsel %vm2770_vm14, %v7322_v63, %v2834_v4  ;;  %v2839_v52 = vmul.f32 0.02, %v7328_v6 }
 0x1e0   :  { %v7588_v22 = vpop.f32.mrf.mxu0  ;;  %v7590_v16 = vpop.f32.mrf.mxu1  ;;  %9674 = vst [vmem:[#allocation62_spill] sm:$0xff] %v7615_v0  ;;  %9675 = vst [vmem:[#allocation63_spill] sm:$0xff] %v7624_v10  ;;  %v2258_v59 = vadd.f32 %v7333_v20, %v2145_v47  ;;  %4119 = vmatprep.subr.bf16.mxu1 %v6523_v15  ;;  %v6529_v48 = vld [vmem:[#allocation9 + $0x124] ss:$8 sps:$4 sm:$0xff]   ;;  %v3038_v13 = vmul.f32 %v7595_v31, %v7595_v31  ;;  %v7631_v33 = vsel %vm2771_vm15, %v2248_v51, %v2835_v60  ;;  %v6524_v51 = vld [vmem:[#allocation9 + $0x20] ss:$8 sps:$4 sm:$0xff]  }
 0x1e1   :  { %9676 = vst [vmem:[#allocation64_spill] sm:$0xff] %v7631_v33  ;;  %v7638_v63 = vadd.f32 %v3031_v37, %v3030_v44  ;;  %v3039_v4 = vmul.f32 %v7606_v39, %v7606_v39  ;;  %v2155_v20 = vadd.f32 %v7344_v43, %v7456_v3  ;;  %v7647_v47 = vadd.f32 %v7574_v45, %v7585_v36  ;;  %v6527_v43 = vld [vmem:[#allocation9 + $0x120] ss:$8 sps:$4 sm:$0xff]   ;;  %v6532_v3 = vld [vmem:[#allocation9 + $0x14] ss:$8 sps:$4 sm:$0xff]  }
 0x1e2   :  { %v7609_v40 = vpop.f32.mrf.mxu0  ;;  %v7611_v21 = vpop.f32.mrf.mxu1  ;;  %4007 = vmatpush1.bf16.msra.mxu0 %v6518_v53  ;;  %v3042_v15 = vmul.f32 %v7624_v10, %v7624_v10  ;;  %v7654_v44 = vsel %vm2774_vm0, %v7325_v2, %v2838_v5  ;;  %v2842_v53 = vmul.f32 0.02, %v7335_v8  ;;  %vm2779_vm3 = vcmp.gt.f32.partialorder %v2258_v59, 0.0  ;;  %v6535_v2 = vld [vmem:[#allocation9 + $0x114] ss:$8 sps:$4 sm:$0xff]  }
 0x1e3   :  { %9677 = vst [vmem:[#allocation65_spill] sm:$0xff] %v7638_v63  ;;  %9678 = vst [vmem:[#allocation66_spill] sm:$0xff] %v7647_v47  ;;  %v7660_v63 = vadd.f32 %v3035_v62, %v3034_v54  ;;  %4120 = vmatpush1.bf16.msra.mxu1 %v6521_v38  ;;  %4008 = vmatprep.subr.bf16.mxu0 %v6526_v23  ;;  %v3043_v45 = vmul.f32 %v7631_v33, %v7631_v33  ;;  %v2843_v62 = vmul.f32 0.02, %v2258_v59  ;;  %v9683_v38 = vld [vmem:[#allocation20_spill] sm:$0xff] }
 0x1e4   :  { %v7634_v12 = vpop.f32.mrf.mxu0  ;;  %v7636_v0 = vpop.f32.mrf.mxu1  ;;  %9679 = vst [vmem:[#allocation67_spill] sm:$0xff] %v7654_v44  ;;  %4121 = vmatprep.subr.bf16.mxu1 %v6529_v48  ;;  %v7669_v5 = vsel %vm2775_vm1, %v7328_v6, %v2839_v52  ;;  %v2846_v23 = vmul.f32 0.02, %v9683_v38  ;;  %v2847_v54 = vmul.f32 0.02, %v7341_v26  ;;  %vm2782_vm4 = vcmp.gt.f32.partialorder %v9683_v38, 0.0 }
 0x1e5   :  { %9681 = vst [vmem:[#allocation69_spill] sm:$0xff] %v7660_v63  ;;  %9682 = vst [vmem:[#allocation70_spill] sm:$0xff] %v7669_v5  ;;  %vm2783_vm5 = vcmp.gt.f32.partialorder %v7341_v26, 0.0  ;;  %v2268_v48 = vadd.f32 %v7346_v18, %v2155_v20  ;;  %v2165_v47 = vadd.f32 %v7357_v14, %v7459_v28  ;;  %v6530_v6 = vld [vmem:[#allocation9 + $0x10] ss:$8 sps:$4 sm:$0xff]   ;;  %v3046_v52 = vmul.f32 %v7654_v44, %v7654_v44 }
 0x1e6   :  { %v7656_v37 = vpop.f32.mrf.mxu0  ;;  %v7658_v60 = vpop.f32.mrf.mxu1  ;;  %4009 = vmatpush1.bf16.msra.mxu0 %v6524_v51  ;;  %v6533_v18 = vld [vmem:[#allocation9 + $0x110] ss:$8 sps:$4 sm:$0xff]   ;;  %v3047_v14 = vmul.f32 %v7669_v5, %v7669_v5  ;;  %v7698_v28 = vadd.f32 %v7631_v33, %v7624_v10  ;;  %v7700_v20 = vadd.f32 %v3043_v45, %v3042_v15  ;;  %v7704_v51 = vadd.f32 %v7669_v5, %v7654_v44 }
 0x1e7   :  { %9680 = vst [vmem:[#allocation68_spill] sm:$0xff] %v7658_v60  ;;  %v7692_v60 = vadd.f32 %v3039_v4, %v3038_v13  ;;  %4122 = vmatpush1.bf16.msra.mxu1 %v6527_v43  ;;  %4010 = vmatprep.subr.bf16.mxu0 %v6532_v3  ;;  %v7709_v13 = vsel %vm2778_vm2, %v7335_v8, %v2842_v53  ;;  %v2851_v53 = vmul.f32 0.02, %v2268_v48  ;;  %v9694_v5 = vld [vmem:[#allocation22_spill] sm:$0xff]  ;;  %vm2787_vm7 = vcmp.gt.f32.partialorder %v2268_v48, 0.0 }
 0x1e8   :  { %v7673_v36 = vpop.f32.mrf.mxu0  ;;  %v7675_v63 = vpop.f32.mrf.mxu1  ;;  %9686 = vst [vmem:[#allocation72_spill] sm:$0xff] %v7698_v28  ;;  %9687 = vst [vmem:[#allocation73_spill] sm:$0xff] %v7700_v20  ;;  %4123 = vmatprep.subr.bf16.mxu1 %v6535_v2  ;;  %v7712_v4 = vsel %vm2779_vm3, %v2258_v59, %v2843_v62  ;;  %v7717_v43 = vsel %vm2782_vm4, %v9683_v38, %v2846_v23  ;;  %v7722_v45 = vsel %vm2783_vm5, %v7341_v26, %v2847_v54  ;;  %v9693_v2 = vld [vmem:[#allocation21_spill] sm:$0xff] }
 0x1e9   :  { %9684 = vst [vmem:[#allocation20_spill] sm:$0xff] %v7675_v63  ;;  %v7690_v63 = vadd.f32 %v7606_v39, %v7595_v31  ;;  %9685 = vst [vmem:[#allocation71_spill] sm:$0xff] %v7692_v60  ;;  %v2850_v8 = vmul.f32 0.02, %v9693_v2  ;;  %v2854_v59 = vmul.f32 0.02, %v9694_v5  ;;  %v2278_v62 = vadd.f32 %v7359_v56, %v2165_v47 }
 0x1ea   :  { %v7684_v30 = vpop.f32.mrf.mxu0  ;;  %v7686_v25 = vpop.f32.mrf.mxu1  ;;  %9688 = vst [vmem:[#allocation74_spill] sm:$0xff] %v7704_v51  ;;  %9689 = vst [vmem:[#allocation75_spill] sm:$0xff] %v7709_v13  ;;  %4011 = vmatpush1.bf16.msra.mxu0 %v6530_v6  ;;  %vm2786_vm6 = vcmp.gt.f32.partialorder %v9693_v2, 0.0  ;;  %vm2790_vm8 = vcmp.gt.f32.partialorder %v9694_v5, 0.0  ;;  %v2855_v26 = vmul.f32 0.02, %v7354_v55  ;;  %v3050_v54 = vmul.f32 %v7709_v13, %v7709_v13 }
 0x1eb   :  { %9690 = vst [vmem:[#allocation76_spill] sm:$0xff] %v7712_v4  ;;  %9691 = vst [vmem:[#allocation77_spill] sm:$0xff] %v7717_v43  ;;  %4124 = vmatpush1.bf16.msra.mxu1 %v6533_v18  ;;  %vm2791_vm9 = vcmp.gt.f32.partialorder %v7354_v55, 0.0  ;;  %v2175_v56 = vadd.f32 %v7370_v29, %v7462_v50  ;;  %v7743_v47 = vadd.f32 %v3047_v14, %v3046_v52  ;;  %v2859_v14 = vmul.f32 0.02, %v2278_v62  ;;  %v9701_v31 = vld [vmem:[#allocation23_spill] sm:$0xff] }
 0x1ec   :  { %9692 = vst [vmem:[#allocation78_spill] sm:$0xff] %v7722_v45  ;;  %v7724_v15 = vpop.f32.mrf.mxu0  ;;  %v7726_v3 = vpop.f32.mrf.mxu1  ;;  %v3054_v6 = vmul.f32 %v7717_v43, %v7717_v43  ;;  %v3055_v33 = vmul.f32 %v7722_v45, %v7722_v45  ;;  %v7755_v18 = vadd.f32 %v7712_v4, %v7709_v13  ;;  %v3051_v10 = vmul.f32 %v7712_v4, %v7712_v4 }
 0x1ed   :  { %9695 = vst [vmem:[#allocation21_spill] sm:$0xff] %v7743_v47  ;;  %v7762_v50 = vsel %vm2786_vm6, %v9693_v2, %v2850_v8  ;;  %v7765_v29 = vsel %vm2787_vm7, %v2268_v48, %v2851_v53  ;;  %v7770_v52 = vsel %vm2790_vm8, %v9694_v5, %v2854_v59  ;;  %v7773_v13 = vsel %vm2791_vm9, %v7354_v55, %v2855_v26 }
 0x1ee   :  { %v7734_v38 = vpop.f32.mrf.mxu0  ;;  %v7736_v23 = vpop.f32.mrf.mxu1  ;;  %9696 = vst [vmem:[#allocation22_spill] sm:$0xff] %v7755_v18  ;;  %9697 = vst [vmem:[#allocation79_spill] sm:$0xff] %v7762_v50  ;;  %v2858_v47 = vmul.f32 0.02, %v9701_v31  ;;  %vm2795_vm10 = vcmp.gt.f32.partialorder %v2278_v62, 0.0  ;;  %vm2794_vm11 = vcmp.gt.f32.partialorder %v9701_v31, 0.0  ;;  %v2288_v5 = vadd.f32 %v7372_v41, %v2175_v56 }
 0x1ef   :  { %9698 = vst [vmem:[#allocation80_spill] sm:$0xff] %v7765_v29  ;;  %9699 = vst [vmem:[#allocation81_spill] sm:$0xff] %v7770_v52  ;;  %v2863_v4 = vmul.f32 0.02, %v7367_v17  ;;  %v2862_v48 = vmul.f32 0.02, %v7364_v61  ;;  %v7790_v53 = vadd.f32 %v3051_v10, %v3050_v54  ;;  %v7794_v59 = vadd.f32 %v7722_v45, %v7717_v43 }
 0x1f0   :  { %v7749_v39 = vpop.f32.mrf.mxu0  ;;  %v7751_v44 = vpop.f32.mrf.mxu1  ;;  %9700 = vst [vmem:[#allocation82_spill] sm:$0xff] %v7773_v13  ;;  %vm2799_vm12 = vcmp.gt.f32.partialorder %v7367_v17, 0.0  ;;  %vm2798_vm13 = vcmp.gt.f32.partialorder %v7364_v61, 0.0  ;;  %v3059_v26 = vmul.f32 %v7765_v29, %v7765_v29  ;;  %v3058_v51 = vmul.f32 %v7762_v50, %v7762_v50 }
 0x1f1   :  { %9702 = vst [vmem:[#allocation23_spill] sm:$0xff] %v7790_v53  ;;  %9703 = vst [vmem:[#allocation83_spill] sm:$0xff] %v7794_v59  ;;  %v3063_v41 = vmul.f32 %v7773_v13, %v7773_v13  ;;  %v7803_v56 = vsel %vm2795_vm10, %v2278_v62, %v2859_v14  ;;  %v7805_v20 = vadd.f32 %v3055_v33, %v3054_v6  ;;  %v2866_v43 = vmul.f32 0.02, %v7374_v19 }
 0x1f2   :  { %v7777_v18 = vpop.f32.mrf.mxu0  ;;  %v7779_v2 = vpop.f32.mrf.mxu1  ;;  %9704 = vst [vmem:[#allocation84_spill] sm:$0xff] %v7803_v56  ;;  %v3062_v10 = vmul.f32 %v7770_v52, %v7770_v52  ;;  %v7810_v54 = vsel %vm2794_vm11, %v9701_v31, %v2858_v47  ;;  %v7813_v45 = vsel %vm2799_vm12, %v7367_v17, %v2863_v4  ;;  %v7823_v33 = vsel %vm2798_vm13, %v7364_v61, %v2862_v48 }
 0x1f3   :  { %9705 = vst [vmem:[#allocation85_spill] sm:$0xff] %v7805_v20  ;;  %9706 = vst [vmem:[#allocation86_spill] sm:$0xff] %v7810_v54  ;;  %vm2802_vm14 = vcmp.gt.f32.partialorder %v7374_v19, 0.0  ;;  %v2867_v62 = vmul.f32 0.02, %v2288_v5  ;;  %v7828_v31 = vadd.f32 %v7765_v29, %v7762_v50  ;;  %vm2803_vm15 = vcmp.gt.f32.partialorder %v2288_v5, 0.0 }
 0x1f4   :  { %v7786_v55 = vpop.f32.mrf.mxu0  ;;  %v7788_v8 = vpop.f32.mrf.mxu1  ;;  %9707 = vst [vmem:[#allocation87_spill] sm:$0xff] %v7813_v45  ;;  %9708 = vst [vmem:[#allocation88_spill] sm:$0xff] %v7823_v33  ;;  %v2325_v17 = vadd.f32 %v7376_v1, %v7436_v11  ;;  %v7836_v6 = vadd.f32 %v3059_v26, %v3058_v51  ;;  %v3067_v61 = vmul.f32 %v7803_v56, %v7803_v56 }
 0x1f5   :  { %9709 = vst [vmem:[#allocation89_spill] sm:$0xff] %v7828_v31  ;;  %v3066_v14 = vmul.f32 %v7810_v54, %v7810_v54  ;;  %v3071_v48 = vmul.f32 %v7813_v45, %v7813_v45  ;;  %v7846_v29 = vadd.f32 %v7773_v13, %v7770_v52  ;;  %v7848_v1 = vadd.f32 %v3063_v41, %v3062_v10  ;;  %v9715_v41 = vld [vmem:[#allocation27_spill] sm:$0xff] }
 0x1f6   :  { %v7816_v59 = vpop.f32.mrf.mxu0  ;;  %v7818_v53 = vpop.f32.mrf.mxu1  ;;  %9710 = vst [vmem:[#allocation90_spill] sm:$0xff] %v7836_v6  ;;  %v3070_v50 = vmul.f32 %v7823_v33, %v7823_v33  ;;  %v7853_v51 = vsel %vm2802_vm14, %v7374_v19, %v2866_v43  ;;  %v2327_v26 = vadd.f32 %v7382_v46, %v7440_v32  ;;  %v2329_v6 = vadd.f32 %v7386_v27, %v7436_v11  ;;  %v9716_v52 = vld [vmem:[#allocation31_spill] sm:$0xff]  ;;  %v9717_v46 = vld [vmem:[#allocation24_spill] sm:$0xff]  ;;  %v9718_v27 = vld [vmem:[#allocation33_spill] sm:$0xff] }
 0x1f7   :  { %9711 = vst [vmem:[#allocation91_spill] sm:$0xff] %v7846_v29  ;;  %9712 = vst [vmem:[#allocation92_spill] sm:$0xff] %v7848_v1  ;;  %v7864_v13 = vsel %vm2803_vm15, %v2288_v5, %v2867_v62  ;;  %v2331_v10 = vadd.f32 %v9715_v41, %v7440_v32  ;;  %v2335_v19 = vadd.f32 %v9716_v52, %v7436_v11  ;;  %v9722_v41 = vld [vmem:[#allocation37_spill] sm:$0xff] }
 0x1f8   :  { %v7832_v4 = vpop.f32.mrf.mxu0  ;;  %v7834_v47 = vpop.f32.mrf.mxu1  ;;  %9713 = vst [vmem:[#allocation93_spill] sm:$0xff] %v7853_v51  ;;  %9714 = vst [vmem:[#allocation94_spill] sm:$0xff] %v7864_v13  ;;  %v7872_v43 = vadd.f32 %v7803_v56, %v7810_v54  ;;  %v2438_v1 = vadd.f32 %v9717_v46, %v2325_v17  ;;  %v2337_v29 = vadd.f32 %v9718_v27, %v7440_v32  ;;  %v9724_v27 = vld [vmem:[#allocation25_spill] sm:$0xff] }
 0x1f9   :  { %v7879_v5 = vadd.f32 %v3067_v61, %v3066_v14  ;;  %v7883_v62 = vadd.f32 %v7813_v45, %v7823_v33  ;;  %v7887_v52 = vmul.f32 %v7853_v51, %v7853_v51  ;;  %v2339_v56 = vadd.f32 %v9722_v41, %v7436_v11  ;;  %v9725_v61 = vld [vmem:[#allocation26_spill] sm:$0xff]  ;;  %v9727_v41 = vld [vmem:[#allocation28_spill] sm:$0xff] }
 0x1fa   :  { %v7859_v20 = vpop.f32.mrf.mxu0  ;;  %v7861_v31 = vpop.f32.mrf.mxu1  ;;  %v2341_v17 = vadd.f32 %v7465_v58, %v7440_v32  ;;  %v7893_v46 = vadd.f32 %v3071_v48, %v3070_v50  ;;  %v2440_v54 = vadd.f32 %v9724_v27, %v2327_v26  ;;  %v7897_v14 = vadd.f32 %v9725_v61, %v2329_v6  ;;  %v9728_v58 = vld [vmem:[#allocation32_spill] sm:$0xff] }
 0x1fb   :  { %9719 = vst [vmem:[#allocation27_spill] sm:$0xff] %v7879_v5  ;;  %9720 = vst [vmem:[#allocation31_spill] sm:$0xff] %v7883_v62  ;;  %v2345_v45 = vadd.f32 %v7483_v49, %v7436_v11  ;;  %v7908_v5 = vadd.f32 %v9727_v41, %v2331_v10  ;;  %v7911_v50 = vadd.f32 %v9728_v58, %v2335_v19  ;;  %v9729_v49 = vld [vmem:[#allocation34_spill] sm:$0xff] }
 0x1fc   :  { %v2390_v60 = vpop.f32.mrf.mxu0  ;;  %v7877_v28 = vpop.f32.mrf.mxu1  ;;  %9721 = vst [vmem:[#allocation24_spill] sm:$0xff] %v7887_v52  ;;  %9723 = vst [vmem:[#allocation33_spill] sm:$0xff] %v7893_v46  ;;  %v7905_v52 = vadd.f32 %v7864_v13, %v7853_v51  ;;  %v2347_v6 = vadd.f32 %v7507_v7, %v7440_v32  ;;  %v7917_v48 = vmul.f32 %v7864_v13, %v7864_v13  ;;  %v9730_v7 = vld [vmem:[#allocation38_spill] sm:$0xff] }
 0x1fd   :  { %v7920_v26 = vadd.f32 %v9729_v49, %v2337_v29  ;;  %v2349_v27 = vadd.f32 %v7522_v34, %v7436_v11  ;;  %v2351_v10 = vadd.f32 %v7548_v24, %v7440_v32  ;;  %v2355_v19 = vadd.f32 %v7567_v35, %v7436_v11  ;;  %v9731_v49 = vld [vmem:[#allocation42_spill] sm:$0xff] }
 0x1fe   :  { %v2394_v33 = vpop.f32.mrf.mxu0  ;;  %v7901_v62 = vpop.f32.mrf.mxu1  ;;  %9726 = vst [vmem:[#allocation37_spill] sm:$0xff] %v7905_v52  ;;  %v7931_v58 = vadd.f32 %v9730_v7, %v2339_v56  ;;  %v7934_v13 = vadd.f32 %v7467_v42, %v2341_v17  ;;  %v2357_v29 = vadd.f32 %v7588_v22, %v7440_v32  ;;  %v2359_v34 = vadd.f32 %v7609_v40, %v7436_v11  ;;  %v9732_v7 = vld [vmem:[#allocation45_spill] sm:$0xff] }
 0x1ff   :  { %v7941_v24 = vadd.f32 %v9731_v49, %v2345_v45  ;;  %v2361_v35 = vadd.f32 %v7634_v12, %v7440_v32  ;;  %v2365_v51 = vadd.f32 %v7656_v37, %v7436_v11  ;;  %v2367_v56 = vadd.f32 %v7673_v36, %v7440_v32  ;;  %v9733_v37 = vld [vmem:[#allocation53_spill] sm:$0xff] }
 0x200   :  { %v2396_v61 = vpop.f32.mrf.mxu0  ;;  %v7928_v41 = vpop.f32.mrf.mxu1  ;;  %v7950_v46 = vadd.f32 %v9732_v7, %v2347_v6  ;;  %v2369_v40 = vadd.f32 %v7684_v30, %v7436_v11  ;;  %v2371_v22 = vadd.f32 %v7724_v15, %v7440_v32  ;;  %v2375_v12 = vadd.f32 %v7734_v38, %v7436_v11 }
 0x201   :  { %v7959_v45 = vadd.f32 %v7524_v57, %v2349_v27  ;;  %v7962_v49 = vadd.f32 %v9733_v37, %v2351_v10  ;;  %v7965_v36 = vadd.f32 %v7569_v9, %v2355_v19  ;;  %v2377_v6 = vadd.f32 %v7749_v39, %v7440_v32  ;;  %v9734_v27 = vld [vmem:[#allocation68_spill] sm:$0xff] }
 0x202   :  { %v2398_v42 = vpop.f32.mrf.mxu0  ;;  %v2511_v17 = vpop.f32.mrf.mxu1  ;;  %v7970_v52 = vadd.f32 %v7590_v16, %v2357_v29  ;;  %v7973_v15 = vadd.f32 %v7611_v21, %v2359_v34  ;;  %v2379_v57 = vadd.f32 %v7777_v18, %v7436_v11  ;;  %v2381_v38 = vadd.f32 %v7786_v55, %v7440_v32  ;;  %v9735_v39 = vld [vmem:[#allocation20_spill] sm:$0xff] }
 0x203   :  { %v7980_v9 = vadd.f32 %v7636_v0, %v2361_v35  ;;  %v7983_v10 = vadd.f32 %v9734_v27, %v2365_v51  ;;  %v7986_v19 = vadd.f32 %v9735_v39, %v2367_v56  ;;  %v2385_v16 = vadd.f32 %v7816_v59, %v7436_v11 }
 0x204   :  { %v2400_v7 = vpop.f32.mrf.mxu0  ;;  %v2513_v30 = vpop.f32.mrf.mxu1  ;;  %v7991_v34 = vadd.f32 %v7686_v25, %v2369_v40  ;;  %v7994_v18 = vadd.f32 %v7726_v3, %v2371_v22  ;;  %v7997_v0 = vadd.f32 %v7736_v23, %v2375_v12  ;;  %v8000_v51 = vadd.f32 %v7751_v44, %v2377_v6 }
 0x205   :  { %v2387_v35 = vadd.f32 %v7832_v4, %v7440_v32  ;;  %v2389_v59 = vadd.f32 %v7859_v20, %v7436_v11  ;;  %v2391_v56 = vadd.f32 %v2390_v60, %v7440_v32  ;;  %v8008_v3 = vadd.f32 %v7779_v2, %v2379_v57 }
 0x206   :  { %v2550_v21 = vpop.f32.mrf.mxu0  ;;  %v2663_v29 = vpop.f32.mrf.mxu1  ;;  %v8011_v23 = vadd.f32 %v7788_v8, %v2381_v38  ;;  %v8014_v44 = vadd.f32 %v7818_v53, %v2385_v16  ;;  %v2395_v4 = vadd.f32 %v2394_v33, %v7436_v11  ;;  %v2397_v12 = vadd.f32 %v2396_v61, %v7440_v32 }
 0x207   :  { %v2551_v55 = vadd.f32 %v2550_v21, %v2438_v1  ;;  %v2399_v20 = vadd.f32 %v2398_v42, %v7436_v11  ;;  %v8021_v8 = vadd.f32 %v7834_v47, %v2387_v35  ;;  %v8027_v53 = vadd.f32 %v7877_v28, %v2391_v56 }
 0x208   :  { %v2552_v25 = vpop.f32.mrf.mxu0  ;;  %v2665_v40 = vpop.f32.mrf.mxu1  ;;  %v2401_v33 = vadd.f32 %v2400_v7, %v7440_v32  ;;  %v8035_v47 = vadd.f32 %v7928_v41, %v2397_v12  ;;  %v9736_v41 = vld [vmem:[#allocation43_spill] sm:$0xff] }
 0x209   :  { %v2664_v1 = vadd.f32 %v2663_v29, %v2551_v55  ;;  %v2553_v22 = vadd.f32 %v2552_v25, %v2440_v54  ;;  %v8024_v54 = vadd.f32 %v7861_v31, %v2389_v59  ;;  %v8037_v31 = vadd.f32 %v2511_v17, %v2399_v20 }
 0x20a   :  { %v2554_v60 = vpop.f32.mrf.mxu0  ;;  %v2667_v37 = vpop.f32.mrf.mxu1 }
 0x20b   :  { %vm2744_vm0 = vcmp.gt.f32.partialorder %v2664_v1, 0.0  ;;  %v2808_v6 = vmul.f32 0.02, %v2664_v1  ;;  %v2666_v2 = vadd.f32 %v2665_v40, %v2553_v22  ;;  %v2555_v57 = vadd.f32 %v2554_v60, %v7897_v14 }
 0x20c   :  { %v2556_v61 = vpop.f32.mrf.mxu0  ;;  %v2669_v11 = vpop.f32.mrf.mxu1  ;;  %v8032_v14 = vadd.f32 %v7901_v62, %v2395_v4  ;;  %v9737_v4 = vld [vmem:[#allocation47_spill] sm:$0xff] }
 0x20d   :  { %v2809_v42 = vmul.f32 0.02, %v2666_v2  ;;  %v2668_v38 = vadd.f32 %v2667_v37, %v2555_v57  ;;  %v2557_v27 = vadd.f32 %v2556_v61, %v7908_v5  ;;  %vm2745_vm1 = vcmp.gt.f32.partialorder %v2666_v2, 0.0 }
 0x20e   :  { %v2560_v39 = vpop.f32.mrf.mxu0  ;;  %v2673_v28 = vpop.f32.mrf.mxu1  ;;  %v8040_v16 = vsel %vm2744_vm0, %v2664_v1, %v2808_v6  ;;  %v8043_v5 = vadd.f32 %v2513_v30, %v2401_v33  ;;  %v9738_v33 = vld [vmem:[#allocation48_spill] sm:$0xff] }
 0x20f   :  { %vm2748_vm2 = vcmp.gt.f32.partialorder %v2668_v38, 0.0  ;;  %v2812_v32 = vmul.f32 0.02, %v2668_v38  ;;  %v2670_v7 = vadd.f32 %v2669_v11, %v2557_v27  ;;  %v2561_v21 = vadd.f32 %v2560_v39, %v7911_v50 }
 0x210   :  { %v2562_v29 = vpop.f32.mrf.mxu0  ;;  %v2675_v62 = vpop.f32.mrf.mxu1  ;;  %v8045_v55 = vsel %vm2745_vm1, %v2666_v2, %v2809_v42  ;;  %v2935_v17 = vadd.f32 %v9736_v41, %v8040_v16  ;;  %v3016_v35 = vmul.f32 %v8040_v16, %v8040_v16 }
 0x211   :  { %v8051_v59 = vsel %vm2748_vm2, %v2668_v38, %v2812_v32  ;;  %vm2749_vm3 = vcmp.gt.f32.partialorder %v2670_v7, 0.0  ;;  %v2813_v56 = vmul.f32 0.02, %v2670_v7  ;;  %v2674_v25 = vadd.f32 %v2673_v28, %v2561_v21  ;;  %v9739_v21 = vld [vmem:[#allocation49_spill] sm:$0xff] }
 0x212   :  { %v2563_v40 = vadd.f32 %v2562_v29, %v7920_v26  ;;  %v2564_v50 = vpop.f32.mrf.mxu0  ;;  %v2677_v30 = vpop.f32.mrf.mxu1  ;;  %v2936_v1 = vadd.f32 %v2935_v17, %v8045_v55  ;;  %v3017_v22 = vmul.f32 %v8045_v55, %v8045_v55  ;;  %v3079_v12 = vadd.f32 %v9737_v4, %v3016_v35 }
 0x213   :  { %vm2752_vm4 = vcmp.gt.f32.partialorder %v2674_v25, 0.0  ;;  %v2816_v20 = vmul.f32 0.02, %v2674_v25  ;;  %v2565_v60 = vadd.f32 %v2564_v50, %v7931_v58  ;;  %v8059_v37 = vsel %vm2749_vm3, %v2670_v7, %v2813_v56 }
 0x214   :  { %v2676_v6 = vadd.f32 %v2675_v62, %v2563_v40  ;;  %2937 = vadd.xlane.f32.xlu0 %v2936_v1  ;;  %v2566_v2 = vpop.f32.mrf.mxu0  ;;  %v2679_v57 = vpop.f32.mrf.mxu1  ;;  %v3080_v26 = vadd.f32 %v3079_v12, %v3017_v22  ;;  %v2940_v61 = vadd.f32 %v9738_v33, %v8051_v59  ;;  %v3020_v11 = vmul.f32 %v8051_v59, %v8051_v59  ;;  %v9740_v40 = vld [vmem:[#allocation52_spill] sm:$0xff] }
 0x215   :  { %v8065_v42 = vsel %vm2752_vm4, %v2674_v25, %v2816_v20  ;;  %v2678_v38 = vadd.f32 %v2677_v30, %v2565_v60  ;;  %v2567_v27 = vadd.f32 %v2566_v2, %v7934_v13  ;;  %v3021_v58 = vmul.f32 %v8059_v37, %v8059_v37 }
 0x216   :  { %vm2753_vm5 = vcmp.gt.f32.partialorder %v2676_v6, 0.0  ;;  %v2817_v39 = vmul.f32 0.02, %v2676_v6  ;;  %3081 = vadd.xlane.f32.xlu1 %v3080_v26  ;;  %v2570_v28 = vpop.f32.mrf.mxu0  ;;  %v2941_v32 = vadd.f32 %v2940_v61, %v8059_v37  ;;  %v2683_v7 = vpop.f32.mrf.mxu1  ;;  %v3084_v29 = vadd.f32 %v9739_v21, %v3020_v11 }
 0x217   :  { %vm2756_vm6 = vcmp.gt.f32.partialorder %v2678_v38, 0.0  ;;  %v2820_v62 = vmul.f32 0.02, %v2678_v38  ;;  %v2680_v41 = vadd.f32 %v2679_v57, %v2567_v27  ;;  %v2571_v17 = vadd.f32 %v2570_v28, %v7941_v24 }
 0x218   :  { %2942 = vadd.xlane.f32.xlu0 %v2941_v32  ;;  %v2572_v35 = vpop.f32.mrf.mxu0  ;;  %v3085_v13 = vadd.f32 %v3084_v29, %v3021_v58  ;;  %v2685_v56 = vpop.f32.mrf.mxu1  ;;  %v8073_v25 = vsel %vm2753_vm5, %v2676_v6, %v2817_v39  ;;  %v2945_v50 = vadd.f32 %v9740_v40, %v8065_v42  ;;  %v3024_v30 = vmul.f32 %v8065_v42, %v8065_v42  ;;  %v9741_v6 = vld [vmem:[#allocation59_spill] sm:$0xff] }
 0x219   :  { %v8079_v1 = vsel %vm2756_vm6, %v2678_v38, %v2820_v62  ;;  %vm2757_vm7 = vcmp.gt.f32.partialorder %v2680_v41, 0.0  ;;  %v2821_v22 = vmul.f32 0.02, %v2680_v41  ;;  %v2684_v4 = vadd.f32 %v2683_v7, %v2571_v17  ;;  %v9742_v58 = vld [vmem:[#allocation55_spill] sm:$0xff] }
 0x21a   :  { %v2573_v12 = vadd.f32 %v2572_v35, %v7950_v46  ;;  %3086 = vadd.xlane.f32.xlu1 %v3085_v13  ;;  %v2574_v24 = vpop.f32.mrf.mxu0  ;;  %v2946_v20 = vadd.f32 %v2945_v50, %v8073_v25  ;;  %v2687_v60 = vpop.f32.mrf.mxu1  ;;  %v2950_v2 = vadd.f32 %v9741_v6, %v8079_v1  ;;  %v3025_v57 = vmul.f32 %v8073_v25, %v8073_v25  ;;  %v9743_v35 = vld [vmem:[#allocation60_spill] sm:$0xff] }
 0x21b   :  { %vm2760_vm8 = vcmp.gt.f32.partialorder %v2684_v4, 0.0  ;;  %v2824_v26 = vmul.f32 0.02, %v2684_v4  ;;  %v2575_v33 = vadd.f32 %v2574_v24, %v7959_v45  ;;  %v8088_v61 = vsel %vm2757_vm7, %v2680_v41, %v2821_v22  ;;  %v9744_v24 = vld [vmem:[#allocation62_spill] sm:$0xff] }
 0x21c   :  { %v2686_v11 = vadd.f32 %v2685_v56, %v2573_v12  ;;  %2947 = vadd.xlane.f32.xlu0 %v2946_v20  ;;  %v2576_v46 = vpop.f32.mrf.mxu0  ;;  %v2689_v38 = vpop.f32.mrf.mxu1  ;;  %v2951_v27 = vadd.f32 %v2950_v2, %v8088_v61  ;;  %v3089_v39 = vadd.f32 %v9742_v58, %v3024_v30  ;;  %v3028_v28 = vmul.f32 %v8079_v1, %v8079_v1  ;;  %v6538_v30 = vld [vmem:[#allocation9 + $0x4] ss:$8 sps:$4 sm:$0xff]   ;;  %v6536_v6 = vld [vmem:[#allocation9] ss:$8 sps:$4 sm:$0xff]  }
 0x21d   :  { %v8094_v32 = vsel %vm2760_vm8, %v2684_v4, %v2824_v26  ;;  %v2688_v7 = vadd.f32 %v2687_v60, %v2575_v33  ;;  %v2577_v21 = vadd.f32 %v2576_v46, %v7962_v49  ;;  %v3029_v45 = vmul.f32 %v8088_v61, %v8088_v61  ;;  %v6541_v2 = vld [vmem:[#allocation9 + $0x104] ss:$8 sps:$4 sm:$0xff]   ;;  %4012 = vmatprep.subr.bf16.mxu0 %v6538_v30  ;;  %v6539_v33 = vld [vmem:[#allocation9 + $0x100] ss:$8 sps:$4 sm:$0xff]  }
 0x21e   :  { %vm2761_vm9 = vcmp.gt.f32.partialorder %v2686_v11, 0.0  ;;  %v2825_v29 = vmul.f32 0.02, %v2686_v11  ;;  %v2580_v62 = vpop.f32.mrf.mxu0  ;;  %2952 = vadd.xlane.f32.xlu1 %v2951_v27  ;;  %v3090_v41 = vadd.f32 %v3089_v39, %v3025_v57  ;;  %v2693_v17 = vpop.f32.mrf.mxu1  ;;  %v3094_v13 = vadd.f32 %v9743_v35, %v3028_v28  ;;  %v9745_v58 = vld [vmem:[#allocation66_spill] sm:$0xff]  ;;  %4125 = vmatprep.subr.bf16.mxu1 %v6541_v2 }
 0x21f   :  { %vm2764_vm10 = vcmp.gt.f32.partialorder %v2688_v7, 0.0  ;;  %v2828_v56 = vmul.f32 0.02, %v2688_v7  ;;  %v2690_v40 = vadd.f32 %v2689_v38, %v2577_v21  ;;  %v2581_v50 = vadd.f32 %v2580_v62, %v7965_v36  ;;  %v6544_v62 = vld [vmem:[#allocation9 + $0xf4] ss:$8 sps:$4 sm:$0xff]   ;;  %4013 = vmatpush1.bf16.msra.mxu0 %v6536_v6  ;;  %4126 = vmatpush1.bf16.msra.mxu1 %v6539_v33  ;;  %v9748_v6 = vld [vmem:[#allocation69_spill] sm:$0xff] }
 0x220   :  { %3091 = vadd.xlane.f32.xlu0 %v3090_v41  ;;  %v2582_v22 = vpop.f32.mrf.mxu0  ;;  %v2695_v49 = vpop.f32.mrf.mxu1  ;;  %v3095_v4 = vadd.f32 %v3094_v13, %v3029_v45  ;;  %v8102_v12 = vsel %vm2761_vm9, %v2686_v11, %v2825_v29  ;;  %v2955_v20 = vadd.f32 %v9744_v24, %v8094_v32  ;;  %v3032_v60 = vmul.f32 %v8094_v32, %v8094_v32  ;;  %v6547_v41 = vld [vmem:[#allocation9 + $0x1f4] ss:$8 sps:$4 sm:$0xff]   ;;  %v6550_v33 = vld [vmem:[#allocation9 + $0xe4] ss:$8 sps:$4 sm:$0xff]  }
 0x221   :  { %v8108_v57 = vsel %vm2764_vm10, %v2688_v7, %v2828_v56  ;;  %vm2765_vm11 = vcmp.gt.f32.partialorder %v2690_v40, 0.0  ;;  %v2829_v36 = vmul.f32 0.02, %v2690_v40  ;;  %v2583_v26 = vadd.f32 %v2582_v22, %v7970_v52  ;;  %v9746_v52 = vld [vmem:[#allocation65_spill] sm:$0xff]  ;;  %4014 = vmatprep.subr.bf16.mxu0 %v6544_v62  ;;  %4127 = vmatprep.subr.bf16.mxu1 %v6547_v41 }
 0x222   :  { %v2694_v46 = vadd.f32 %v2693_v17, %v2581_v50  ;;  %v2584_v38 = vpop.f32.mrf.mxu0  ;;  %3096 = vadd.xlane.f32.xlu1 %v3095_v4  ;;  %v2956_v11 = vadd.f32 %v2955_v20, %v8102_v12  ;;  %v2697_v27 = vpop.f32.mrf.mxu1  ;;  %v2960_v39 = vadd.f32 %v9745_v58, %v8108_v57  ;;  %v3033_v28 = vmul.f32 %v8102_v12, %v8102_v12  ;;  %v6551_v41 = vld [vmem:[#allocation9 + $0x1e0] ss:$8 sps:$4 sm:$0xff]  }
 0x223   :  { %v2585_v7 = vadd.f32 %v2584_v38, %v7973_v15  ;;  %v2696_v21 = vadd.f32 %v2695_v49, %v2583_v26  ;;  %v8117_v45 = vsel %vm2765_vm11, %v2690_v40, %v2829_v36  ;;  %v3099_v29 = vadd.f32 %v9746_v52, %v3032_v60  ;;  %v6542_v15 = vld [vmem:[#allocation9 + $0xf0] ss:$8 sps:$4 sm:$0xff]   ;;  %v6553_v52 = vld [vmem:[#allocation9 + $0x1e4] ss:$8 sps:$4 sm:$0xff]  }
 0x224   :  { %vm2768_vm12 = vcmp.gt.f32.partialorder %v2694_v46, 0.0  ;;  %v2832_v17 = vmul.f32 0.02, %v2694_v46  ;;  %2957 = vadd.xlane.f32.xlu0 %v2956_v11  ;;  %v2586_v35 = vpop.f32.mrf.mxu0  ;;  %v2699_v13 = vpop.f32.mrf.mxu1  ;;  %v2961_v56 = vadd.f32 %v2960_v39, %v8117_v45  ;;  %v3036_v50 = vmul.f32 %v8108_v57, %v8108_v57  ;;  %v6545_v49 = vld [vmem:[#allocation9 + $0x1f0] ss:$8 sps:$4 sm:$0xff]   ;;  %4015 = vmatpush2.bf16.msra.mxu0 %v6542_v15 }
 0x225   :  { %vm2769_vm13 = vcmp.gt.f32.partialorder %v2696_v21, 0.0  ;;  %v2833_v40 = vmul.f32 0.02, %v2696_v21  ;;  %v2587_v30 = vadd.f32 %v2586_v35, %v7980_v9  ;;  %v2698_v22 = vadd.f32 %v2697_v27, %v2585_v7  ;;  %v6548_v7 = vld [vmem:[#allocation9 + $0xe0] ss:$8 sps:$4 sm:$0xff]   ;;  %4128 = vmatpush2.bf16.msra.mxu1 %v6545_v49  ;;  %4016 = vmatprep.subr.bf16.mxu0 %v6550_v33 }
 0x226   :  { %v8125_v4 = vsel %vm2768_vm12, %v2694_v46, %v2832_v17  ;;  %v2590_v24 = vpop.f32.mrf.mxu0  ;;  %2962 = vadd.xlane.f32.xlu1 %v2961_v56  ;;  %v3100_v20 = vadd.f32 %v3099_v29, %v3033_v28  ;;  %v2703_v60 = vpop.f32.mrf.mxu1  ;;  %v3037_v2 = vmul.f32 %v8117_v45, %v8117_v45  ;;  %v3104_v36 = vadd.f32 %v9748_v6, %v3036_v50  ;;  %v6556_v49 = vld [vmem:[#allocation9 + $0xd4] ss:$8 sps:$4 sm:$0xff]   ;;  %v6557_v33 = vld [vmem:[#allocation9 + $0x1d0] ss:$8 sps:$4 sm:$0xff]  }
 0x227   :  { %9747 = vst [vmem:[#allocation25_spill] sm:$0xff] %v8125_v4  ;;  %vm2772_vm14 = vcmp.gt.f32.partialorder %v2698_v22, 0.0  ;;  %v2836_v26 = vmul.f32 0.02, %v2698_v22  ;;  %v2591_v9 = vadd.f32 %v2590_v24, %v7983_v10  ;;  %v2700_v38 = vadd.f32 %v2699_v13, %v2587_v30  ;;  %v9751_v13 = vld [vmem:[#allocation72_spill] sm:$0xff]  ;;  %4129 = vmatprep.subr.bf16.mxu1 %v6553_v52  ;;  %v9754_v52 = vld [vmem:[#allocation73_spill] sm:$0xff] }
 0x228   :  { %3101 = vadd.xlane.f32.xlu0 %v3100_v20  ;;  %v2592_v11 = vpop.f32.mrf.mxu0  ;;  %v2705_v46 = vpop.f32.mrf.mxu1  ;;  %v3105_v27 = vadd.f32 %v3104_v36, %v3037_v2  ;;  %v8132_v58 = vsel %vm2769_vm13, %v2696_v21, %v2833_v40  ;;  %v2965_v39 = vadd.f32 %v7690_v63, %v8125_v4  ;;  %v3040_v28 = vmul.f32 %v8125_v4, %v8125_v4  ;;  %v6559_v24 = vld [vmem:[#allocation9 + $0x1d4] ss:$8 sps:$4 sm:$0xff]  }
 0x229   :  { %9749 = vst [vmem:[#allocation26_spill] sm:$0xff] %v8132_v58  ;;  %v8138_v29 = vsel %vm2772_vm14, %v2698_v22, %v2836_v26  ;;  %vm2773_vm15 = vcmp.gt.f32.partialorder %v2700_v38, 0.0  ;;  %v2837_v10 = vmul.f32 0.02, %v2700_v38  ;;  %v2593_v62 = vadd.f32 %v2592_v11, %v7986_v19  ;;  %v9753_v19 = vld [vmem:[#allocation71_spill] sm:$0xff]  ;;  %4017 = vmatpush2.bf16.msra.mxu0 %v6548_v7  ;;  %4130 = vmatpush2.bf16.msra.mxu1 %v6551_v41 }
 0x22a   :  { %9750 = vst [vmem:[#allocation28_spill] sm:$0xff] %v8138_v29  ;;  %v2704_v17 = vadd.f32 %v2703_v60, %v2591_v9  ;;  %v2594_v21 = vpop.f32.mrf.mxu0  ;;  %3106 = vadd.xlane.f32.xlu1 %v3105_v27  ;;  %v2966_v35 = vadd.f32 %v2965_v39, %v8132_v58  ;;  %v2707_v63 = vpop.f32.mrf.mxu1  ;;  %v2970_v56 = vadd.f32 %v9751_v13, %v8138_v29  ;;  %v6562_v7 = vld [vmem:[#allocation9 + $0xc4] ss:$8 sps:$4 sm:$0xff]  }
 0x22b   :  { %v3041_v50 = vmul.f32 %v8132_v58, %v8132_v58  ;;  %v2595_v40 = vadd.f32 %v2594_v21, %v7991_v34  ;;  %v2706_v30 = vadd.f32 %v2705_v46, %v2593_v62  ;;  %v8147_v22 = vsel %vm2773_vm15, %v2700_v38, %v2837_v10  ;;  %v6554_v34 = vld [vmem:[#allocation9 + $0xd0] ss:$8 sps:$4 sm:$0xff]   ;;  %4018 = vmatprep.subr.bf16.mxu0 %v6556_v49 }
 0x22c   :  { %9752 = vst [vmem:[#allocation32_spill] sm:$0xff] %v8147_v22  ;;  %v3109_v15 = vadd.f32 %v9753_v19, %v3040_v28  ;;  %vm2776_vm0 = vcmp.gt.f32.partialorder %v2704_v17, 0.0  ;;  %v2840_v20 = vmul.f32 0.02, %v2704_v17  ;;  %2967 = vadd.xlane.f32.xlu0 %v2966_v35  ;;  %v2596_v60 = vpop.f32.mrf.mxu0  ;;  %v2709_v2 = vpop.f32.mrf.mxu1  ;;  %v2971_v6 = vadd.f32 %v2970_v56, %v8147_v22  ;;  %4131 = vmatprep.subr.bf16.mxu1 %v6559_v24  ;;  %v9756_v13 = vld [vmem:[#allocation74_spill] sm:$0xff] }
 0x22d   :  { %v3044_v36 = vmul.f32 %v8138_v29, %v8138_v29  ;;  %vm2777_vm1 = vcmp.gt.f32.partialorder %v2706_v30, 0.0  ;;  %v2841_v26 = vmul.f32 0.02, %v2706_v30  ;;  %v2597_v9 = vadd.f32 %v2596_v60, %v7994_v18  ;;  %v6565_v19 = vld [vmem:[#allocation9 + $0x1c4] ss:$8 sps:$4 sm:$0xff]   ;;  %4019 = vmatpush2.bf16.msra.mxu0 %v6554_v34  ;;  %4132 = vmatpush2.bf16.msra.mxu1 %v6557_v33 }
 0x22e   :  { %v2708_v38 = vadd.f32 %v2707_v63, %v2595_v40  ;;  %v8155_v11 = vsel %vm2776_vm0, %v2704_v17, %v2840_v20  ;;  %v2600_v46 = vpop.f32.mrf.mxu0  ;;  %2972 = vadd.xlane.f32.xlu1 %v2971_v6  ;;  %v3110_v27 = vadd.f32 %v3109_v15, %v3041_v50  ;;  %v2713_v39 = vpop.f32.mrf.mxu1  ;;  %v3045_v28 = vmul.f32 %v8147_v22, %v8147_v22  ;;  %v6560_v40 = vld [vmem:[#allocation9 + $0xc0] ss:$8 sps:$4 sm:$0xff]   ;;  %v6568_v33 = vld [vmem:[#allocation9 + $0xb4] ss:$8 sps:$4 sm:$0xff]  }
 0x22f   :  { %v3114_v10 = vadd.f32 %v9754_v52, %v3044_v36  ;;  %v2601_v18 = vadd.f32 %v2600_v46, %v7997_v0  ;;  %v2710_v21 = vadd.f32 %v2709_v2, %v2597_v9  ;;  %v8162_v63 = vsel %vm2777_vm1, %v2706_v30, %v2841_v26  ;;  %v6563_v24 = vld [vmem:[#allocation9 + $0x1c0] ss:$8 sps:$4 sm:$0xff]   ;;  %4020 = vmatprep.subr.bf16.mxu0 %v6562_v7  ;;  %v6569_v7 = vld [vmem:[#allocation9 + $0x1b0] ss:$8 sps:$4 sm:$0xff]  }
 0x230   :  { %vm2780_vm2 = vcmp.gt.f32.partialorder %v2708_v38, 0.0  ;;  %v2844_v62 = vmul.f32 0.02, %v2708_v38  ;;  %3111 = vadd.xlane.f32.xlu0 %v3110_v27  ;;  %v2602_v41 = vpop.f32.mrf.mxu0  ;;  %v2715_v17 = vpop.f32.mrf.mxu1  ;;  %9755 = vst [vmem:[#allocation34_spill] sm:$0xff] %v8162_v63  ;;  %v2975_v56 = vadd.f32 %v9756_v13, %v8155_v11  ;;  %v3048_v50 = vmul.f32 %v8155_v11, %v8155_v11  ;;  %v9757_v6 = vld [vmem:[#allocation22_spill] sm:$0xff]  ;;  %4133 = vmatprep.subr.bf16.mxu1 %v6565_v19  ;;  %v9761_v19 = vld [vmem:[#allocation23_spill] sm:$0xff] }
 0x231   :  { %v3115_v35 = vadd.f32 %v3114_v10, %v3045_v28  ;;  %vm2781_vm3 = vcmp.gt.f32.partialorder %v2710_v21, 0.0  ;;  %v2845_v15 = vmul.f32 0.02, %v2710_v21  ;;  %v2603_v49 = vadd.f32 %v2602_v41, %v8000_v51  ;;  %v9759_v51 = vld [vmem:[#allocation21_spill] sm:$0xff]  ;;  %v6571_v27 = vld [vmem:[#allocation9 + $0x1b4] ss:$8 sps:$4 sm:$0xff]   ;;  %4021 = vmatpush2.bf16.msra.mxu0 %v6560_v40  ;;  %4134 = vmatpush2.bf16.msra.mxu1 %v6563_v24 }
 0x232   :  { %v8169_v0 = vsel %vm2780_vm2, %v2708_v38, %v2844_v62  ;;  %v2714_v30 = vadd.f32 %v2713_v39, %v2601_v18  ;;  %v2604_v20 = vpop.f32.mrf.mxu0  ;;  %v2976_v60 = vadd.f32 %v2975_v56, %v8162_v63  ;;  %v2717_v2 = vpop.f32.mrf.mxu1  ;;  %v3049_v26 = vmul.f32 %v8162_v63, %v8162_v63  ;;  %4022 = vmatprep.subr.bf16.mxu0 %v6568_v33  ;;  %v6574_v40 = vld [vmem:[#allocation9 + $0xa4] ss:$8 sps:$4 sm:$0xff]  }
 0x233   :  { %3116 = vadd.xlane.f32.xlu1 %v3115_v35  ;;  %v2980_v36 = vadd.f32 %v9757_v6, %v8169_v0  ;;  %v2605_v9 = vadd.f32 %v2604_v20, %v8008_v3  ;;  %v2716_v38 = vadd.f32 %v2715_v17, %v2603_v49  ;;  %v8178_v46 = vsel %vm2781_vm3, %v2710_v21, %v2845_v15  ;;  %v6566_v3 = vld [vmem:[#allocation9 + $0xb0] ss:$8 sps:$4 sm:$0xff]  }
 0x234   :  { %9758 = vst [vmem:[#allocation38_spill] sm:$0xff] %v8178_v46  ;;  %v3119_v34 = vadd.f32 %v9759_v51, %v3048_v50  ;;  %vm2784_vm4 = vcmp.gt.f32.partialorder %v2714_v30, 0.0  ;;  %v2848_v39 = vmul.f32 0.02, %v2714_v30  ;;  %2977 = vadd.xlane.f32.xlu0 %v2976_v60  ;;  %v2606_v28 = vpop.f32.mrf.mxu0  ;;  %v2719_v52 = vpop.f32.mrf.mxu1  ;;  %v3052_v62 = vmul.f32 %v8169_v0, %v8169_v0  ;;  %4135 = vmatprep.subr.bf16.mxu1 %v6571_v27  ;;  %v9763_v6 = vld [vmem:[#allocation83_spill] sm:$0xff]  ;;  %v9797_v58 = vld [vmem:[#allocation58_spill] sm:$0xff] }
 0x235   :  { %v2981_v10 = vadd.f32 %v2980_v36, %v8178_v46  ;;  %vm2785_vm5 = vcmp.gt.f32.partialorder %v2716_v38, 0.0  ;;  %v2849_v18 = vmul.f32 0.02, %v2716_v38  ;;  %v2607_v21 = vadd.f32 %v2606_v28, %v8011_v23  ;;  %v6577_v51 = vld [vmem:[#allocation9 + $0x1a4] ss:$8 sps:$4 sm:$0xff]   ;;  %4023 = vmatpush2.bf16.msra.mxu0 %v6566_v3  ;;  %4136 = vmatpush2.bf16.msra.mxu1 %v6569_v7 }
 0x236   :  { %v2718_v41 = vadd.f32 %v2717_v2, %v2605_v9  ;;  %v8186_v17 = vsel %vm2784_vm4, %v2714_v30, %v2848_v39  ;;  %v2610_v35 = vpop.f32.mrf.mxu0  ;;  %v3120_v13 = vadd.f32 %v3119_v34, %v3049_v26  ;;  %v2723_v56 = vpop.f32.mrf.mxu1  ;;  %v3053_v50 = vmul.f32 %v8178_v46, %v8178_v46  ;;  %v6572_v9 = vld [vmem:[#allocation9 + $0xa0] ss:$8 sps:$4 sm:$0xff]   ;;  %4024 = vmatprep.subr.bf16.mxu0 %v6574_v40  ;;  %v6580_v7 = vld [vmem:[#allocation9 + $0x94] ss:$8 sps:$4 sm:$0xff]   ;;  %v6581_v40 = vld [vmem:[#allocation9 + $0x190] ss:$8 sps:$4 sm:$0xff]  }
 0x237   :  { %9760 = vst [vmem:[#allocation42_spill] sm:$0xff] %v8186_v17  ;;  %2982 = vadd.xlane.f32.xlu1 %v2981_v10  ;;  %v3124_v15 = vadd.f32 %v9761_v19, %v3052_v62  ;;  %v2611_v23 = vadd.f32 %v2610_v35, %v8014_v44  ;;  %v2720_v20 = vadd.f32 %v2719_v52, %v2607_v21  ;;  %v6575_v27 = vld [vmem:[#allocation9 + $0x1a0] ss:$8 sps:$4 sm:$0xff]  }
 0x238   :  { %vm2788_vm6 = vcmp.gt.f32.partialorder %v2718_v41, 0.0  ;;  %v2852_v49 = vmul.f32 0.02, %v2718_v41  ;;  %3121 = vadd.xlane.f32.xlu0 %v3120_v13  ;;  %v2612_v24 = vpop.f32.mrf.mxu0  ;;  %v2725_v30 = vpop.f32.mrf.mxu1  ;;  %v8193_v2 = vsel %vm2785_vm5, %v2716_v38, %v2849_v18  ;;  %v2985_v36 = vadd.f32 %v9763_v6, %v8186_v17  ;;  %v9764_v10 = vld [vmem:[#allocation89_spill] sm:$0xff]  ;;  %v6583_v13 = vld [vmem:[#allocation9 + $0x194] ss:$8 sps:$4 sm:$0xff]   ;;  %4137 = vmatprep.subr.bf16.mxu1 %v6577_v51 }
 0x239   :  { %v3125_v60 = vadd.f32 %v3124_v15, %v3053_v50  ;;  %9762 = vst [vmem:[#allocation45_spill] sm:$0xff] %v8193_v2  ;;  %v3056_v26 = vmul.f32 %v8186_v17, %v8186_v17  ;;  %vm2789_vm7 = vcmp.gt.f32.partialorder %v2720_v20, 0.0  ;;  %v2853_v34 = vmul.f32 0.02, %v2720_v20  ;;  %4025 = vmatpush2.bf16.msra.mxu0 %v6572_v9  ;;  %4138 = vmatpush2.bf16.msra.mxu1 %v6575_v27  ;;  %v9767_v51 = vld [vmem:[#allocation90_spill] sm:$0xff] }
 0x23a   :  { %v8200_v44 = vsel %vm2788_vm6, %v2718_v41, %v2852_v49  ;;  %v2613_v33 = vadd.f32 %v2612_v24, %v8021_v8  ;;  %v2724_v38 = vadd.f32 %v2723_v56, %v2611_v23  ;;  %v2614_v39 = vpop.f32.mrf.mxu0  ;;  %v2986_v28 = vadd.f32 %v2985_v36, %v8193_v2  ;;  %v2727_v52 = vpop.f32.mrf.mxu1  ;;  %v9766_v8 = vld [vmem:[#allocation85_spill] sm:$0xff]  ;;  %4026 = vmatprep.subr.bf16.mxu0 %v6580_v7 }
 0x23b   :  { %3126 = vadd.xlane.f32.xlu1 %v3125_v60  ;;  %v2990_v62 = vadd.f32 %v9764_v10, %v8200_v44  ;;  %v3057_v18 = vmul.f32 %v8193_v2, %v8193_v2  ;;  %v2615_v21 = vadd.f32 %v2614_v39, %v8024_v54  ;;  %v8209_v35 = vsel %vm2789_vm7, %v2720_v20, %v2853_v34  ;;  %v6578_v54 = vld [vmem:[#allocation9 + $0x90] ss:$8 sps:$4 sm:$0xff]   ;;  %v6586_v9 = vld [vmem:[#allocation9 + $0x84] ss:$8 sps:$4 sm:$0xff]  }
 0x23c   :  { %v2726_v41 = vadd.f32 %v2725_v30, %v2613_v33  ;;  %9765 = vst [vmem:[#allocation53_spill] sm:$0xff] %v8209_v35  ;;  %v3129_v3 = vadd.f32 %v9766_v8, %v3056_v26  ;;  %vm2792_vm8 = vcmp.gt.f32.partialorder %v2724_v38, 0.0  ;;  %v2856_v56 = vmul.f32 0.02, %v2724_v38  ;;  %2987 = vadd.xlane.f32.xlu0 %v2986_v28  ;;  %v2616_v50 = vpop.f32.mrf.mxu0  ;;  %v2729_v19 = vpop.f32.mrf.mxu1  ;;  %4139 = vmatprep.subr.bf16.mxu1 %v6583_v13  ;;  %v9769_v10 = vld [vmem:[#allocation91_spill] sm:$0xff] }
 0x23d   :  { %v2991_v15 = vadd.f32 %v2990_v62, %v8209_v35  ;;  %v3060_v49 = vmul.f32 %v8200_v44, %v8200_v44  ;;  %v2617_v20 = vadd.f32 %v2616_v50, %v8027_v53  ;;  %v2728_v24 = vadd.f32 %v2727_v52, %v2615_v21  ;;  %v6584_v21 = vld [vmem:[#allocation9 + $0x80] ss:$8 sps:$4 sm:$0xff]   ;;  %v6589_v8 = vld [vmem:[#allocation9 + $0x184] ss:$8 sps:$4 sm:$0xff]   ;;  %4027 = vmatpush2.bf16.msra.mxu0 %v6578_v54 }
 0x23e   :  { %vm2793_vm9 = vcmp.gt.f32.partialorder %v2726_v41, 0.0  ;;  %v2857_v23 = vmul.f32 0.02, %v2726_v41  ;;  %v8217_v30 = vsel %vm2792_vm8, %v2724_v38, %v2856_v56  ;;  %v2620_v60 = vpop.f32.mrf.mxu0  ;;  %v3130_v6 = vadd.f32 %v3129_v3, %v3057_v18  ;;  %v2733_v36 = vpop.f32.mrf.mxu1  ;;  %4140 = vmatpush2.bf16.msra.mxu1 %v6581_v40  ;;  %v6587_v13 = vld [vmem:[#allocation9 + $0x180] ss:$8 sps:$4 sm:$0xff]   ;;  %4028 = vmatprep.subr.bf16.mxu0 %v6586_v9 }
 0x23f   :  { %2992 = vadd.xlane.f32.xlu1 %v2991_v15  ;;  %v3061_v26 = vmul.f32 %v8209_v35, %v8209_v35  ;;  %v3134_v34 = vadd.f32 %v9767_v51, %v3060_v49  ;;  %vm2796_vm10 = vcmp.gt.f32.partialorder %v2728_v24, 0.0  ;;  %v2860_v33 = vmul.f32 0.02, %v2728_v24  ;;  %4141 = vmatprep.subr.bf16.mxu1 %v6589_v8 }
 0x240   :  { %v2621_v53 = vadd.f32 %v2620_v60, %v8032_v14  ;;  %v2730_v39 = vadd.f32 %v2729_v19, %v2617_v20  ;;  %3131 = vadd.xlane.f32.xlu0 %v3130_v6  ;;  %v2622_v27 = vpop.f32.mrf.mxu0  ;;  %v2735_v38 = vpop.f32.mrf.mxu1  ;;  %v8224_v52 = vsel %vm2793_vm9, %v2726_v41, %v2857_v23  ;;  %v2995_v62 = vadd.f32 %v9769_v10, %v8217_v30 }
 0x241   :  { %v3135_v28 = vadd.f32 %v3134_v34, %v3061_v26  ;;  %9768 = vst [vmem:[#allocation68_spill] sm:$0xff] %v8224_v52  ;;  %v3064_v18 = vmul.f32 %v8217_v30, %v8217_v30  ;;  %v8231_v14 = vsel %vm2796_vm10, %v2728_v24, %v2860_v33  ;;  %v2623_v7 = vadd.f32 %v2622_v27, %v8035_v47  ;;  %v9771_v47 = vld [vmem:[#allocation92_spill] sm:$0xff] }
 0x242   :  { %vm2797_vm11 = vcmp.gt.f32.partialorder %v2730_v39, 0.0  ;;  %v2861_v3 = vmul.f32 0.02, %v2730_v39  ;;  %v2734_v41 = vadd.f32 %v2733_v36, %v2621_v53  ;;  %v2624_v56 = vpop.f32.mrf.mxu0  ;;  %v2996_v50 = vadd.f32 %v2995_v62, %v8224_v52  ;;  %v2737_v19 = vpop.f32.mrf.mxu1  ;;  %4029 = vmatpush2.bf16.msra.mxu0 %v6584_v21  ;;  %4142 = vmatpush2.bf16.msra.mxu1 %v6587_v13  ;;  %v9776_v21 = vld [vmem:[#allocation24_spill] sm:$0xff] }
 0x243   :  { %3136 = vadd.xlane.f32.xlu1 %v3135_v28  ;;  %v3000_v15 = vadd.f32 %v7872_v43, %v8231_v14  ;;  %v3065_v49 = vmul.f32 %v8224_v52, %v8224_v52  ;;  %v2625_v23 = vadd.f32 %v2624_v56, %v8037_v31  ;;  %v2736_v20 = vadd.f32 %v2735_v38, %v2623_v7  ;;  %v9778_v56 = vld [vmem:[#allocation37_spill] sm:$0xff] }
 0x244   :  { %v8240_v24 = vsel %vm2797_vm11, %v2730_v39, %v2861_v3  ;;  %v3139_v54 = vadd.f32 %v9771_v47, %v3064_v18  ;;  %vm2800_vm12 = vcmp.gt.f32.partialorder %v2734_v41, 0.0  ;;  %v2864_v40 = vmul.f32 0.02, %v2734_v41  ;;  %2997 = vadd.xlane.f32.xlu0 %v2996_v50  ;;  %v2626_v60 = vpop.f32.mrf.mxu0  ;;  %v2739_v6 = vpop.f32.mrf.mxu1  ;;  %v9773_v39 = vld [vmem:[#allocation27_spill] sm:$0xff] }
 0x245   :  { %9770 = vst [vmem:[#allocation20_spill] sm:$0xff] %v8240_v24  ;;  %v3001_v36 = vadd.f32 %v3000_v15, %v8240_v24  ;;  %v3068_v43 = vmul.f32 %v8231_v14, %v8231_v14  ;;  %vm2801_vm13 = vcmp.gt.f32.partialorder %v2736_v20, 0.0  ;;  %v2865_v26 = vmul.f32 0.02, %v2736_v20 }
 0x246   :  { %v2627_v31 = vadd.f32 %v2626_v60, %v8043_v5  ;;  %v2738_v51 = vadd.f32 %v2737_v19, %v2625_v23  ;;  %v8247_v34 = vsel %vm2800_vm12, %v2734_v41, %v2864_v40  ;;  %v3140_v33 = vadd.f32 %v3139_v54, %v3065_v49  ;;  %v9775_v5 = vld [vmem:[#allocation31_spill] sm:$0xff]  ;;  %v9779_v19 = vld [vmem:[#allocation33_spill] sm:$0xff] }
 0x247   :  { %9772 = vst [vmem:[#allocation43_spill] sm:$0xff] %v8247_v34  ;;  %3002 = vadd.xlane.f32.xlu1 %v3001_v36  ;;  %v3069_v53 = vmul.f32 %v8240_v24, %v8240_v24  ;;  %v3144_v9 = vadd.f32 %v9773_v39, %v3068_v43  ;;  %v8252_v28 = vsel %vm2801_vm13, %v2736_v20, %v2865_v26 }
 0x248   :  { %vm2804_vm14 = vcmp.gt.f32.partialorder %v2738_v51, 0.0  ;;  %v2868_v27 = vmul.f32 0.02, %v2738_v51  ;;  %v2740_v38 = vadd.f32 %v2739_v6, %v2627_v31  ;;  %9774 = vst [vmem:[#allocation47_spill] sm:$0xff] %v8252_v28  ;;  %3141 = vadd.xlane.f32.xlu0 %v3140_v33  ;;  %v3005_v62 = vadd.f32 %v9775_v5, %v8247_v34 }
 0x249   :  { %v3145_v10 = vadd.f32 %v3144_v9, %v3069_v53  ;;  %v3072_v18 = vmul.f32 %v8247_v34, %v8247_v34  ;;  %v3153_v8 = vadd.f32 %v7917_v48, %v9776_v21  ;;  %v3073_v13 = vmul.f32 %v8252_v28, %v8252_v28 }
 0x24a   :  { %v8260_v3 = vsel %vm2804_vm14, %v2738_v51, %v2868_v27  ;;  %vm2805_vm15 = vcmp.gt.f32.partialorder %v2740_v38, 0.0  ;;  %v2869_v7 = vmul.f32 0.02, %v2740_v38  ;;  %v3006_v41 = vadd.f32 %v3005_v62, %v8252_v28  ;;  %v3398_v62 = vld [vmem:[#allocation8] sm:$0xf] }
 0x24b   :  { %9777 = vst [vmem:[#allocation48_spill] sm:$0xff] %v8260_v3  ;;  %3146 = vadd.xlane.f32.xlu1 %v3145_v10  ;;  %v3010_v50 = vadd.f32 %v9778_v56, %v8260_v3  ;;  %v3149_v15 = vadd.f32 %v9779_v19, %v3072_v18  ;;  %v3076_v49 = vmul.f32 %v8260_v3, %v8260_v3  ;;  %v9781_v56 = vld [vmem:[#allocation18_spill] sm:$0xff]  ;;  %v9782_v19 = vld [vmem:[#allocation19_spill] sm:$0xff] }
 0x24c   :  { %v8270_v23 = vsel %vm2805_vm15, %v2740_v38, %v2869_v7  ;;  %3007 = vadd.xlane.f32.xlu0 %v3006_v41 }
 0x24d   :  { %9780 = vst [vmem:[#allocation49_spill] sm:$0xff] %v8270_v23  ;;  %v3011_v48 = vadd.f32 %v3010_v50, %v8270_v23  ;;  %v3077_v20 = vmul.f32 %v8270_v23, %v8270_v23  ;;  %v3154_v47 = vadd.f32 %v3153_v8, %v3076_v49  ;;  %v3150_v54 = vadd.f32 %v3149_v15, %v3073_v13  ;;  %v3484_v8 = vld [vmem:[%s9532_s4] sm:$0xf]  ;;  %v9783_v49 = vld [vmem:[#allocation29_spill] sm:$0xff]  ;;  %v9793_v23 = vld [vmem:[#allocation51_spill] sm:$0xff] }
 0x24e   :  { %v8291_v50 = vrot.slane %v3398_v62, %v9781_v56  ;;  %v8294_v15 = vrot.slane %v3398_v62, %v9782_v19 }
 0x24f   :  { %3012 = vadd.xlane.f32.xlu1 %v3011_v48  ;;  %v3155_v40 = vadd.f32 %v3154_v47, %v3077_v20  ;;  %v8297_v48 = vrot.slane %v3398_v62, %v9783_v49 }
 0x250   :  { %3151 = vadd.xlane.f32.xlu0 %v3150_v54  ;;  %v8302_v54 = vrot.slane %v3484_v8, %v9781_v56 }
 0x253   :  { %3156 = vadd.xlane.f32.xlu1 %v3155_v40  ;;  %v8305_v40 = vrot.slane %v3484_v8, %v9782_v19 }
 0x29d   :  { %v2938_v60 = vpop.xlane.xlu0 %2937 }
 0x29e   :  { %v8275_v6 = vmul.f32 0.001953125, %v2938_v60 }
 0x29f   :  { %v3082_v36 = vpop.xlane.xlu1 %3081 }
 0x2a0   :  { %v3174_v43 = vmul.f32 0.001953125, %v3082_v36  ;;  %v3190_v26 = vmul.f32 %v8275_v6, %v8275_v6 }
 0x2a1   :  { %v2943_v31 = vpop.xlane.xlu0 %2942 }
 0x2a2   :  { %v3206_v51 = vsub.f32 %v3174_v43, %v3190_v26  ;;  %v8279_v33 = vmul.f32 0.001953125, %v2943_v31  ;;  %v8308_v43 = vrot.slane %v3484_v8, %v9783_v49  ;;  %v9784_v26 = vld [vmem:[#allocation30_spill] sm:$0xff] }
 0x2a3   :  { %v3087_v53 = vpop.xlane.xlu1 %3086  ;;  %v8311_v31 = vrot.slane %v3398_v62, %v9784_v26 }
 0x2a4   :  { %v3222_v39 = vmax.f32 %v3206_v51, 0.0  ;;  %v3175_v9 = vmul.f32 0.001953125, %v3087_v53  ;;  %v3191_v27 = vmul.f32 %v8279_v33, %v8279_v33  ;;  %v8314_v51 = vrot.slane %v3484_v8, %v9784_v26  ;;  %v9785_v53 = vld [vmem:[#allocation35_spill] sm:$0xff] }
 0x2a5   :  { %v2948_v38 = vpop.xlane.xlu0 %2947  ;;  %v3241_v8 = vsub.f32 %v8045_v55, %v8275_v6  ;;  %v9794_v55 = vld [vmem:[#allocation54_spill] sm:$0xff] }
 0x2a6   :  { %v3302_v10 = vadd.f32 1e-05, %v3222_v39  ;;  %v8283_v5 = vmul.f32 0.001953125, %v2948_v38  ;;  %v3207_v18 = vsub.f32 %v3175_v9, %v3191_v27  ;;  %v3238_v39 = vsub.f32 %v9785_v53, %v8275_v6  ;;  %v9789_v53 = vld [vmem:[#allocation39_spill] sm:$0xff] }
 0x2a7   :  { %v2953_v21 = vpop.xlane.xlu1 %2952 }
 0x2a8   :  { %6606 = vrsqrt.f32 %v3302_v10  ;;  %v8288_v7 = vmul.f32 0.001953125, %v2953_v21  ;;  %v3223_v13 = vmax.f32 %v3207_v18, 0.0  ;;  %v3192_v20 = vmul.f32 %v8283_v5, %v8283_v5  ;;  %v9786_v21 = vld [vmem:[#allocation36_spill] sm:$0xff] }
 0x2a9   :  { %v3092_v41 = vpop.xlane.xlu0 %3091  ;;  %v3240_v10 = vsub.f32 %v8040_v16, %v8275_v6  ;;  %v3239_v62 = vsub.f32 %v9786_v21, %v8275_v6  ;;  %v9788_v16 = vld [vmem:[#allocation41_spill] sm:$0xff]  ;;  %v3243_v21 = vsub.f32 %v9789_v53, %v8279_v33  ;;  %v9792_v6 = vld [vmem:[#allocation46_spill] sm:$0xff] }
 0x2aa   :  { %v3176_v47 = vmul.f32 0.001953125, %v3092_v41  ;;  %v3303_v60 = vadd.f32 1e-05, %v3223_v13  ;;  %v3193_v27 = vmul.f32 %v8288_v7, %v8288_v7  ;;  %v9787_v13 = vld [vmem:[#allocation40_spill] sm:$0xff]  ;;  %v9795_v41 = vld [vmem:[#allocation57_spill] sm:$0xff] }
 0x2ab   :  { %v3097_v36 = vpop.xlane.xlu1 %3096 }
 0x2ac   :  { %v3208_v9 = vsub.f32 %v3176_v47, %v3192_v20  ;;  %v3177_v38 = vmul.f32 0.001953125, %v3097_v36  ;;  %6608 = vrsqrt.f32 %v3303_v60  ;;  %v9791_v36 = vld [vmem:[#allocation50_spill] sm:$0xff] }
 0x2ad   :  { %v2958_v18 = vpop.xlane.xlu0 %2957 }
 0x2ae   :  { %v3224_v49 = vmax.f32 %v3208_v9, 0.0  ;;  %v3209_v20 = vsub.f32 %v3177_v38, %v3193_v27  ;;  %v8328_v47 = vmul.f32 0.001953125, %v2958_v18  ;;  %v9790_v38 = vld [vmem:[#allocation44_spill] sm:$0xff] }
 0x2af   :  { %v2963_v26 = vpop.xlane.xlu1 %2962 }
 0x2b0   :  { %v3304_v9 = vadd.f32 1e-05, %v3224_v49  ;;  %v3225_v27 = vmax.f32 %v3209_v20, 0.0  ;;  %v8346_v19 = vmul.f32 0.001953125, %v2963_v26  ;;  %v3194_v49 = vmul.f32 %v8328_v47, %v8328_v47 }
 0x2b1   :  { %v3102_v53 = vpop.xlane.xlu0 %3101 }
 0x2b2   :  { %v3305_v56 = vadd.f32 1e-05, %v3225_v27  ;;  %v3178_v20 = vmul.f32 0.001953125, %v3102_v53  ;;  %6610 = vrsqrt.f32 %v3304_v9  ;;  %v3195_v53 = vmul.f32 %v8346_v19, %v8346_v19 }
 0x2b3   :  { %v3107_v26 = vpop.xlane.xlu1 %3106 }
 0x2b4   :  { %v3210_v24 = vsub.f32 %v3178_v20, %v3194_v49  ;;  %v3179_v52 = vmul.f32 0.001953125, %v3107_v26  ;;  %6612 = vrsqrt.f32 %v3305_v56  ;;  %v9796_v56 = vld [vmem:[#allocation56_spill] sm:$0xff] }
 0x2b5   :  { %v6607_v18 = vpop.eup %6606  ;;  %v2968_v2 = vpop.xlane.xlu0 %2967 }
 0x2b6   :  { %v3226_v46 = vmax.f32 %v3210_v24, 0.0  ;;  %v3211_v27 = vsub.f32 %v3179_v52, %v3195_v53  ;;  %v8370_v9 = vmul.f32 0.001953125, %v2968_v2  ;;  %v3335_v49 = vmul.f32 %v6607_v18, %v3239_v62 }
 0x2b7   :  { %v2973_v20 = vpop.xlane.xlu1 %2972  ;;  %v3337_v63 = vmul.f32 %v6607_v18, %v3241_v8  ;;  %v3334_v26 = vmul.f32 %v6607_v18, %v3238_v39  ;;  %v3336_v28 = vmul.f32 %v6607_v18, %v3240_v10  ;;  %v9799_v10 = vsub.f32 %v8059_v37, %v8279_v33 }
 0x2b8   :  { %v3306_v22 = vadd.f32 1e-05, %v3226_v46  ;;  %v3227_v60 = vmax.f32 %v3211_v27, 0.0  ;;  %v8380_v52 = vmul.f32 0.001953125, %v2973_v20  ;;  %v3196_v24 = vmul.f32 %v8370_v9, %v8370_v9 }
 0x2b9   :  { %v3112_v39 = vpop.xlane.xlu0 %3111  ;;  %v3421_v62 = vmul.f32 %v8294_v15, %v3335_v49  ;;  %v6609_v8 = vpop.eup %6608  ;;  %v3423_v27 = vmul.f32 %v8311_v31, %v3337_v63  ;;  %v3420_v35 = vmul.f32 %v8291_v50, %v3334_v26 }
 0x2ba   :  { %6614 = vrsqrt.f32 %v3306_v22  ;;  %v3307_v53 = vadd.f32 1e-05, %v3227_v60  ;;  %v3180_v46 = vmul.f32 0.001953125, %v3112_v39  ;;  %v3339_v2 = vmul.f32 %v6609_v8, %v3243_v21 }
 0x2bb   :  { %v3197_v49 = vmul.f32 %v8380_v52, %v8380_v52  ;;  %v3507_v63 = vadd.f32 %v8305_v40, %v3421_v62  ;;  %v3341_v4 = vmul.f32 %v6609_v8, %v9799_v10  ;;  %v9800_v21 = vsub.f32 %v9787_v13, %v8279_v33  ;;  %v9801_v13 = vld [vmem:[#allocation67_spill] sm:$0xff] }
 0x2bc   :  { %v3117_v20 = vpop.xlane.xlu1 %3116  ;;  %6616 = vrsqrt.f32 %v3307_v53  ;;  %v3212_v3 = vsub.f32 %v3180_v46, %v3196_v24  ;;  %v3425_v39 = vmul.f32 %v8294_v15, %v3339_v2  ;;  %v3509_v46 = vadd.f32 %v8314_v51, %v3423_v27 }
 0x2bd   :  { %v3181_v22 = vmul.f32 0.001953125, %v3117_v20  ;;  %v2978_v60 = vpop.xlane.xlu0 %2977  ;;  %v3338_v18 = vmul.f32 %v6609_v8, %v9800_v21  ;;  %v3427_v2 = vmul.f32 %v8311_v31, %v3341_v4  ;;  %v3506_v37 = vadd.f32 %v8302_v54, %v3420_v35 }
 0x2be   :  { %v3228_v26 = vmax.f32 %v3212_v3, 0.0  ;;  %v8401_v24 = vmul.f32 0.001953125, %v2978_v60  ;;  %v3511_v29 = vadd.f32 %v8305_v40, %v3425_v39  ;;  %v9802_v3 = vsub.f32 %v8051_v59, %v8279_v33 }
 0x2bf   :  { %v3213_v53 = vsub.f32 %v3181_v22, %v3197_v49  ;;  %v3424_v62 = vmul.f32 %v8291_v50, %v3338_v18  ;;  %v8413_v22 = vpop.eup %6610  ;;  %v3513_v35 = vadd.f32 %v8314_v51, %v3427_v2  ;;  %v3422_v27 = vmul.f32 %v8297_v48, %v3336_v28 }
 0x2c0   :  { %v2983_v20 = vpop.xlane.xlu1 %2982  ;;  %v3308_v10 = vadd.f32 1e-05, %v3228_v26  ;;  %v3340_v49 = vmul.f32 %v6609_v8, %v9802_v3  ;;  %v3571_v18 = vpack.c.bf16 %v3511_v29, %v3507_v63  ;;  %v3198_v26 = vmul.f32 %v8401_v24, %v8401_v24  ;;  %v9803_v8 = vld [vmem:[#allocation75_spill] sm:$0xff] }
 0x2c1   :  { %v3229_v34 = vmax.f32 %v3213_v53, 0.0  ;;  %v8417_v60 = vmul.f32 0.001953125, %v2983_v20  ;;  %v3122_v4 = vpop.xlane.xlu0 %3121  ;;  %v8420_v39 = vpop.eup %6612  ;;  %v3510_v59 = vadd.f32 %v8302_v54, %v3424_v62  ;;  %v3573_v20 = vpack.c.bf16 %v3513_v35, %v3509_v46 }
 0x2c2   :  { %6618 = vrsqrt.f32 %v3308_v10  ;;  %v3182_v53 = vmul.f32 0.001953125, %v3122_v4  ;;  %4030 = vmatprep.mubr.bf16.mxu0 %v3571_v18  ;;  %v3426_v21 = vmul.f32 %v8297_v48, %v3340_v49  ;;  %v3508_v4 = vadd.f32 %v8308_v43, %v3422_v27 }
 0x2c3   :  { %v3309_v33 = vadd.f32 1e-05, %v3229_v34  ;;  %v3570_v10 = vpack.c.bf16 %v3510_v59, %v3506_v37  ;;  %4143 = vmatprep.mubr.bf16.mxu1 %v3573_v20  ;;  %v3199_v34 = vmul.f32 %v8417_v60, %v8417_v60  ;;  %v9804_v46 = vsub.f32 %v9790_v38, %v8283_v5 }
 0x2c4   :  { %v3127_v29 = vpop.xlane.xlu1 %3126  ;;  %v3214_v2 = vsub.f32 %v3182_v53, %v3198_v26  ;;  %v3512_v35 = vadd.f32 %v8308_v43, %v3426_v21  ;;  %v9805_v49 = vsub.f32 %v9792_v6, %v8288_v7  ;;  %v9806_v20 = vsub.f32 %v8073_v25, %v8283_v5 }
 0x2c5   :  { %v3183_v62 = vmul.f32 0.001953125, %v3127_v29  ;;  %v2988_v3 = vpop.xlane.xlu0 %2987  ;;  %v3343_v28 = vmul.f32 %v8413_v22, %v9804_v46  ;;  %4031 = vmatmul.mubr.bf16.vlgmr.msra.gmra.mxu0 %v3570_v10  ;;  %6620 = vrsqrt.f32 %v3309_v33  ;;  %v9808_v6 = vsub.f32 %v8088_v61, %v8288_v7 }
 0x2c6   :  { %v3230_v18 = vmax.f32 %v3214_v2, 0.0  ;;  %v8439_v37 = vmul.f32 0.001953125, %v2988_v3  ;;  %v3347_v27 = vmul.f32 %v8420_v39, %v9805_v49  ;;  %v3345_v29 = vmul.f32 %v8413_v22, %v9806_v20  ;;  %v9807_v2 = vld [vmem:[#allocation77_spill] sm:$0xff]  ;;  %v9809_v20 = vld [vmem:[#allocation79_spill] sm:$0xff] }
 0x2c7   :  { %v8445_v26 = vpop.eup %6614  ;;  %v3215_v53 = vsub.f32 %v3183_v62, %v3199_v34  ;;  %v3429_v38 = vmul.f32 %v8294_v15, %v3343_v28  ;;  %v3572_v3 = vpack.c.bf16 %v3512_v35, %v3508_v4  ;;  %v3349_v46 = vmul.f32 %v8420_v39, %v9808_v6 }
 0x2c8   :  { %v2993_v59 = vpop.xlane.xlu1 %2992  ;;  %v3310_v21 = vadd.f32 1e-05, %v3230_v18  ;;  %v3433_v18 = vmul.f32 %v8294_v15, %v3347_v27  ;;  %v3200_v4 = vmul.f32 %v8439_v37, %v8439_v37  ;;  %v3431_v61 = vmul.f32 %v8311_v31, %v3345_v29 }
 0x2c9   :  { %v8458_v33 = vpop.eup %6616  ;;  %v3231_v34 = vmax.f32 %v3215_v53, 0.0  ;;  %v8462_v28 = vmul.f32 0.001953125, %v2993_v59  ;;  %v3132_v25 = vpop.xlane.xlu0 %3131  ;;  %4144 = vmatmul.mubr.bf16.vlgmr.msra.gmra.mxu1 %v3572_v3  ;;  %v3515_v6 = vadd.f32 %v8305_v40, %v3429_v38  ;;  %v3435_v3 = vmul.f32 %v8311_v31, %v3349_v46 }
 0x2ca   :  { %6622 = vrsqrt.f32 %v3310_v21  ;;  %v3184_v35 = vmul.f32 0.001953125, %v3132_v25  ;;  %v3519_v59 = vadd.f32 %v8305_v40, %v3433_v18  ;;  %v3517_v10 = vadd.f32 %v8314_v51, %v3431_v61 }
 0x2cb   :  { %v3311_v49 = vadd.f32 1e-05, %v3231_v34  ;;  %v3284_v27 = vsub.f32 %v8200_v44, %v8462_v28  ;;  %v3201_v29 = vmul.f32 %v8462_v28, %v8462_v28  ;;  %v9810_v53 = vsub.f32 %v9788_v16, %v8283_v5 }
 0x2cc   :  { %v3137_v62 = vpop.xlane.xlu1 %3136  ;;  %v3216_v21 = vsub.f32 %v3184_v35, %v3200_v4  ;;  %v3575_v25 = vpack.c.bf16 %v3519_v59, %v3515_v6  ;;  %v3521_v17 = vadd.f32 %v8314_v51, %v3435_v3  ;;  %v9811_v4 = vsub.f32 %v9791_v36, %v8288_v7 }
 0x2cd   :  { %v3185_v34 = vmul.f32 0.001953125, %v3137_v62  ;;  %v3342_v38 = vmul.f32 %v8413_v22, %v9810_v53  ;;  %v2998_v18 = vpop.xlane.xlu0 %2997  ;;  %v9812_v35 = vsub.f32 %v8065_v42, %v8283_v5  ;;  %v9813_v6 = vsub.f32 %v8079_v1, %v8288_v7 }
 0x2ce   :  { %v3232_v63 = vmax.f32 %v3216_v21, 0.0  ;;  %v3346_v46 = vmul.f32 %v8420_v39, %v9811_v4  ;;  %4040 = vmatprep.mubr.bf16.mxu0 %v3575_v25  ;;  %v8498_v21 = vmul.f32 0.001953125, %v2998_v18  ;;  %v3577_v4 = vpack.c.bf16 %v3521_v17, %v3517_v10 }
 0x2cf   :  { %v3344_v61 = vmul.f32 %v8413_v22, %v9812_v35  ;;  %v8491_v62 = vpop.eup %6618  ;;  %v3217_v16 = vsub.f32 %v3185_v34, %v3201_v29  ;;  %v3428_v53 = vmul.f32 %v8291_v50, %v3342_v38  ;;  %v3348_v59 = vmul.f32 %v8420_v39, %v9813_v6  ;;  %v9814_v39 = vld [vmem:[#allocation81_spill] sm:$0xff] }
 0x2d0   :  { %v3003_v36 = vpop.xlane.xlu1 %3002  ;;  %v3312_v3 = vadd.f32 1e-05, %v3232_v63  ;;  %v3432_v42 = vmul.f32 %v8291_v50, %v3346_v46  ;;  %6624 = vrsqrt.f32 %v3311_v49  ;;  %4153 = vmatprep.mubr.bf16.mxu1 %v3577_v4  ;;  %v3286_v17 = vsub.f32 %v9814_v39, %v8498_v21  ;;  %v9817_v4 = vld [vmem:[#allocation86_spill] sm:$0xff] }
 0x2d1   :  { %v3430_v5 = vmul.f32 %v8297_v48, %v3344_v61  ;;  %v3233_v22 = vmax.f32 %v3217_v16, 0.0  ;;  %v3514_v25 = vadd.f32 %v8302_v54, %v3428_v53  ;;  %v3434_v29 = vmul.f32 %v8297_v48, %v3348_v59  ;;  %v3142_v34 = vpop.xlane.xlu0 %3141 }
 0x2d2   :  { %6626 = vrsqrt.f32 %v3312_v3  ;;  %v3518_v1 = vadd.f32 %v8302_v54, %v3432_v42  ;;  %v8509_v38 = vmul.f32 0.001953125, %v3003_v36  ;;  %v3202_v49 = vmul.f32 %v8498_v21, %v8498_v21  ;;  %v8513_v46 = vpop.eup %6620 }
 0x2d3   :  { %v3516_v7 = vadd.f32 %v8308_v43, %v3430_v5  ;;  %v3313_v63 = vadd.f32 1e-05, %v3233_v22  ;;  %v3520_v10 = vadd.f32 %v8308_v43, %v3434_v29  ;;  %v3186_v61 = vmul.f32 0.001953125, %v3142_v34 }
 0x2d4   :  { %v3147_v18 = vpop.xlane.xlu1 %3146  ;;  %v3574_v35 = vpack.c.bf16 %v3518_v1, %v3514_v25  ;;  %v9815_v16 = vsub.f32 %v9794_v55, %v8328_v47  ;;  %v9816_v6 = vsub.f32 %v9796_v56, %v8346_v19  ;;  %v3290_v42 = vsub.f32 %v9817_v4, %v8509_v38 }
 0x2d5   :  { %6628 = vrsqrt.f32 %v3313_v63  ;;  %v3576_v36 = vpack.c.bf16 %v3520_v10, %v3516_v7  ;;  %v3218_v5 = vsub.f32 %v3186_v61, %v3202_v49  ;;  %v9818_v25 = vsub.f32 %v8102_v12, %v8328_v47  ;;  %v3008_v12 = vpop.xlane.xlu0 %3007 }
 0x2d6   :  { %v3351_v53 = vmul.f32 %v8445_v26, %v9815_v16  ;;  %v3355_v59 = vmul.f32 %v8458_v33, %v9816_v6  ;;  %4041 = vmatmul.mubr.bf16.gmra.mxu0 %v3574_v35  ;;  %v9819_v34 = vsub.f32 %v8117_v45, %v8346_v19  ;;  %v3203_v7 = vmul.f32 %v8509_v38, %v8509_v38 }
 0x2d7   :  { %v3353_v56 = vmul.f32 %v8445_v26, %v9818_v25  ;;  %v8533_v29 = vpop.eup %6622  ;;  %4154 = vmatmul.mubr.bf16.gmra.mxu1 %v3576_v36  ;;  %v3187_v63 = vmul.f32 0.001953125, %v3147_v18  ;;  %v9820_v10 = vsub.f32 %v9793_v23, %v8328_v47  ;;  %v3234_v35 = vmax.f32 %v3218_v5, 0.0 }
 0x2d8   :  { %v3437_v22 = vmul.f32 %v8294_v15, %v3351_v53  ;;  %v3441_v55 = vmul.f32 %v8294_v15, %v3355_v59  ;;  %v3357_v1 = vmul.f32 %v8458_v33, %v9819_v34  ;;  %v9821_v59 = vsub.f32 %v9795_v41, %v8346_v19  ;;  %v3013_v36 = vpop.xlane.xlu1 %3012 }
 0x2d9   :  { %v3350_v49 = vmul.f32 %v8445_v26, %v9820_v10  ;;  %v3439_v53 = vmul.f32 %v8311_v31, %v3353_v56  ;;  %v3219_v6 = vsub.f32 %v3187_v63, %v3203_v7  ;;  %v3314_v25 = vadd.f32 1e-05, %v3234_v35 }
 0x2da   :  { %v3523_v61 = vadd.f32 %v8305_v40, %v3437_v22  ;;  %v3527_v16 = vadd.f32 %v8305_v40, %v3441_v55  ;;  %v3443_v45 = vmul.f32 %v8311_v31, %v3357_v1  ;;  %v3354_v18 = vmul.f32 %v8458_v33, %v9821_v59 }
 0x2db   :  { %v3436_v23 = vmul.f32 %v8291_v50, %v3350_v49  ;;  %v9822_v55 = vsub.f32 %v8094_v32, %v8328_v47  ;;  %v3525_v34 = vadd.f32 %v8314_v51, %v3439_v53  ;;  %v3235_v41 = vmax.f32 %v3219_v6, 0.0  ;;  %v3152_v53 = vpop.xlane.xlu0 %3151 }
 0x2dc   :  { %v3579_v22 = vpack.c.bf16 %v3527_v16, %v3523_v61  ;;  %v3529_v1 = vadd.f32 %v8314_v51, %v3443_v45  ;;  %v3440_v7 = vmul.f32 %v8291_v50, %v3354_v18  ;;  %v9823_v10 = vsub.f32 %v8108_v57, %v8346_v19  ;;  %v9824_v19 = vld [vmem:[#allocation88_spill] sm:$0xff]  ;;  %v9825_v18 = vld [vmem:[#allocation43_spill] sm:$0xff] }
 0x2dd   :  { %v3352_v56 = vmul.f32 %v8445_v26, %v9822_v55  ;;  %v3522_v63 = vadd.f32 %v8302_v54, %v3436_v23  ;;  %v8569_v32 = vmul.f32 0.001953125, %v3008_v12  ;;  %v3315_v26 = vadd.f32 1e-05, %v3235_v41  ;;  %v8574_v45 = vpop.eup %6624  ;;  %v3157_v55 = vpop.xlane.xlu1 %3156 }
 0x2de   :  { %4050 = vmatprep.mubr.bf16.mxu0 %v3579_v22  ;;  %v3356_v49 = vmul.f32 %v8458_v33, %v9823_v10  ;;  %v3581_v47 = vpack.c.bf16 %v3529_v1, %v3525_v34  ;;  %v3526_v61 = vadd.f32 %v8302_v54, %v3440_v7  ;;  %v8572_v16 = vmul.f32 0.001953125, %v3013_v36  ;;  %v9826_v36 = vld [vmem:[#allocation93_spill] sm:$0xff]  ;;  %v9828_v7 = vld [vmem:[#allocation64_spill] sm:$0xff]  ;;  %v9829_v10 = vld [vmem:[#allocation26_spill] sm:$0xff] }
 0x2df   :  { %v3438_v35 = vmul.f32 %v8297_v48, %v3352_v56  ;;  %6630 = vrsqrt.f32 %v3314_v25  ;;  %v8580_v59 = vpop.eup %6626  ;;  %v3204_v56 = vmul.f32 %v8569_v32, %v8569_v32  ;;  %v3188_v34 = vmul.f32 0.001953125, %v3152_v53  ;;  %v9827_v1 = vld [vmem:[#allocation61_spill] sm:$0xff] }
 0x2e0   :  { %v3442_v6 = vmul.f32 %v8297_v48, %v3356_v49  ;;  %4163 = vmatprep.mubr.bf16.mxu1 %v3581_v47  ;;  %6632 = vrsqrt.f32 %v3315_v26  ;;  %v3578_v12 = vpack.c.bf16 %v3526_v61, %v3522_v63  ;;  %v3263_v41 = vsub.f32 %v9827_v1, %v8370_v9 }
 0x2e1   :  { %v3524_v57 = vadd.f32 %v8308_v43, %v3438_v35  ;;  %v3267_v63 = vsub.f32 %v9828_v7, %v8380_v52  ;;  %v3265_v49 = vsub.f32 %v9829_v10, %v8370_v9  ;;  %v9830_v35 = vld [vmem:[#allocation32_spill] sm:$0xff]  ;;  %v3205_v26 = vmul.f32 %v8572_v16, %v8572_v16 }
 0x2e2   :  { %v3528_v25 = vadd.f32 %v8308_v43, %v3442_v6  ;;  %4051 = vmatmul.mubr.bf16.gmra.mxu0 %v3578_v12  ;;  %v3269_v47 = vsub.f32 %v9830_v35, %v8380_v52  ;;  %v8599_v61 = vpop.eup %6628  ;;  %v3220_v53 = vsub.f32 %v3188_v34, %v3204_v56  ;;  %v3359_v23 = vmul.f32 %v8491_v62, %v3263_v41 }
 0x2e3   :  { %v3189_v1 = vmul.f32 0.001953125, %v3157_v55  ;;  %v3363_v12 = vmul.f32 %v8513_v46, %v3267_v63  ;;  %v3361_v7 = vmul.f32 %v8491_v62, %v3265_v49  ;;  %v9831_v10 = vsub.f32 %v9797_v58, %v8370_v9  ;;  %v9834_v49 = vld [vmem:[#allocation48_spill] sm:$0xff] }
 0x2e4   :  { %v3580_v6 = vpack.c.bf16 %v3528_v25, %v3524_v57  ;;  %v3365_v22 = vmul.f32 %v8513_v46, %v3269_v47  ;;  %v3236_v33 = vmax.f32 %v3220_v53, 0.0  ;;  %v3445_v5 = vmul.f32 %v8294_v15, %v3359_v23  ;;  %v9832_v25 = vld [vmem:[#allocation63_spill] sm:$0xff]  ;;  %v9837_v47 = vld [vmem:[#allocation28_spill] sm:$0xff] }
 0x2e5   :  { %v3358_v35 = vmul.f32 %v8491_v62, %v9831_v10  ;;  %v3221_v57 = vsub.f32 %v3189_v1, %v3205_v26  ;;  %v9833_v56 = vsub.f32 %v9832_v25, %v8380_v52  ;;  %v3449_v34 = vmul.f32 %v8294_v15, %v3363_v12  ;;  %v9835_v25 = vld [vmem:[#allocation25_spill] sm:$0xff] }
 0x2e6   :  { %4164 = vmatmul.mubr.bf16.gmra.mxu1 %v3580_v6  ;;  %v3447_v41 = vmul.f32 %v8311_v31, %v3361_v7  ;;  %v3451_v63 = vmul.f32 %v8311_v31, %v3365_v22  ;;  %v3316_v6 = vadd.f32 1e-05, %v3236_v33  ;;  %v3531_v26 = vadd.f32 %v8305_v40, %v3445_v5 }
 0x2e7   :  { %v3362_v55 = vmul.f32 %v8513_v46, %v9833_v56  ;;  %v3444_v58 = vmul.f32 %v8291_v50, %v3358_v35  ;;  %v3237_v53 = vmax.f32 %v3221_v57, 0.0  ;;  %v3535_v1 = vadd.f32 %v8305_v40, %v3449_v34 }
 0x2e8   :  { %v3533_v10 = vadd.f32 %v8314_v51, %v3447_v41  ;;  %v3537_v12 = vadd.f32 %v8314_v51, %v3451_v63  ;;  %v9836_v56 = vsub.f32 %v9835_v25, %v8370_v9  ;;  %v9838_v5 = vsub.f32 %v9837_v47, %v8380_v52  ;;  %v9839_v41 = vld [vmem:[#allocation70_spill] sm:$0xff] }
 0x2e9   :  { %v3448_v23 = vmul.f32 %v8291_v50, %v3362_v55  ;;  %v3317_v7 = vadd.f32 1e-05, %v3237_v53  ;;  %v3530_v22 = vadd.f32 %v8302_v54, %v3444_v58  ;;  %v3583_v57 = vpack.c.bf16 %v3535_v1, %v3531_v26 }
 0x2ea   :  { %v3360_v33 = vmul.f32 %v8491_v62, %v9836_v56  ;;  %v3585_v55 = vpack.c.bf16 %v3537_v12, %v3533_v10  ;;  %v3364_v34 = vmul.f32 %v8513_v46, %v9838_v5  ;;  %v3271_v63 = vsub.f32 %v9839_v41, %v8401_v24  ;;  %v9841_v46 = vld [vmem:[#allocation34_spill] sm:$0xff] }
 0x2eb   :  { %v3534_v35 = vadd.f32 %v8302_v54, %v3448_v23  ;;  %6634 = vrsqrt.f32 %v3316_v6  ;;  %v9840_v23 = vld [vmem:[#allocation76_spill] sm:$0xff]  ;;  %4060 = vmatprep.mubr.bf16.mxu0 %v3583_v57  ;;  %v3273_v47 = vsub.f32 %v9841_v46, %v8401_v24  ;;  %v9842_v10 = vld [vmem:[#allocation38_spill] sm:$0xff] }
 0x2ec   :  { %v3446_v58 = vmul.f32 %v8297_v48, %v3360_v33  ;;  %v3275_v3 = vsub.f32 %v9840_v23, %v8417_v60  ;;  %v8640_v9 = vpop.eup %6630  ;;  %4173 = vmatprep.mubr.bf16.mxu1 %v3585_v55  ;;  %6636 = vrsqrt.f32 %v3317_v7  ;;  %v3450_v62 = vmul.f32 %v8297_v48, %v3364_v34 }
 0x2ed   :  { %v3582_v53 = vpack.c.bf16 %v3534_v35, %v3530_v22  ;;  %v3367_v52 = vmul.f32 %v8533_v29, %v3271_v63  ;;  %v8646_v26 = vpop.eup %6632  ;;  %v3277_v12 = vsub.f32 %v9842_v10, %v8417_v60  ;;  %v9843_v7 = vsub.f32 %v9801_v13, %v8401_v24 }
 0x2ee   :  { %v3532_v6 = vadd.f32 %v8308_v43, %v3446_v58  ;;  %v3371_v1 = vmul.f32 %v8574_v45, %v3275_v3  ;;  %v3536_v35 = vadd.f32 %v8308_v43, %v3450_v62  ;;  %v3369_v56 = vmul.f32 %v8533_v29, %v3273_v47  ;;  %v9847_v47 = vld [vmem:[#allocation78_spill] sm:$0xff] }
 0x2ef   :  { %4061 = vmatmul.mubr.bf16.gmra.mxu0 %v3582_v53  ;;  %v3366_v22 = vmul.f32 %v8533_v29, %v9843_v7  ;;  %v3453_v25 = vmul.f32 %v8294_v15, %v3367_v52  ;;  %v9844_v33 = vsub.f32 %v9803_v8, %v8417_v60  ;;  %v3373_v55 = vmul.f32 %v8574_v45, %v3277_v12  ;;  %v9848_v7 = vld [vmem:[#allocation80_spill] sm:$0xff] }
 0x2f0   :  { %v3457_v3 = vmul.f32 %v8294_v15, %v3371_v1  ;;  %v9845_v13 = vsub.f32 %v8155_v11, %v8401_v24  ;;  %v3584_v41 = vpack.c.bf16 %v3536_v35, %v3532_v6  ;;  %v3455_v53 = vmul.f32 %v8311_v31, %v3369_v56  ;;  %v9849_v35 = vld [vmem:[#allocation45_spill] sm:$0xff] }
 0x2f1   :  { %v3370_v57 = vmul.f32 %v8574_v45, %v9844_v33  ;;  %v3452_v5 = vmul.f32 %v8291_v50, %v3366_v22  ;;  %v3539_v63 = vadd.f32 %v8305_v40, %v3453_v25  ;;  %v3459_v23 = vmul.f32 %v8311_v31, %v3373_v55 }
 0x2f2   :  { %v3368_v34 = vmul.f32 %v8533_v29, %v9845_v13  ;;  %v3543_v58 = vadd.f32 %v8305_v40, %v3457_v3  ;;  %v9846_v52 = vsub.f32 %v8169_v0, %v8417_v60  ;;  %4174 = vmatmul.mubr.bf16.gmra.mxu1 %v3584_v41  ;;  %v3541_v24 = vadd.f32 %v8314_v51, %v3455_v53  ;;  %v9850_v3 = vld [vmem:[#allocation53_spill] sm:$0xff] }
 0x2f3   :  { %v3456_v8 = vmul.f32 %v8291_v50, %v3370_v57  ;;  %v3538_v62 = vadd.f32 %v8302_v54, %v3452_v5  ;;  %v3279_v6 = vsub.f32 %v9847_v47, %v8439_v37  ;;  %v3545_v10 = vadd.f32 %v8314_v51, %v3459_v23 }
 0x2f4   :  { %v3372_v11 = vmul.f32 %v8574_v45, %v9846_v52  ;;  %v3454_v46 = vmul.f32 %v8297_v48, %v3368_v34  ;;  %v3587_v1 = vpack.c.bf16 %v3543_v58, %v3539_v63  ;;  %v3283_v0 = vsub.f32 %v9848_v7, %v8462_v28 }
 0x2f5   :  { %v3542_v29 = vadd.f32 %v8302_v54, %v3456_v8  ;;  %v3375_v22 = vmul.f32 %v8580_v59, %v3279_v6  ;;  %v3281_v25 = vsub.f32 %v9849_v35, %v8439_v37  ;;  %v3589_v56 = vpack.c.bf16 %v3545_v10, %v3541_v24 }
 0x2f6   :  { %v3458_v12 = vmul.f32 %v8297_v48, %v3372_v11  ;;  %v3540_v45 = vadd.f32 %v8308_v43, %v3454_v46  ;;  %4070 = vmatprep.mubr.bf16.mxu0 %v3587_v1  ;;  %v3379_v57 = vmul.f32 %v8599_v61, %v3283_v0  ;;  %v3285_v55 = vsub.f32 %v9850_v3, %v8462_v28  ;;  %v9855_v0 = vld [vmem:[#allocation82_spill] sm:$0xff] }
 0x2f7   :  { %v3586_v60 = vpack.c.bf16 %v3542_v29, %v3538_v62  ;;  %v3461_v5 = vmul.f32 %v8294_v15, %v3375_v22  ;;  %v3377_v13 = vmul.f32 %v8580_v59, %v3281_v25  ;;  %v9851_v34 = vsub.f32 %v9807_v2, %v8439_v37  ;;  %4183 = vmatprep.mubr.bf16.mxu1 %v3589_v56  ;;  %v9853_v62 = vld [vmem:[#allocation42_spill] sm:$0xff]  ;;  %v9857_v56 = vld [vmem:[#allocation68_spill] sm:$0xff] }
 0x2f8   :  { %v3544_v33 = vadd.f32 %v8308_v43, %v3458_v12  ;;  %v9852_v63 = vsub.f32 %v9809_v20, %v8462_v28  ;;  %v3465_v58 = vmul.f32 %v8294_v15, %v3379_v57  ;;  %v3381_v23 = vmul.f32 %v8599_v61, %v3285_v55  ;;  %v8713_v24 = vpop.eup %6634  ;;  %v9858_v55 = vld [vmem:[#allocation20_spill] sm:$0xff] }
 0x2f9   :  { %4071 = vmatmul.mubr.bf16.gmra.mxu0 %v3586_v60  ;;  %v3374_v41 = vmul.f32 %v8580_v59, %v9851_v34  ;;  %v9854_v52 = vsub.f32 %v9853_v62, %v8439_v37  ;;  %v3547_v2 = vadd.f32 %v8305_v40, %v3461_v5  ;;  %v3463_v29 = vmul.f32 %v8311_v31, %v3377_v13  ;;  %v8719_v47 = vpop.eup %6636 }
 0x2fa   :  { %v3378_v53 = vmul.f32 %v8599_v61, %v9852_v63  ;;  %v3588_v8 = vpack.c.bf16 %v3544_v33, %v3540_v45  ;;  %v3551_v6 = vadd.f32 %v8305_v40, %v3465_v58  ;;  %v3467_v1 = vmul.f32 %v8311_v31, %v3381_v23 }
 0x2fb   :  { %v3376_v11 = vmul.f32 %v8580_v59, %v9854_v52  ;;  %v3460_v20 = vmul.f32 %v8291_v50, %v3374_v41  ;;  %v3380_v37 = vmul.f32 %v8599_v61, %v3284_v27  ;;  %v3549_v10 = vadd.f32 %v8314_v51, %v3463_v29  ;;  %v9856_v27 = vld [vmem:[#allocation84_spill] sm:$0xff] }
 0x2fc   :  { %v3464_v46 = vmul.f32 %v8291_v50, %v3378_v53  ;;  %4184 = vmatmul.mubr.bf16.gmra.mxu1 %v3588_v8  ;;  %v3287_v60 = vsub.f32 %v9855_v0, %v8498_v21  ;;  %v3591_v45 = vpack.c.bf16 %v3551_v6, %v3547_v2  ;;  %v3553_v22 = vadd.f32 %v8314_v51, %v3467_v1  ;;  %v9861_v6 = vld [vmem:[#allocation87_spill] sm:$0xff] }
 0x2fd   :  { %v3462_v59 = vmul.f32 %v8297_v48, %v3376_v11  ;;  %v3546_v12 = vadd.f32 %v8302_v54, %v3460_v20  ;;  %v3466_v35 = vmul.f32 %v8297_v48, %v3380_v37  ;;  %v3291_v61 = vsub.f32 %v9856_v27, %v8509_v38  ;;  %v9863_v0 = vld [vmem:[#allocation47_spill] sm:$0xff] }
 0x2fe   :  { %v3550_v7 = vadd.f32 %v8302_v54, %v3464_v46  ;;  %v3383_v25 = vmul.f32 %v8640_v9, %v3287_v60  ;;  %v3289_v33 = vsub.f32 %v9857_v56, %v8498_v21  ;;  %4080 = vmatprep.mubr.bf16.mxu0 %v3591_v45  ;;  %v3593_v57 = vpack.c.bf16 %v3553_v22, %v3549_v10 }
 0x2ff   :  { %v3548_v44 = vadd.f32 %v8308_v43, %v3462_v59  ;;  %v3552_v3 = vadd.f32 %v8308_v43, %v3466_v35  ;;  %v3293_v5 = vsub.f32 %v9858_v55, %v8509_v38  ;;  %v3382_v13 = vmul.f32 %v8640_v9, %v3286_v17 }
 0x300   :  { %v3590_v28 = vpack.c.bf16 %v3550_v7, %v3546_v12  ;;  %v3387_v34 = vmul.f32 %v8646_v26, %v3291_v61  ;;  %v3469_v41 = vmul.f32 %v8294_v15, %v3383_v25  ;;  %v3385_v63 = vmul.f32 %v8640_v9, %v3289_v33  ;;  %4193 = vmatprep.mubr.bf16.mxu1 %v3593_v57 }
 0x301   :  { %v3386_v53 = vmul.f32 %v8646_v26, %v3290_v42  ;;  %v3592_v8 = vpack.c.bf16 %v3552_v3, %v3548_v44  ;;  %v3389_v58 = vmul.f32 %v8646_v26, %v3293_v5  ;;  %v3468_v39 = vmul.f32 %v8291_v50, %v3382_v13  ;;  %v9864_v44 = vld [vmem:[#allocation49_spill] sm:$0xff] }
 0x302   :  { %4081 = vmatmul.mubr.bf16.gmra.mxu0 %v3590_v28  ;;  %v9859_v17 = vsub.f32 %v8217_v30, %v8498_v21  ;;  %v3473_v62 = vmul.f32 %v8294_v15, %v3387_v34  ;;  %v3555_v52 = vadd.f32 %v8305_v40, %v3469_v41  ;;  %v3471_v11 = vmul.f32 %v8311_v31, %v3385_v63 }
 0x303   :  { %v3472_v4 = vmul.f32 %v8291_v50, %v3386_v53  ;;  %v3475_v42 = vmul.f32 %v8311_v31, %v3389_v58  ;;  %v3554_v2 = vadd.f32 %v8302_v54, %v3468_v39  ;;  %v9860_v29 = vsub.f32 %v8231_v14, %v8509_v38  ;;  %v9862_v38 = vld [vmem:[#allocation94_spill] sm:$0xff] }
 0x304   :  { %v3384_v23 = vmul.f32 %v8640_v9, %v9859_v17  ;;  %4194 = vmatmul.mubr.bf16.gmra.mxu1 %v3592_v8  ;;  %v3559_v21 = vadd.f32 %v8305_v40, %v3473_v62  ;;  %v3557_v9 = vadd.f32 %v8314_v51, %v3471_v11  ;;  %v3295_v1 = vsub.f32 %v9861_v6, %v8569_v32  ;;  %v6590_v62 = vld [vmem:[#allocation11 + $0x78] sm:$0xff]   ;;  %v6595_v11 = vld [vmem:[#allocation11 + $0x28] sm:$0xff]  }
 0x305   :  { %v3388_v20 = vmul.f32 %v8646_v26, %v9860_v29  ;;  %v3558_v46 = vadd.f32 %v8302_v54, %v3472_v4  ;;  %v3561_v37 = vadd.f32 %v8314_v51, %v3475_v42  ;;  %v3299_v26 = vsub.f32 %v9862_v38, %v8572_v16  ;;  %5981 = vmatprep.subr.bf16.mxu0 %v6590_v62  ;;  %v3666_v4 = vld [vmem:[%s9534_s6] sm:$0x3]  ;;  %v9869_v42 = vld [vmem:[#allocation18_spill] sm:$0xff]  ;;  %v9870_v29 = vld [vmem:[#allocation19_spill] sm:$0xff] }
 0x306   :  { %v3470_v30 = vmul.f32 %v8297_v48, %v3384_v23  ;;  %v3595_v10 = vpack.c.bf16 %v3559_v21, %v3555_v52  ;;  %v3391_v7 = vmul.f32 %v8713_v24, %v3295_v1  ;;  %v3297_v60 = vsub.f32 %v9863_v0, %v8569_v32  ;;  %v6592_v52 = vld [vmem:[#allocation11 + $0x70] sm:$0xff]   ;;  %6045 = vmatprep.subr.bf16.mxu1 %v6590_v62 }
 0x307   :  { %v3474_v59 = vmul.f32 %v8297_v48, %v3388_v20  ;;  %v3594_v12 = vpack.c.bf16 %v3558_v46, %v3554_v2  ;;  %v3597_v45 = vpack.c.bf16 %v3561_v37, %v3557_v9  ;;  %v3395_v35 = vmul.f32 %v8719_v47, %v3299_v26 }
 0x308   :  { %v3556_v14 = vadd.f32 %v8308_v43, %v3470_v30  ;;  %v3301_v28 = vsub.f32 %v9864_v44, %v8572_v16  ;;  %4090 = vmatprep.mubr.bf16.mxu0 %v3595_v10  ;;  %v3477_v27 = vmul.f32 %v8294_v15, %v3391_v7  ;;  %v3393_v61 = vmul.f32 %v8713_v24, %v3297_v60 }
 0x309   :  { %v3560_v22 = vadd.f32 %v8308_v43, %v3474_v59  ;;  %v9865_v25 = vsub.f32 %v9824_v19, %v8569_v32  ;;  %v9866_v33 = vsub.f32 %v9826_v36, %v8572_v16  ;;  %4203 = vmatprep.mubr.bf16.mxu1 %v3597_v45  ;;  %v3481_v55 = vmul.f32 %v8294_v15, %v3395_v35 }
 0x30a   :  { %4091 = vmatmul.mubr.bf16.gmra.mxu0 %v3594_v12  ;;  %v3397_v5 = vmul.f32 %v8719_v47, %v3301_v28  ;;  %v3563_v13 = vadd.f32 %v8305_v40, %v3477_v27  ;;  %v3479_v34 = vmul.f32 %v8311_v31, %v3393_v61  ;;  %v9867_v53 = vsub.f32 %v9825_v18, %v8569_v32 }
 0x30b   :  { %v3390_v56 = vmul.f32 %v8713_v24, %v9865_v25  ;;  %v3394_v57 = vmul.f32 %v8719_v47, %v9866_v33  ;;  %v3596_v3 = vpack.c.bf16 %v3560_v22, %v3556_v14  ;;  %v3567_v63 = vadd.f32 %v8305_v40, %v3481_v55 }
 0x30c   :  { %v3483_v36 = vmul.f32 %v8311_v31, %v3397_v5  ;;  %v3392_v8 = vmul.f32 %v8713_v24, %v9867_v53  ;;  %v9868_v15 = vsub.f32 %v9834_v49, %v8572_v16  ;;  %v3565_v39 = vadd.f32 %v8314_v51, %v3479_v34 }
 0x30d   :  { %v3476_v19 = vmul.f32 %v8291_v50, %v3390_v56  ;;  %v3480_v41 = vmul.f32 %v8291_v50, %v3394_v57  ;;  %4204 = vmatmul.mubr.bf16.gmra.mxu1 %v3596_v3  ;;  %v3599_v40 = vpack.c.bf16 %v3567_v63, %v3563_v13  ;;  %v8827_v2 = vrot.slane %v3666_v4, %v9869_v42 }
 0x30e   :  { %v3396_v58 = vmul.f32 %v8719_v47, %v9868_v15  ;;  %v3569_v31 = vadd.f32 %v8314_v51, %v3483_v36  ;;  %v3478_v23 = vmul.f32 %v8297_v48, %v3392_v8  ;;  %v6593_v51 = vld [vmem:[#allocation11 + $0x30] sm:$0xff]   ;;  %v8830_v20 = vrot.slane %v3666_v4, %v9870_v29 }
 0x30f   :  { %v3562_v17 = vadd.f32 %v8302_v54, %v3476_v19  ;;  %v3566_v50 = vadd.f32 %v8302_v54, %v3480_v41  ;;  %4100 = vmatprep.mubr.bf16.mxu0 %v3599_v40  ;;  %v6591_v54 = vld [vmem:[#allocation11 + $0x38] sm:$0xff]  }
 0x310   :  { %v3482_v32 = vmul.f32 %v8297_v48, %v3396_v58  ;;  %v3601_v24 = vpack.c.bf16 %v3569_v31, %v3565_v39  ;;  %v3564_v16 = vadd.f32 %v8308_v43, %v3478_v23  ;;  %5982 = vmatpush3.bf16.msra.mxu0 %v6591_v54  ;;  %6053 = vmatpush3.bf16.msra.mxu1 %v6591_v54  ;;  %v6594_v48 = vld [vmem:[#allocation11 + $0x68] sm:$0xff]  }
 0x311   :  { %v3598_v18 = vpack.c.bf16 %v3566_v50, %v3562_v17  ;;  %5983 = vmatprep.subr.bf16.mxu0 %v6592_v52  ;;  %6046 = vmatprep.subr.bf16.mxu1 %v6592_v52 }
 0x312   :  { %v3568_v49 = vadd.f32 %v8308_v43, %v3482_v32  ;;  %4213 = vmatprep.mubr.bf16.mxu1 %v3601_v24  ;;  %v6596_v43 = vld [vmem:[#allocation11 + $0x60] sm:$0xff]  }
 0x313   :  { %4101 = vmatmul.mubr.bf16.gmra.mxu0 %v3598_v18 }
 0x314   :  { %v3600_v47 = vpack.c.bf16 %v3568_v49, %v3564_v16  ;;  %5984 = vmatpush3.bf16.msra.mxu0 %v6593_v51  ;;  %6054 = vmatpush3.bf16.msra.mxu1 %v6593_v51  ;;  %v6597_v51 = vld [vmem:[#allocation11 + $0x20] sm:$0xff]  }
 0x315   :  { %5985 = vmatprep.subr.bf16.mxu0 %v6594_v48  ;;  %6047 = vmatprep.subr.bf16.mxu1 %v6594_v48 }
 0x316   :  { %4214 = vmatmul.mubr.bf16.gmra.mxu1 %v3600_v47 }
 0x318   :  { %5986 = vmatpush3.bf16.msra.mxu0 %v6595_v11  ;;  %6055 = vmatpush3.bf16.msra.mxu1 %v6595_v11 }
 0x319   :  { %5987 = vmatprep.subr.bf16.mxu0 %v6596_v43  ;;  %6048 = vmatprep.subr.bf16.mxu1 %v6596_v43 }
 0x31c   :  { %5988 = vmatpush3.bf16.msra.mxu0 %v6597_v51  ;;  %6056 = vmatpush3.bf16.msra.mxu1 %v6597_v51 }
 0x385   :  { %v4032_v30 = vpop.f32.mrf.mxu0 }
 0x386   :  { %v4033_v21 = vadd.f32 %v4032_v30, %v8827_v2 }
 0x387   :  { %v4034_v9 = vpop.f32.mrf.mxu0 }
 0x388   :  { %v4035_v46 = vadd.f32 %v4034_v9, %v8830_v20 }
 0x389   :  { %v4145_v6 = vpop.f32.mrf.mxu1  ;;  %v4036_v1 = vpop.f32.mrf.mxu0 }
 0x38a   :  { %v4146_v37 = vadd.f32 %v4145_v6, %v4033_v21  ;;  %v4037_v59 = vadd.f32 %v4036_v1, %v8827_v2 }
 0x38b   :  { %v4147_v14 = vpop.f32.mrf.mxu1  ;;  %v4038_v38 = vpop.f32.mrf.mxu0 }
 0x38c   :  { %v4256_v26 = vmul.f32 0.02, %v4146_v37  ;;  %v4148_v10 = vadd.f32 %v4147_v14, %v4035_v46  ;;  %v4039_v12 = vadd.f32 %v4038_v38, %v8830_v20  ;;  %vm4224_vm0 = vcmp.gt.f32.partialorder %v4146_v37, 0.0 }
 0x38d   :  { %v4149_v7 = vpop.f32.mrf.mxu1 }
 0x38e   :  { %vm4225_vm1 = vcmp.gt.f32.partialorder %v4148_v10, 0.0  ;;  %v4257_v0 = vmul.f32 0.02, %v4148_v10  ;;  %v4150_v60 = vadd.f32 %v4149_v7, %v4037_v59  ;;  %v8836_v44 = vsel %vm4224_vm0, %v4146_v37, %v4256_v26 }
 0x38f   :  { %v4151_v45 = vpop.f32.mrf.mxu1  ;;  %v4368_v56 = vmul.f32 %v8836_v44, %v8836_v44 }
 0x390   :  { %v4258_v22 = vmul.f32 0.02, %v4150_v60  ;;  %v4152_v35 = vadd.f32 %v4151_v45, %v4039_v12  ;;  %v8838_v28 = vsel %vm4225_vm1, %v4148_v10, %v4257_v0  ;;  %vm4226_vm2 = vcmp.gt.f32.partialorder %v4150_v60, 0.0 }
 0x391   :  { %v4320_v27 = vadd.f32 %v8838_v28, %v8836_v44  ;;  %v4369_v61 = vmul.f32 %v8838_v28, %v8838_v28 }
 0x392   :  { %vm4227_vm3 = vcmp.gt.f32.partialorder %v4152_v35, 0.0  ;;  %v4259_v25 = vmul.f32 0.02, %v4152_v35  ;;  %v8846_v33 = vsel %vm4226_vm2, %v4150_v60, %v4258_v22 }
 0x393   :  { %4321 = vadd.xlane.f32.xlu0 %v4320_v27  ;;  %v4400_v5 = vadd.f32 %v4369_v61, %v4368_v56  ;;  %v4370_v63 = vmul.f32 %v8846_v33, %v8846_v33 }
 0x394   :  { %v8848_v57 = vsel %vm4227_vm3, %v4152_v35, %v4259_v25 }
 0x395   :  { %v4323_v55 = vadd.f32 %v8848_v57, %v8846_v33  ;;  %v4371_v13 = vmul.f32 %v8848_v57, %v8848_v57 }
 0x396   :  { %v4042_v3 = vpop.f32.mrf.mxu0 }
 0x397   :  { %v4043_v34 = vadd.f32 %v4042_v3, %v8827_v2  ;;  %v4155_v19 = vpop.f32.mrf.mxu1  ;;  %4324 = vadd.xlane.f32.xlu1 %v4323_v55  ;;  %4401 = vadd.xlane.f32.xlu0 %v4400_v5  ;;  %v4403_v58 = vadd.f32 %v4371_v13, %v4370_v63 }
 0x398   :  { %v4044_v41 = vpop.f32.mrf.mxu0 }
 0x399   :  { %v4156_v36 = vadd.f32 %v4155_v19, %v4043_v34  ;;  %v4045_v53 = vadd.f32 %v4044_v41, %v8830_v20  ;;  %v4157_v8 = vpop.f32.mrf.mxu1 }
 0x39a   :  { %v4046_v15 = vpop.f32.mrf.mxu0 }
 0x39b   :  { %v4260_v39 = vmul.f32 0.02, %v4156_v36  ;;  %v4158_v17 = vadd.f32 %v4157_v8, %v4045_v53  ;;  %v4047_v50 = vadd.f32 %v4046_v15, %v8827_v2  ;;  %v4159_v40 = vpop.f32.mrf.mxu1  ;;  %vm4228_vm4 = vcmp.gt.f32.partialorder %v4156_v36, 0.0  ;;  %4404 = vadd.xlane.f32.xlu1 %v4403_v58 }
 0x39c   :  { %v4048_v31 = vpop.f32.mrf.mxu0 }
 0x39d   :  { %vm4229_vm5 = vcmp.gt.f32.partialorder %v4158_v17, 0.0  ;;  %v4261_v23 = vmul.f32 0.02, %v4158_v17  ;;  %v4160_v32 = vadd.f32 %v4159_v40, %v4047_v50  ;;  %v4049_v18 = vadd.f32 %v4048_v31, %v8830_v20  ;;  %v4161_v24 = vpop.f32.mrf.mxu1 }
 0x39e   :  { %v8860_v47 = vsel %vm4228_vm4, %v4156_v36, %v4260_v39 }
 0x39f   :  { %v4262_v16 = vmul.f32 0.02, %v4160_v32  ;;  %v4162_v49 = vadd.f32 %v4161_v24, %v4049_v18  ;;  %v8862_v62 = vsel %vm4229_vm5, %v4158_v17, %v4261_v23  ;;  %vm4230_vm6 = vcmp.gt.f32.partialorder %v4160_v32, 0.0 }
 0x3a0   :  { %v4326_v54 = vadd.f32 %v8862_v62, %v8860_v47  ;;  %v4373_v52 = vmul.f32 %v8862_v62, %v8862_v62  ;;  %v4372_v4 = vmul.f32 %v8860_v47, %v8860_v47 }
 0x3a1   :  { %vm4231_vm7 = vcmp.gt.f32.partialorder %v4162_v49, 0.0  ;;  %v4263_v48 = vmul.f32 0.02, %v4162_v49  ;;  %v8871_v21 = vsel %vm4230_vm6, %v4160_v32, %v4262_v16 }
 0x3a2   :  { %v4052_v11 = vpop.f32.mrf.mxu0  ;;  %4327 = vadd.xlane.f32.xlu0 %v4326_v54  ;;  %v4406_v37 = vadd.f32 %v4373_v52, %v4372_v4  ;;  %v4374_v12 = vmul.f32 %v8871_v21, %v8871_v21 }
 0x3a3   :  { %v4053_v43 = vadd.f32 %v4052_v11, %v8827_v2  ;;  %v8873_v9 = vsel %vm4231_vm7, %v4162_v49, %v4263_v48 }
 0x3a4   :  { %v4054_v30 = vpop.f32.mrf.mxu0  ;;  %v4329_v1 = vadd.f32 %v8873_v9, %v8871_v21  ;;  %v4375_v59 = vmul.f32 %v8873_v9, %v8873_v9 }
 0x3a5   :  { %v4055_v6 = vadd.f32 %v4054_v30, %v8830_v20 }
 0x3a6   :  { %v4165_v46 = vpop.f32.mrf.mxu1  ;;  %v4056_v38 = vpop.f32.mrf.mxu0  ;;  %4330 = vadd.xlane.f32.xlu1 %v4329_v1  ;;  %4407 = vadd.xlane.f32.xlu0 %v4406_v37  ;;  %v4409_v35 = vadd.f32 %v4375_v59, %v4374_v12 }
 0x3a7   :  { %v4166_v14 = vadd.f32 %v4165_v46, %v4053_v43  ;;  %v4057_v10 = vadd.f32 %v4056_v38, %v8827_v2 }
 0x3a8   :  { %v4167_v26 = vpop.f32.mrf.mxu1  ;;  %v4058_v60 = vpop.f32.mrf.mxu0 }
 0x3a9   :  { %v4264_v7 = vmul.f32 0.02, %v4166_v14  ;;  %v4168_v0 = vadd.f32 %v4167_v26, %v4055_v6  ;;  %vm4232_vm8 = vcmp.gt.f32.partialorder %v4166_v14, 0.0  ;;  %v4059_v22 = vadd.f32 %v4058_v60, %v8830_v20  ;;  %v6598_v60 = vld [vmem:[#allocation11 + $0x58] sm:$0xff]  }
 0x3aa   :  { %v4169_v45 = vpop.f32.mrf.mxu1  ;;  %4410 = vadd.xlane.f32.xlu1 %v4409_v35  ;;  %5989 = vmatprep.subr.bf16.mxu0 %v6598_v60 }
 0x3ab   :  { %vm4233_vm9 = vcmp.gt.f32.partialorder %v4168_v0, 0.0  ;;  %v4265_v27 = vmul.f32 0.02, %v4168_v0  ;;  %v4170_v61 = vadd.f32 %v4169_v45, %v4057_v10  ;;  %v8884_v55 = vsel %vm4232_vm8, %v4166_v14, %v4264_v7  ;;  %6049 = vmatprep.subr.bf16.mxu1 %v6598_v60 }
 0x3ac   :  { %v4171_v25 = vpop.f32.mrf.mxu1  ;;  %v4376_v53 = vmul.f32 %v8884_v55, %v8884_v55 }
 0x3ad   :  { %v4266_v56 = vmul.f32 0.02, %v4170_v61  ;;  %v4172_v3 = vadd.f32 %v4171_v25, %v4059_v22  ;;  %v8886_v5 = vsel %vm4233_vm9, %v4168_v0, %v4265_v27  ;;  %vm4234_vm10 = vcmp.gt.f32.partialorder %v4170_v61, 0.0 }
 0x3ae   :  { %v4332_v34 = vadd.f32 %v8886_v5, %v8884_v55  ;;  %v4377_v19 = vmul.f32 %v8886_v5, %v8886_v5 }
 0x3af   :  { %v4062_v13 = vpop.f32.mrf.mxu0  ;;  %vm4235_vm11 = vcmp.gt.f32.partialorder %v4172_v3, 0.0  ;;  %v4267_v41 = vmul.f32 0.02, %v4172_v3  ;;  %v8895_v8 = vsel %vm4234_vm10, %v4170_v61, %v4266_v56 }
 0x3b0   :  { %v4063_v63 = vadd.f32 %v4062_v13, %v8827_v2  ;;  %4333 = vadd.xlane.f32.xlu0 %v4332_v34  ;;  %v4412_v50 = vadd.f32 %v4377_v19, %v4376_v53  ;;  %v4378_v24 = vmul.f32 %v8895_v8, %v8895_v8 }
 0x3b1   :  { %v4064_v36 = vpop.f32.mrf.mxu0  ;;  %v8897_v15 = vsel %vm4235_vm11, %v4172_v3, %v4267_v41 }
 0x3b2   :  { %v4065_v58 = vadd.f32 %v4064_v36, %v8830_v20  ;;  %v4335_v17 = vadd.f32 %v8897_v15, %v8895_v8  ;;  %v4379_v40 = vmul.f32 %v8897_v15, %v8897_v15  ;;  %v4175_v31 = vpop.f32.mrf.mxu1 }
 0x3b3   :  { %v4066_v39 = vpop.f32.mrf.mxu0  ;;  %v4176_v23 = vadd.f32 %v4175_v31, %v4063_v63 }
 0x3b4   :  { %v4067_v32 = vadd.f32 %v4066_v39, %v8827_v2  ;;  %4336 = vadd.xlane.f32.xlu1 %v4335_v17  ;;  %4413 = vadd.xlane.f32.xlu0 %v4412_v50  ;;  %v4177_v16 = vpop.f32.mrf.mxu1  ;;  %v4415_v51 = vadd.f32 %v4379_v40, %v4378_v24  ;;  %v6599_v39 = vld [vmem:[#allocation11 + $0x18] sm:$0xff]   ;;  %v6600_v17 = vld [vmem:[#allocation11 + $0x50] sm:$0xff]  }
 0x3b5   :  { %v4068_v18 = vpop.f32.mrf.mxu0  ;;  %v4268_v49 = vmul.f32 0.02, %v4176_v23  ;;  %v4178_v54 = vadd.f32 %v4177_v16, %v4065_v58  ;;  %vm4236_vm12 = vcmp.gt.f32.partialorder %v4176_v23, 0.0  ;;  %5990 = vmatpush3.bf16.msra.mxu0 %v6599_v39  ;;  %6057 = vmatpush3.bf16.msra.mxu1 %v6599_v39 }
 0x3b6   :  { %v4069_v52 = vadd.f32 %v4068_v18, %v8830_v20  ;;  %v4179_v48 = vpop.f32.mrf.mxu1  ;;  %5991 = vmatprep.subr.bf16.mxu0 %v6600_v17  ;;  %6050 = vmatprep.subr.bf16.mxu1 %v6600_v17 }
 0x3b7   :  { %vm4237_vm13 = vcmp.gt.f32.partialorder %v4178_v54, 0.0  ;;  %v4269_v43 = vmul.f32 0.02, %v4178_v54  ;;  %v4180_v4 = vadd.f32 %v4179_v48, %v4067_v32  ;;  %v8910_v14 = vsel %vm4236_vm12, %v4176_v23, %v4268_v49 }
 0x3b8   :  { %4416 = vadd.xlane.f32.xlu1 %v4415_v51  ;;  %v4181_v46 = vpop.f32.mrf.mxu1  ;;  %v4380_v27 = vmul.f32 %v8910_v14, %v8910_v14 }
 0x3b9   :  { %v4072_v11 = vpop.f32.mrf.mxu0  ;;  %v4270_v1 = vmul.f32 0.02, %v4180_v4  ;;  %v4182_v37 = vadd.f32 %v4181_v46, %v4069_v52  ;;  %vm4238_vm14 = vcmp.gt.f32.partialorder %v4180_v4, 0.0  ;;  %v8912_v26 = vsel %vm4237_vm13, %v4178_v54, %v4269_v43 }
 0x3ba   :  { %v4073_v30 = vadd.f32 %v4072_v11, %v8827_v2  ;;  %v4338_v0 = vadd.f32 %v8912_v26, %v8910_v14  ;;  %v4381_v61 = vmul.f32 %v8912_v26, %v8912_v26  ;;  %v6601_v11 = vld [vmem:[#allocation11 + $0x10] sm:$0xff]  }
 0x3bb   :  { %v4074_v6 = vpop.f32.mrf.mxu0  ;;  %vm4239_vm15 = vcmp.gt.f32.partialorder %v4182_v37, 0.0  ;;  %v4271_v12 = vmul.f32 0.02, %v4182_v37  ;;  %v8923_v13 = vsel %vm4238_vm14, %v4180_v4, %v4270_v1  ;;  %5992 = vmatpush3.bf16.msra.mxu0 %v6601_v11  ;;  %6058 = vmatpush3.bf16.msra.mxu1 %v6601_v11 }
 0x3bc   :  { %v4075_v59 = vadd.f32 %v4074_v6, %v8830_v20  ;;  %v4185_v38 = vpop.f32.mrf.mxu1  ;;  %4339 = vadd.xlane.f32.xlu0 %v4338_v0  ;;  %v4418_v41 = vadd.f32 %v4381_v61, %v4380_v27  ;;  %v4382_v23 = vmul.f32 %v8923_v13, %v8923_v13  ;;  %v6602_v0 = vld [vmem:[#allocation11 + $0x48] sm:$0xff]  }
 0x3bd   :  { %v4076_v10 = vpop.f32.mrf.mxu0  ;;  %v4186_v7 = vadd.f32 %v4185_v38, %v4073_v30  ;;  %v8926_v19 = vsel %vm4239_vm15, %v4182_v37, %v4271_v12  ;;  %5993 = vmatprep.subr.bf16.mxu0 %v6602_v0  ;;  %6051 = vmatprep.subr.bf16.mxu1 %v6602_v0 }
 0x3be   :  { %v4187_v45 = vpop.f32.mrf.mxu1  ;;  %v4077_v22 = vadd.f32 %v4076_v10, %v8827_v2  ;;  %v4341_v58 = vadd.f32 %v8926_v19, %v8923_v13  ;;  %v4383_v32 = vmul.f32 %v8926_v19, %v8926_v19 }
 0x3bf   :  { %v4078_v35 = vpop.f32.mrf.mxu0  ;;  %v4272_v25 = vmul.f32 0.02, %v4186_v7  ;;  %v4188_v56 = vadd.f32 %v4187_v45, %v4075_v59  ;;  %vm4240_vm0 = vcmp.gt.f32.partialorder %v4186_v7, 0.0 }
 0x3c0   :  { %v4079_v3 = vadd.f32 %v4078_v35, %v8830_v20  ;;  %v4189_v34 = vpop.f32.mrf.mxu1  ;;  %4342 = vadd.xlane.f32.xlu1 %v4341_v58  ;;  %4419 = vadd.xlane.f32.xlu0 %v4418_v41  ;;  %v4421_v52 = vadd.f32 %v4383_v32, %v4382_v23  ;;  %v6603_v35 = vld [vmem:[#allocation11 + $0x8] sm:$0xff]  }
 0x3c1   :  { %vm4241_vm1 = vcmp.gt.f32.partialorder %v4188_v56, 0.0  ;;  %v4273_v36 = vmul.f32 0.02, %v4188_v56  ;;  %v4190_v53 = vadd.f32 %v4189_v34, %v4077_v22  ;;  %v8937_v49 = vsel %vm4240_vm0, %v4186_v7, %v4272_v25  ;;  %5994 = vmatpush3.bf16.msra.mxu0 %v6603_v35  ;;  %6059 = vmatpush3.bf16.msra.mxu1 %v6603_v35 }
 0x3c2   :  { %v4082_v63 = vpop.f32.mrf.mxu0  ;;  %v4191_v50 = vpop.f32.mrf.mxu1  ;;  %v4384_v37 = vmul.f32 %v8937_v49, %v8937_v49 }
 0x3c3   :  { %v4083_v40 = vadd.f32 %v4082_v63, %v8827_v2  ;;  %v4274_v18 = vmul.f32 0.02, %v4190_v53  ;;  %v4192_v24 = vadd.f32 %v4191_v50, %v4079_v3  ;;  %vm4242_vm2 = vcmp.gt.f32.partialorder %v4190_v53, 0.0 }
 0x3c4   :  { %v4084_v31 = vpop.f32.mrf.mxu0  ;;  %v4195_v54 = vpop.f32.mrf.mxu1  ;;  %v8940_v51 = vsel %vm4241_vm1, %v4188_v56, %v4273_v36  ;;  %4422 = vadd.xlane.f32.xlu1 %v4421_v52 }
 0x3c5   :  { %v4085_v16 = vadd.f32 %v4084_v31, %v8830_v20  ;;  %vm4243_vm3 = vcmp.gt.f32.partialorder %v4192_v24, 0.0  ;;  %v4275_v43 = vmul.f32 0.02, %v4192_v24  ;;  %v4196_v4 = vadd.f32 %v4195_v54, %v4083_v40 }
 0x3c6   :  { %v4086_v48 = vpop.f32.mrf.mxu0  ;;  %v4344_v30 = vadd.f32 %v8940_v51, %v8937_v49  ;;  %v4197_v46 = vpop.f32.mrf.mxu1  ;;  %v4385_v59 = vmul.f32 %v8940_v51, %v8940_v51  ;;  %v8951_v7 = vsel %vm4242_vm2, %v4190_v53, %v4274_v18 }
 0x3c7   :  { %v4087_v6 = vadd.f32 %v4086_v48, %v8827_v2  ;;  %v4276_v38 = vmul.f32 0.02, %v4196_v4  ;;  %v4198_v10 = vadd.f32 %v4197_v46, %v4085_v16  ;;  %vm4244_vm4 = vcmp.gt.f32.partialorder %v4196_v4, 0.0 }
 0x3c8   :  { %v4088_v1 = vpop.f32.mrf.mxu0  ;;  %4345 = vadd.xlane.f32.xlu0 %v4344_v30  ;;  %v4199_v60 = vpop.f32.mrf.mxu1  ;;  %v8954_v45 = vsel %vm4243_vm3, %v4192_v24, %v4275_v43  ;;  %v4424_v22 = vadd.f32 %v4385_v59, %v4384_v37  ;;  %v4386_v41 = vmul.f32 %v8951_v7, %v8951_v7 }
 0x3c9   :  { %v4089_v12 = vadd.f32 %v4088_v1, %v8830_v20  ;;  %vm4245_vm5 = vcmp.gt.f32.partialorder %v4198_v10, 0.0  ;;  %v4277_v27 = vmul.f32 0.02, %v4198_v10  ;;  %v4200_v61 = vadd.f32 %v4199_v60, %v4087_v6 }
 0x3ca   :  { %v4347_v25 = vadd.f32 %v8954_v45, %v8951_v7  ;;  %v4092_v56 = vpop.f32.mrf.mxu0  ;;  %v4201_v3 = vpop.f32.mrf.mxu1  ;;  %v4387_v63 = vmul.f32 %v8954_v45, %v8954_v45  ;;  %v8964_v39 = vsel %vm4244_vm4, %v4196_v4, %v4276_v38 }
 0x3cb   :  { %v4093_v34 = vadd.f32 %v4092_v56, %v8827_v2  ;;  %v4278_v36 = vmul.f32 0.02, %v4200_v61  ;;  %v4202_v53 = vadd.f32 %v4201_v3, %v4089_v12  ;;  %v8967_v17 = vsel %vm4245_vm5, %v4198_v10, %v4277_v27 }
 0x3cc   :  { %4348 = vadd.xlane.f32.xlu1 %v4347_v25  ;;  %4425 = vadd.xlane.f32.xlu0 %v4424_v22  ;;  %v4094_v58 = vpop.f32.mrf.mxu0  ;;  %vm4246_vm6 = vcmp.gt.f32.partialorder %v4200_v61, 0.0  ;;  %v4350_v31 = vadd.f32 %v8967_v17, %v8964_v39  ;;  %v4427_v18 = vadd.f32 %v4387_v63, %v4386_v41  ;;  %v4388_v52 = vmul.f32 %v8964_v39, %v8964_v39 }
 0x3cd   :  { %v4205_v50 = vpop.f32.mrf.mxu1  ;;  %v4095_v40 = vadd.f32 %v4094_v58, %v8830_v20  ;;  %vm4247_vm7 = vcmp.gt.f32.partialorder %v4202_v53, 0.0  ;;  %v4279_v23 = vmul.f32 0.02, %v4202_v53  ;;  %v4389_v48 = vmul.f32 %v8967_v17, %v8967_v17 }
 0x3ce   :  { %v4206_v32 = vadd.f32 %v4205_v50, %v4093_v34  ;;  %v4096_v24 = vpop.f32.mrf.mxu0  ;;  %v8978_v30 = vsel %vm4246_vm6, %v4200_v61, %v4278_v36 }
 0x3cf   :  { %v4207_v16 = vpop.f32.mrf.mxu1  ;;  %v4097_v54 = vadd.f32 %v4096_v24, %v8827_v2  ;;  %v8981_v46 = vsel %vm4247_vm7, %v4202_v53, %v4279_v23  ;;  %v4430_v59 = vadd.f32 %v4389_v48, %v4388_v52  ;;  %v4390_v35 = vmul.f32 %v8978_v30, %v8978_v30  ;;  %v6605_v23 = vld [vmem:[#allocation11] sm:$0xff]  }
 0x3d0   :  { %v4280_v11 = vmul.f32 0.02, %v4206_v32  ;;  %v4208_v43 = vadd.f32 %v4207_v16, %v4095_v40  ;;  %4428 = vadd.xlane.f32.xlu1 %v4427_v18  ;;  %4351 = vadd.xlane.f32.xlu0 %v4350_v31  ;;  %v4098_v4 = vpop.f32.mrf.mxu0  ;;  %vm4248_vm8 = vcmp.gt.f32.partialorder %v4206_v32, 0.0  ;;  %v4353_v37 = vadd.f32 %v8981_v46, %v8978_v30  ;;  %v6604_v31 = vld [vmem:[#allocation11 + $0x40] sm:$0xff]  }
 0x3d1   :  { %v4209_v6 = vpop.f32.mrf.mxu1  ;;  %v4099_v1 = vadd.f32 %v4098_v4, %v8830_v20  ;;  %v4391_v0 = vmul.f32 %v8981_v46, %v8981_v46  ;;  %5995 = vmatprep.subr.bf16.mxu0 %v6604_v31  ;;  %6052 = vmatprep.subr.bf16.mxu1 %v6604_v31 }
 0x3d2   :  { %vm4249_vm9 = vcmp.gt.f32.partialorder %v4208_v43, 0.0  ;;  %v4281_v38 = vmul.f32 0.02, %v4208_v43  ;;  %v4210_v10 = vadd.f32 %v4209_v6, %v4097_v54  ;;  %v8992_v56 = vsel %vm4248_vm8, %v4206_v32, %v4280_v11  ;;  %5996 = vmatpush3.bf16.msra.mxu0 %v6605_v23  ;;  %6060 = vmatpush3.bf16.msra.mxu1 %v6605_v23 }
 0x3d3   :  { %v4102_v12 = vpop.f32.mrf.mxu0  ;;  %v4211_v60 = vpop.f32.mrf.mxu1  ;;  %v4433_v50 = vadd.f32 %v4391_v0, %v4390_v35  ;;  %v4392_v24 = vmul.f32 %v8992_v56, %v8992_v56 }
 0x3d4   :  { %v4103_v22 = vadd.f32 %v4102_v12, %v8827_v2  ;;  %v4282_v27 = vmul.f32 0.02, %v4210_v10  ;;  %v4212_v61 = vadd.f32 %v4211_v60, %v4099_v1  ;;  %4354 = vadd.xlane.f32.xlu1 %v4353_v37  ;;  %4431 = vadd.xlane.f32.xlu0 %v4430_v59  ;;  %v8994_v3 = vsel %vm4249_vm9, %v4208_v43, %v4281_v38 }
 0x3d5   :  { %v4104_v25 = vpop.f32.mrf.mxu0  ;;  %vm4250_vm10 = vcmp.gt.f32.partialorder %v4210_v10, 0.0  ;;  %v4356_v63 = vadd.f32 %v8994_v3, %v8992_v56  ;;  %v4393_v36 = vmul.f32 %v8994_v3, %v8994_v3 }
 0x3d6   :  { %v4215_v34 = vpop.f32.mrf.mxu1  ;;  %v4105_v41 = vadd.f32 %v4104_v25, %v8830_v20  ;;  %vm4251_vm11 = vcmp.gt.f32.partialorder %v4212_v61, 0.0  ;;  %v4283_v53 = vmul.f32 0.02, %v4212_v61  ;;  %v9005_v48 = vsel %vm4250_vm10, %v4210_v10, %v4282_v27 }
 0x3d7   :  { %v4216_v58 = vadd.f32 %v4215_v34, %v4103_v22  ;;  %v4106_v40 = vpop.f32.mrf.mxu0  ;;  %v4436_v6 = vadd.f32 %v4393_v36, %v4392_v24  ;;  %v4394_v10 = vmul.f32 %v9005_v48, %v9005_v48 }
 0x3d8   :  { %v4217_v32 = vpop.f32.mrf.mxu1  ;;  %v4107_v18 = vadd.f32 %v4106_v40, %v8827_v2  ;;  %4434 = vadd.xlane.f32.xlu1 %v4433_v50  ;;  %4357 = vadd.xlane.f32.xlu0 %v4356_v63  ;;  %v9008_v11 = vsel %vm4251_vm11, %v4212_v61, %v4283_v53 }
 0x3d9   :  { %v4284_v16 = vmul.f32 0.02, %v4216_v58  ;;  %v4218_v54 = vadd.f32 %v4217_v32, %v4105_v41  ;;  %v4108_v52 = vpop.f32.mrf.mxu0  ;;  %vm4252_vm12 = vcmp.gt.f32.partialorder %v4216_v58, 0.0  ;;  %v4359_v2 = vadd.f32 %v9008_v11, %v9005_v48 }
 0x3da   :  { %v4219_v43 = vpop.f32.mrf.mxu1  ;;  %v4109_v4 = vadd.f32 %v4108_v52, %v8830_v20  ;;  %v4395_v59 = vmul.f32 %v9008_v11, %v9008_v11 }
 0x3db   :  { %vm4253_vm13 = vcmp.gt.f32.partialorder %v4218_v54, 0.0  ;;  %v4285_v1 = vmul.f32 0.02, %v4218_v54  ;;  %v4220_v37 = vadd.f32 %v4219_v43, %v4107_v18  ;;  %v9018_v0 = vsel %vm4252_vm12, %v4216_v58, %v4284_v16 }
 0x3dc   :  { %v4221_v38 = vpop.f32.mrf.mxu1  ;;  %4360 = vadd.xlane.f32.xlu1 %v4359_v2  ;;  %4437 = vadd.xlane.f32.xlu0 %v4436_v6  ;;  %v4439_v27 = vadd.f32 %v4395_v59, %v4394_v10  ;;  %v4396_v41 = vmul.f32 %v9018_v0, %v9018_v0 }
 0x3dd   :  { %v4286_v12 = vmul.f32 0.02, %v4220_v37  ;;  %v4222_v20 = vadd.f32 %v4221_v38, %v4109_v4  ;;  %v9020_v60 = vsel %vm4253_vm13, %v4218_v54, %v4285_v1  ;;  %vm4254_vm14 = vcmp.gt.f32.partialorder %v4220_v37, 0.0 }
 0x3de   :  { %v4362_v22 = vadd.f32 %v9020_v60, %v9018_v0  ;;  %v4397_v61 = vmul.f32 %v9020_v60, %v9020_v60 }
 0x3df   :  { %vm4255_vm15 = vcmp.gt.f32.partialorder %v4222_v20, 0.0  ;;  %v4287_v35 = vmul.f32 0.02, %v4222_v20  ;;  %v9026_v25 = vsel %vm4254_vm14, %v4220_v37, %v4286_v12 }
 0x3e0   :  { %4440 = vadd.xlane.f32.xlu1 %v4439_v27  ;;  %4363 = vadd.xlane.f32.xlu0 %v4362_v22  ;;  %v4442_v36 = vadd.f32 %v4397_v61, %v4396_v41  ;;  %v4398_v58 = vmul.f32 %v9026_v25, %v9026_v25 }
 0x3e1   :  { %v9028_v34 = vsel %vm4255_vm15, %v4222_v20, %v4287_v35 }
 0x3e2   :  { %v4365_v63 = vadd.f32 %v9028_v34, %v9026_v25  ;;  %v4399_v53 = vmul.f32 %v9028_v34, %v9028_v34 }
 0x3e4   :  { %4366 = vadd.xlane.f32.xlu1 %v4365_v63  ;;  %4443 = vadd.xlane.f32.xlu0 %v4442_v36  ;;  %v4445_v50 = vadd.f32 %v4399_v53, %v4398_v58  ;;  %v4624_v63 = vld [vmem:[%s9535_s7] sm:$0x3] }
 0x3e8   :  { %4446 = vadd.xlane.f32.xlu1 %v4445_v50 }
 0x41c   :  { %v4322_v40 = vpop.xlane.xlu0 %4321 }
 0x41d   :  { %v4448_v31 = vmul.f32 0.00390625, %v4322_v40 }
 0x41f   :  { %v4480_v24 = vmul.f32 %v4448_v31, %v4448_v31  ;;  %v4528_v50 = vsub.f32 %v8836_v44, %v4448_v31  ;;  %v9060_v44 = vrot.slane %v4624_v63, %v9870_v29 }
 0x420   :  { %v4325_v23 = vpop.xlane.xlu1 %4324  ;;  %v4402_v32 = vpop.xlane.xlu0 %4401 }
 0x421   :  { %v4449_v18 = vmul.f32 0.00390625, %v4325_v23  ;;  %v4464_v16 = vmul.f32 0.00390625, %v4402_v32 }
 0x423   :  { %v4496_v54 = vsub.f32 %v4464_v16, %v4480_v24  ;;  %v4481_v4 = vmul.f32 %v4449_v18, %v4449_v18  ;;  %v4529_v24 = vsub.f32 %v8838_v28, %v4448_v31  ;;  %v9052_v16 = vrot.slane %v4624_v63, %v9869_v42 }
 0x424   :  { %v4405_v52 = vpop.xlane.xlu1 %4404 }
 0x425   :  { %v4512_v43 = vmax.f32 %v4496_v54, 0.0  ;;  %v4465_v2 = vmul.f32 0.00390625, %v4405_v52 }
 0x427   :  { %v4560_v6 = vadd.f32 1e-05, %v4512_v43  ;;  %v4497_v1 = vsub.f32 %v4465_v2, %v4481_v4  ;;  %v4668_v2 = vld [vmem:[%s9536_s8] sm:$0x3] }
 0x429   :  { %6638 = vrsqrt.f32 %v4560_v6  ;;  %v4513_v37 = vmax.f32 %v4497_v1, 0.0  ;;  %v4530_v1 = vsub.f32 %v8846_v33, %v4449_v18 }
 0x42b   :  { %v4328_v59 = vpop.xlane.xlu0 %4327  ;;  %v4561_v38 = vadd.f32 1e-05, %v4513_v37  ;;  %v4531_v37 = vsub.f32 %v8848_v57, %v4449_v18  ;;  %v9074_v57 = vrot.slane %v4668_v2, %v9870_v29 }
 0x42c   :  { %v9038_v10 = vmul.f32 0.00390625, %v4328_v59 }
 0x42d   :  { %6640 = vrsqrt.f32 %v4561_v38 }
 0x42e   :  { %v4482_v35 = vmul.f32 %v9038_v10, %v9038_v10 }
 0x42f   :  { %v4331_v12 = vpop.xlane.xlu1 %4330  ;;  %v4408_v20 = vpop.xlane.xlu0 %4407 }
 0x430   :  { %v9040_v22 = vmul.f32 0.00390625, %v4331_v12  ;;  %v4466_v27 = vmul.f32 0.00390625, %v4408_v20 }
 0x432   :  { %v4498_v61 = vsub.f32 %v4466_v27, %v4482_v35  ;;  %v4483_v53 = vmul.f32 %v9040_v22, %v9040_v22  ;;  %v9068_v35 = vrot.slane %v4668_v2, %v9869_v42 }
 0x433   :  { %v4411_v41 = vpop.xlane.xlu1 %4410 }
 0x434   :  { %v4514_v36 = vmax.f32 %v4498_v61, 0.0  ;;  %v4467_v58 = vmul.f32 0.00390625, %v4411_v41 }
 0x436   :  { %v4562_v40 = vadd.f32 1e-05, %v4514_v36  ;;  %v4499_v23 = vsub.f32 %v4467_v58, %v4483_v53  ;;  %v6639_v32 = vpop.eup %6638 }
 0x437   :  { %v4592_v52 = vmul.f32 %v6639_v32, %v4528_v50  ;;  %v4593_v6 = vmul.f32 %v6639_v32, %v4529_v24 }
 0x438   :  { %6642 = vrsqrt.f32 %v4562_v40  ;;  %v4515_v43 = vmax.f32 %v4499_v23, 0.0 }
 0x439   :  { %v4334_v54 = vpop.xlane.xlu0 %4333  ;;  %v4636_v59 = vmul.f32 %v9052_v16, %v4592_v52  ;;  %v4637_v63 = vmul.f32 %v9060_v44, %v4593_v6 }
 0x43a   :  { %v9054_v4 = vmul.f32 0.00390625, %v4334_v54  ;;  %v4563_v28 = vadd.f32 1e-05, %v4515_v43  ;;  %v6641_v31 = vpop.eup %6640 }
 0x43b   :  { %v4594_v27 = vmul.f32 %v6641_v31, %v4530_v1  ;;  %v4595_v33 = vmul.f32 %v6641_v31, %v4531_v37  ;;  %v4680_v50 = vadd.f32 %v9068_v35, %v4636_v59  ;;  %v4681_v54 = vadd.f32 %v9074_v57, %v4637_v63 }
 0x43c   :  { %v4484_v12 = vmul.f32 %v9054_v4, %v9054_v4  ;;  %6644 = vrsqrt.f32 %v4563_v28  ;;  %v4532_v31 = vsub.f32 %v8860_v47, %v9038_v10  ;;  %v4533_v37 = vsub.f32 %v8862_v62, %v9038_v10 }
 0x43d   :  { %v4337_v38 = vpop.xlane.xlu1 %4336  ;;  %v4414_v20 = vpop.xlane.xlu0 %4413  ;;  %v4638_v18 = vmul.f32 %v9052_v16, %v4594_v27  ;;  %v4639_v58 = vmul.f32 %v9060_v44, %v4595_v33  ;;  %v4535_v33 = vsub.f32 %v8873_v9, %v9040_v22 }
 0x43e   :  { %v9070_v61 = vmul.f32 0.00390625, %v4337_v38  ;;  %v4468_v41 = vmul.f32 0.00390625, %v4414_v20 }
 0x43f   :  { %v4682_v24 = vadd.f32 %v9068_v35, %v4638_v18  ;;  %v4683_v29 = vadd.f32 %v9074_v57, %v4639_v58 }
 0x440   :  { %v4500_v36 = vsub.f32 %v4468_v41, %v4484_v12  ;;  %v4485_v23 = vmul.f32 %v9070_v61, %v9070_v61  ;;  %v4534_v41 = vsub.f32 %v8871_v21, %v9040_v22 }
 0x441   :  { %v4417_v53 = vpop.xlane.xlu1 %4416  ;;  %v4712_v2 = vpack.c.bf16 %v4682_v24, %v4680_v50  ;;  %v4713_v6 = vpack.c.bf16 %v4683_v29, %v4681_v54 }
 0x442   :  { %v4516_v40 = vmax.f32 %v4500_v36, 0.0  ;;  %v4469_v32 = vmul.f32 0.00390625, %v4417_v53 }
 0x443   :  { %4895 = vmatprep.mubr.bf16.mxu0 %v4713_v6 }
 0x444   :  { %v4564_v52 = vadd.f32 1e-05, %v4516_v40  ;;  %v4501_v43 = vsub.f32 %v4469_v32, %v4485_v23  ;;  %4896 = vmatmul.mubr.bf16.vlgmr.msra.gmra.mxu0 %v4712_v2 }
 0x445   :  { %v6643_v28 = vpop.eup %6642  ;;  %v4340_v59 = vpop.xlane.xlu0 %4339 }
 0x446   :  { %6646 = vrsqrt.f32 %v4564_v52  ;;  %v4517_v1 = vmax.f32 %v4501_v43, 0.0  ;;  %v9088_v12 = vmul.f32 0.00390625, %v4340_v59  ;;  %v4597_v20 = vmul.f32 %v6643_v28, %v4533_v37 }
 0x447   :  { %v4596_v27 = vmul.f32 %v6643_v28, %v4532_v31  ;;  %v4536_v28 = vsub.f32 %v8884_v55, %v9054_v4 }
 0x448   :  { %v4565_v38 = vadd.f32 1e-05, %v4517_v1  ;;  %v4486_v62 = vmul.f32 %v9088_v12, %v9088_v12  ;;  %v4641_v50 = vmul.f32 %v9060_v44, %v4597_v20 }
 0x449   :  { %v6645_v63 = vpop.eup %6644  ;;  %v4343_v47 = vpop.xlane.xlu1 %4342  ;;  %v4640_v40 = vmul.f32 %v9052_v16, %v4596_v27 }
 0x44a   :  { %6648 = vrsqrt.f32 %v4565_v38  ;;  %v4420_v10 = vpop.xlane.xlu0 %4419  ;;  %v9096_v18 = vmul.f32 0.00390625, %v4343_v47  ;;  %v4599_v53 = vmul.f32 %v6645_v63, %v4535_v33  ;;  %v4598_v58 = vmul.f32 %v6645_v63, %v4534_v41 }
 0x44b   :  { %v4470_v36 = vmul.f32 0.00390625, %v4420_v10  ;;  %v4685_v43 = vadd.f32 %v9074_v57, %v4641_v50  ;;  %v4684_v6 = vadd.f32 %v9068_v35, %v4640_v40  ;;  %v4537_v38 = vsub.f32 %v8886_v5, %v9054_v4 }
 0x44c   :  { %v4643_v9 = vmul.f32 %v9060_v44, %v4599_v53  ;;  %v4642_v22 = vmul.f32 %v9052_v16, %v4598_v58  ;;  %v4487_v54 = vmul.f32 %v9096_v18, %v9096_v18  ;;  %v4538_v5 = vsub.f32 %v8895_v8, %v9070_v61 }
 0x44d   :  { %v4502_v21 = vsub.f32 %v4470_v36, %v4486_v62  ;;  %v4423_v23 = vpop.xlane.xlu1 %4422  ;;  %v4539_v4 = vsub.f32 %v8897_v15, %v9070_v61 }
 0x44e   :  { %v4471_v29 = vmul.f32 0.00390625, %v4423_v23  ;;  %v4687_v2 = vadd.f32 %v9074_v57, %v4643_v9  ;;  %v4686_v1 = vadd.f32 %v9068_v35, %v4642_v22 }
 0x44f   :  { %v4518_v24 = vmax.f32 %v4502_v21, 0.0 }
 0x450   :  { %v4503_v37 = vsub.f32 %v4471_v29, %v4487_v54  ;;  %v4715_v33 = vpack.c.bf16 %v4687_v2, %v4685_v43  ;;  %v4714_v63 = vpack.c.bf16 %v4686_v1, %v4684_v6 }
 0x451   :  { %v4346_v32 = vpop.xlane.xlu0 %4345  ;;  %v4566_v31 = vadd.f32 1e-05, %v4518_v24 }
 0x452   :  { %v9104_v52 = vmul.f32 0.00390625, %v4346_v32  ;;  %v4519_v47 = vmax.f32 %v4503_v37, 0.0  ;;  %4903 = vmatprep.mubr.bf16.mxu0 %v4715_v33 }
 0x453   :  { %v6647_v59 = vpop.eup %6646  ;;  %6650 = vrsqrt.f32 %v4566_v31  ;;  %4904 = vmatmul.mubr.bf16.gmra.mxu0 %v4714_v63 }
 0x454   :  { %v4488_v27 = vmul.f32 %v9104_v52, %v9104_v52  ;;  %v4601_v55 = vmul.f32 %v6647_v59, %v4537_v38  ;;  %v4600_v36 = vmul.f32 %v6647_v59, %v4536_v28  ;;  %v4567_v53 = vadd.f32 1e-05, %v4519_v47 }
 0x455   :  { %v4349_v20 = vpop.xlane.xlu1 %4348  ;;  %v4426_v41 = vpop.xlane.xlu0 %4425 }
 0x456   :  { %v9116_v62 = vmul.f32 0.00390625, %v4349_v20  ;;  %v4472_v10 = vmul.f32 0.00390625, %v4426_v41  ;;  %6652 = vrsqrt.f32 %v4567_v53  ;;  %v4645_v54 = vmul.f32 %v9060_v44, %v4601_v55 }
 0x457   :  { %v6649_v50 = vpop.eup %6648  ;;  %v4644_v43 = vmul.f32 %v9052_v16, %v4600_v36 }
 0x458   :  { %v4504_v58 = vsub.f32 %v4472_v10, %v4488_v27  ;;  %v4489_v40 = vmul.f32 %v9116_v62, %v9116_v62  ;;  %v4603_v24 = vmul.f32 %v6649_v50, %v4539_v4  ;;  %v4602_v29 = vmul.f32 %v6649_v50, %v4538_v5 }
 0x459   :  { %v4429_v21 = vpop.xlane.xlu1 %4428  ;;  %v4352_v23 = vpop.xlane.xlu0 %4351  ;;  %v4689_v38 = vadd.f32 %v9074_v57, %v4645_v54  ;;  %v4688_v27 = vadd.f32 %v9068_v35, %v4644_v43 }
 0x45a   :  { %v4520_v32 = vmax.f32 %v4504_v58, 0.0  ;;  %v4473_v9 = vmul.f32 0.00390625, %v4429_v21  ;;  %v9124_v22 = vmul.f32 0.00390625, %v4352_v23  ;;  %v4647_v1 = vmul.f32 %v9060_v44, %v4603_v24 }
 0x45b   :  { %v4646_v28 = vmul.f32 %v9052_v16, %v4602_v29  ;;  %v4541_v21 = vsub.f32 %v8912_v26, %v9088_v12  ;;  %v4542_v26 = vsub.f32 %v8923_v13, %v9096_v18 }
 0x45c   :  { %v4568_v8 = vadd.f32 1e-05, %v4520_v32  ;;  %v4505_v2 = vsub.f32 %v4473_v9, %v4489_v40  ;;  %v4490_v15 = vmul.f32 %v9124_v22, %v9124_v22  ;;  %v4691_v20 = vadd.f32 %v9074_v57, %v4647_v1 }
 0x45d   :  { %v4355_v6 = vpop.xlane.xlu1 %4354  ;;  %v4432_v61 = vpop.xlane.xlu0 %4431  ;;  %v4690_v41 = vadd.f32 %v9068_v35, %v4646_v28  ;;  %v4540_v40 = vsub.f32 %v8910_v14, %v9088_v12  ;;  %v4543_v12 = vsub.f32 %v8926_v19, %v9096_v18 }
 0x45e   :  { %6654 = vrsqrt.f32 %v4568_v8  ;;  %v4521_v31 = vmax.f32 %v4505_v2, 0.0  ;;  %v9132_v37 = vmul.f32 0.00390625, %v4355_v6  ;;  %v4474_v59 = vmul.f32 0.00390625, %v4432_v61 }
 0x45f   :  { %v4717_v36 = vpack.c.bf16 %v4691_v20, %v4689_v38  ;;  %v4716_v53 = vpack.c.bf16 %v4690_v41, %v4688_v27  ;;  %v4545_v61 = vsub.f32 %v8940_v51, %v9104_v52  ;;  %v4546_v51 = vsub.f32 %v8951_v7, %v9116_v62 }
 0x460   :  { %v4569_v33 = vadd.f32 1e-05, %v4521_v31  ;;  %v4506_v63 = vsub.f32 %v4474_v59, %v4490_v15  ;;  %v4491_v47 = vmul.f32 %v9132_v37, %v9132_v37  ;;  %v6651_v4 = vpop.eup %6650  ;;  %v4544_v15 = vsub.f32 %v8937_v49, %v9104_v52 }
 0x461   :  { %v4435_v10 = vpop.xlane.xlu1 %4434  ;;  %v4358_v55 = vpop.xlane.xlu0 %4357  ;;  %4911 = vmatprep.mubr.bf16.mxu0 %v4717_v36  ;;  %v4605_v29 = vmul.f32 %v6651_v4, %v4541_v21  ;;  %v4604_v43 = vmul.f32 %v6651_v4, %v4540_v40  ;;  %v4547_v52 = vsub.f32 %v8954_v45, %v9116_v62 }
 0x462   :  { %6656 = vrsqrt.f32 %v4569_v33  ;;  %v4522_v58 = vmax.f32 %v4506_v63, 0.0  ;;  %v4475_v50 = vmul.f32 0.00390625, %v4435_v10  ;;  %v9140_v5 = vmul.f32 0.00390625, %v4358_v55  ;;  %4912 = vmatmul.mubr.bf16.gmra.mxu0 %v4716_v53 }
 0x463   :  { %v6653_v14 = vpop.eup %6652  ;;  %v4649_v31 = vmul.f32 %v9060_v44, %v4605_v29  ;;  %v4648_v41 = vmul.f32 %v9052_v16, %v4604_v43 }
 0x464   :  { %v4570_v23 = vadd.f32 1e-05, %v4522_v58  ;;  %v4507_v32 = vsub.f32 %v4475_v50, %v4491_v47  ;;  %v4492_v24 = vmul.f32 %v9140_v5, %v9140_v5  ;;  %v4607_v27 = vmul.f32 %v6653_v14, %v4543_v12 }
 0x465   :  { %v4361_v9 = vpop.xlane.xlu1 %4360  ;;  %v4438_v54 = vpop.xlane.xlu0 %4437  ;;  %v4606_v13 = vmul.f32 %v6653_v14, %v4542_v26  ;;  %v4693_v53 = vadd.f32 %v9074_v57, %v4649_v31  ;;  %v4692_v7 = vadd.f32 %v9068_v35, %v4648_v41  ;;  %v4549_v14 = vsub.f32 %v8967_v17, %v9124_v22 }
 0x466   :  { %6658 = vrsqrt.f32 %v4570_v23  ;;  %v4523_v8 = vmax.f32 %v4507_v32, 0.0  ;;  %v9148_v2 = vmul.f32 0.00390625, %v4361_v9  ;;  %v4476_v6 = vmul.f32 0.00390625, %v4438_v54 }
 0x467   :  { %v4651_v63 = vmul.f32 %v9060_v44, %v4607_v27  ;;  %v4650_v47 = vmul.f32 %v9052_v16, %v4606_v13 }
 0x468   :  { %v4571_v1 = vadd.f32 1e-05, %v4523_v8  ;;  %v4508_v28 = vsub.f32 %v4476_v6, %v4492_v24  ;;  %v4493_v59 = vmul.f32 %v9148_v2, %v9148_v2  ;;  %v4548_v8 = vsub.f32 %v8964_v39, %v9124_v22 }
 0x469   :  { %v4441_v38 = vpop.xlane.xlu1 %4440  ;;  %v4364_v20 = vpop.xlane.xlu0 %4363  ;;  %v4695_v40 = vadd.f32 %v9074_v57, %v4651_v63  ;;  %v4694_v45 = vadd.f32 %v9068_v35, %v4650_v47 }
 0x46a   :  { %6660 = vrsqrt.f32 %v4571_v1  ;;  %v4524_v19 = vmax.f32 %v4508_v28, 0.0  ;;  %v4477_v18 = vmul.f32 0.00390625, %v4441_v38  ;;  %v9162_v49 = vmul.f32 0.00390625, %v4364_v20 }
 0x46b   :  { %v6655_v33 = vpop.eup %6654  ;;  %v4719_v24 = vpack.c.bf16 %v4695_v40, %v4693_v53  ;;  %v4718_v54 = vpack.c.bf16 %v4694_v45, %v4692_v7 }
 0x46c   :  { %v4608_v10 = vmul.f32 %v6655_v33, %v4544_v15  ;;  %v4572_v55 = vadd.f32 1e-05, %v4524_v19  ;;  %v4509_v36 = vsub.f32 %v4477_v18, %v4493_v59  ;;  %v4494_v50 = vmul.f32 %v9162_v49, %v9162_v49 }
 0x46d   :  { %v4367_v58 = vpop.xlane.xlu1 %4366  ;;  %v4444_v4 = vpop.xlane.xlu0 %4443  ;;  %v4609_v29 = vmul.f32 %v6655_v33, %v4545_v61  ;;  %4919 = vmatprep.mubr.bf16.mxu0 %v4719_v24  ;;  %v4550_v33 = vsub.f32 %v8978_v30, %v9132_v37  ;;  %v4553_v30 = vsub.f32 %v8994_v3, %v9140_v5  ;;  %v4554_v3 = vsub.f32 %v9005_v48, %v9148_v2 }
 0x46e   :  { %v4652_v62 = vmul.f32 %v9052_v16, %v4608_v10  ;;  %6662 = vrsqrt.f32 %v4572_v55  ;;  %v4525_v21 = vmax.f32 %v4509_v36, 0.0  ;;  %v9177_v23 = vmul.f32 0.00390625, %v4367_v58  ;;  %4920 = vmatmul.mubr.bf16.gmra.mxu0 %v4718_v54 }
 0x46f   :  { %v6657_v32 = vpop.eup %6656  ;;  %v4478_v9 = vmul.f32 0.00390625, %v4444_v4  ;;  %v4653_v1 = vmul.f32 %v9060_v44, %v4609_v29  ;;  %v4552_v4 = vsub.f32 %v8992_v56, %v9140_v5  ;;  %v4555_v5 = vsub.f32 %v9008_v11, %v9148_v2 }
 0x470   :  { %v4610_v43 = vmul.f32 %v6657_v32, %v4546_v51  ;;  %v4573_v6 = vadd.f32 1e-05, %v4525_v21  ;;  %v4611_v15 = vmul.f32 %v6657_v32, %v4547_v52  ;;  %v4495_v61 = vmul.f32 %v9177_v23, %v9177_v23 }
 0x471   :  { %v4510_v26 = vsub.f32 %v4478_v9, %v4494_v50  ;;  %v4447_v12 = vpop.xlane.xlu1 %4446  ;;  %v4696_v17 = vadd.f32 %v9068_v35, %v4652_v62  ;;  %v4697_v19 = vadd.f32 %v9074_v57, %v4653_v1  ;;  %v4551_v51 = vsub.f32 %v8981_v46, %v9132_v37 }
 0x472   :  { %v4654_v28 = vmul.f32 %v9052_v16, %v4610_v43  ;;  %6664 = vrsqrt.f32 %v4573_v6  ;;  %v4479_v31 = vmul.f32 0.00390625, %v4447_v12  ;;  %v4655_v38 = vmul.f32 %v9060_v44, %v4611_v15 }
 0x473   :  { %v6659_v59 = vpop.eup %6658  ;;  %v4526_v39 = vmax.f32 %v4510_v26, 0.0  ;;  %v4556_v48 = vsub.f32 %v9018_v0, %v9162_v49  ;;  %v4557_v11 = vsub.f32 %v9020_v60, %v9162_v49  ;;  %v4559_v0 = vsub.f32 %v9028_v34, %v9177_v23 }
 0x474   :  { %v4511_v22 = vsub.f32 %v4479_v31, %v4495_v61  ;;  %v4698_v20 = vadd.f32 %v9068_v35, %v4654_v28  ;;  %v4613_v27 = vmul.f32 %v6659_v59, %v4549_v14  ;;  %v4612_v13 = vmul.f32 %v6659_v59, %v4548_v8 }
 0x475   :  { %v4574_v41 = vadd.f32 1e-05, %v4526_v39  ;;  %v4699_v18 = vadd.f32 %v9074_v57, %v4655_v38  ;;  %v4558_v59 = vsub.f32 %v9026_v25, %v9177_v23 }
 0x476   :  { %v4527_v52 = vmax.f32 %v4511_v22, 0.0  ;;  %v4720_v63 = vpack.c.bf16 %v4698_v20, %v4696_v17  ;;  %v4657_v55 = vmul.f32 %v9060_v44, %v4613_v27  ;;  %v4656_v36 = vmul.f32 %v9052_v16, %v4612_v13 }
 0x477   :  { %v6661_v47 = vpop.eup %6660  ;;  %6666 = vrsqrt.f32 %v4574_v41  ;;  %v4721_v10 = vpack.c.bf16 %v4699_v18, %v4697_v19 }
 0x478   :  { %v4575_v53 = vadd.f32 1e-05, %v4527_v52  ;;  %v4615_v58 = vmul.f32 %v6661_v47, %v4551_v51  ;;  %v4614_v50 = vmul.f32 %v6661_v47, %v4550_v33  ;;  %v4701_v7 = vadd.f32 %v9074_v57, %v4657_v55  ;;  %v9239_v51 = vld [vmem:[%s9538_s10] ss:$0 sm:$0xff] }
 0x479   :  { %4927 = vmatprep.mubr.bf16.mxu1 %v4721_v10  ;;  %v4700_v45 = vadd.f32 %v9068_v35, %v4656_v36 }
 0x47a   :  { %6668 = vrsqrt.f32 %v4575_v53  ;;  %4928 = vmatmul.mubr.bf16.vlgmr.msra.gmra.mxu1 %v4720_v63  ;;  %v4659_v46 = vmul.f32 %v9060_v44, %v4615_v58  ;;  %v4658_v37 = vmul.f32 %v9052_v16, %v4614_v50 }
 0x47b   :  { %v6663_v40 = vpop.eup %6662 }
 0x47c   :  { %v4703_v62 = vadd.f32 %v9074_v57, %v4659_v46  ;;  %v4702_v21 = vadd.f32 %v9068_v35, %v4658_v37  ;;  %v4617_v56 = vmul.f32 %v6663_v40, %v4553_v30  ;;  %v4616_v32 = vmul.f32 %v6663_v40, %v4552_v4 }
 0x47e   :  { %v4723_v9 = vpack.c.bf16 %v4703_v62, %v4701_v7  ;;  %v4722_v24 = vpack.c.bf16 %v4702_v21, %v4700_v45  ;;  %v4661_v43 = vmul.f32 %v9060_v44, %v4617_v56  ;;  %v4660_v6 = vmul.f32 %v9052_v16, %v4616_v32 }
 0x47f   :  { %v6665_v54 = vpop.eup %6664 }
 0x480   :  { %4935 = vmatprep.mubr.bf16.mxu1 %v4723_v9  ;;  %v4619_v29 = vmul.f32 %v6665_v54, %v4555_v5  ;;  %v4618_v8 = vmul.f32 %v6665_v54, %v4554_v3  ;;  %v4705_v12 = vadd.f32 %v9074_v57, %v4661_v43  ;;  %v4704_v1 = vadd.f32 %v9068_v35, %v4660_v6 }
 0x482   :  { %4936 = vmatmul.mubr.bf16.gmra.mxu1 %v4722_v24  ;;  %v4663_v14 = vmul.f32 %v9060_v44, %v4619_v29  ;;  %v4662_v26 = vmul.f32 %v9052_v16, %v4618_v8 }
 0x484   :  { %v6667_v2 = vpop.eup %6666  ;;  %v4707_v15 = vadd.f32 %v9074_v57, %v4663_v14  ;;  %v4706_v28 = vadd.f32 %v9068_v35, %v4662_v26 }
 0x485   :  { %v4621_v61 = vmul.f32 %v6667_v2, %v4557_v11  ;;  %v4620_v31 = vmul.f32 %v6667_v2, %v4556_v48 }
 0x486   :  { %v4725_v39 = vpack.c.bf16 %v4707_v15, %v4705_v12  ;;  %v4724_v38 = vpack.c.bf16 %v4706_v28, %v4704_v1 }
 0x487   :  { %v6669_v60 = vpop.eup %6668  ;;  %v4665_v17 = vmul.f32 %v9060_v44, %v4621_v61  ;;  %v4664_v20 = vmul.f32 %v9052_v16, %v4620_v31 }
 0x488   :  { %4943 = vmatprep.mubr.bf16.mxu1 %v4725_v39  ;;  %v4623_v49 = vmul.f32 %v6669_v60, %v4559_v0  ;;  %v4622_v22 = vmul.f32 %v6669_v60, %v4558_v59 }
 0x489   :  { %v4709_v25 = vadd.f32 %v9074_v57, %v4665_v17  ;;  %v4708_v34 = vadd.f32 %v9068_v35, %v4664_v20 }
 0x48a   :  { %4944 = vmatmul.mubr.bf16.gmra.mxu1 %v4724_v38  ;;  %v4667_v27 = vmul.f32 %v9060_v44, %v4623_v49  ;;  %v4666_v13 = vmul.f32 %v9052_v16, %v4622_v22 }
 0x48c   :  { %v4711_v41 = vadd.f32 %v9074_v57, %v4667_v27  ;;  %v4710_v23 = vadd.f32 %v9068_v35, %v4666_v13 }
 0x48e   :  { %v4727_v19 = vpack.c.bf16 %v4711_v41, %v4709_v25  ;;  %v4726_v18 = vpack.c.bf16 %v4710_v23, %v4708_v34 }
 0x490   :  { %4951 = vmatprep.mubr.bf16.mxu1 %v4727_v19 }
 0x492   :  { %4952 = vmatmul.mubr.bf16.gmra.mxu1 %v4726_v18 }
 0x504   :  { %v5997_v33 = vpop.f32.mrf.mxu0 }
 0x506   :  { %v5998_v44 = vpop.f32.mrf.mxu0 }
 0x507   :  { %v5999_v16 = vadd.f32 %v5998_v44, %v5997_v33 }
 0x508   :  { %v6000_v52 = vpop.f32.mrf.mxu0 }
 0x509   :  { %v4898_v63 = vadd.f32 %v5999_v16, %v9239_v51 }
 0x50a   :  { %v6001_v57 = vpop.f32.mrf.mxu0 }
 0x50b   :  { %v6002_v47 = vadd.f32 %v6001_v57, %v6000_v52  ;;  %vm4960_vm0 = vcmp.gt.f32.partialorder %v4898_v63, 0.0  ;;  %v4976_v10 = vmul.f32 0.02, %v4898_v63 }
 0x50d   :  { %v4901_v35 = vadd.f32 %v6002_v47, %v9239_v51  ;;  %v9243_v55 = vsel %vm4960_vm0, %v4898_v63, %v4976_v10  ;;  %vm5482_vm0 = vcmask 130112  }
 0x50e   :  { %5008 = vadd.xlane.f32.xlu0 %v9243_v55  ;;  %v5040_v53 = vmul.f32 %v9243_v55, %v9243_v55 }
 0x50f   :  { %vm4961_vm1 = vcmp.gt.f32.partialorder %v4901_v35, 0.0  ;;  %v4977_v36 = vmul.f32 0.02, %v4901_v35 }
 0x511   :  { %v9248_v58 = vsel %vm4961_vm1, %v4901_v35, %v4977_v36  ;;  %vm5489_vm1 = vcmask 195712  }
 0x512   :  { %5010 = vadd.xlane.f32.xlu1 %v9248_v58  ;;  %5056 = vadd.xlane.f32.xlu0 %v5040_v53  ;;  %v5041_v30 = vmul.f32 %v9248_v58, %v9248_v58 }
 0x513   :  { %v6003_v50 = vpop.f32.mrf.mxu0 }
 0x515   :  { %v6004_v4 = vpop.f32.mrf.mxu0 }
 0x516   :  { %v6005_v46 = vadd.f32 %v6004_v4, %v6003_v50  ;;  %5058 = vadd.xlane.f32.xlu1 %v5041_v30 }
 0x517   :  { %v6006_v37 = vpop.f32.mrf.mxu0 }
 0x518   :  { %v4906_v40 = vadd.f32 %v6005_v46, %v9239_v51 }
 0x519   :  { %v6007_v7 = vpop.f32.mrf.mxu0 }
 0x51a   :  { %v6008_v45 = vadd.f32 %v6007_v7, %v6006_v37  ;;  %vm4962_vm2 = vcmp.gt.f32.partialorder %v4906_v40, 0.0  ;;  %v4978_v62 = vmul.f32 0.02, %v4906_v40 }
 0x51c   :  { %v4909_v21 = vadd.f32 %v6008_v45, %v9239_v51  ;;  %v9255_v56 = vsel %vm4962_vm2, %v4906_v40, %v4978_v62  ;;  %vm5496_vm2 = vcmask 261312  }
 0x51d   :  { %5012 = vadd.xlane.f32.xlu0 %v9255_v56  ;;  %v5042_v32 = vmul.f32 %v9255_v56, %v9255_v56 }
 0x51e   :  { %v4979_v3 = vmul.f32 0.02, %v4909_v21  ;;  %vm4963_vm3 = vcmp.gt.f32.partialorder %v4909_v21, 0.0 }
 0x51f   :  { %5060 = vadd.xlane.f32.xlu1 %v5042_v32 }
 0x520   :  { %v9260_v54 = vsel %vm4963_vm3, %v4909_v21, %v4979_v3  ;;  %vm5503_vm3 = vcmask 326912  }
 0x521   :  { %v5043_v6 = vmul.f32 %v9260_v54, %v9260_v54 }
 0x522   :  { %v6009_v5 = vpop.f32.mrf.mxu0 }
 0x523   :  { %5014 = vadd.xlane.f32.xlu1 %v9260_v54 }
 0x524   :  { %v6010_v9 = vpop.f32.mrf.mxu0 }
 0x525   :  { %v6011_v24 = vadd.f32 %v6010_v9, %v6009_v5 }
 0x526   :  { %v6012_v29 = vpop.f32.mrf.mxu0 }
 0x527   :  { %v4914_v43 = vadd.f32 %v6011_v24, %v9239_v51  ;;  %5062 = vadd.xlane.f32.xlu1 %v5043_v6 }
 0x528   :  { %v6013_v8 = vpop.f32.mrf.mxu0 }
 0x529   :  { %v6014_v14 = vadd.f32 %v6013_v8, %v6012_v29  ;;  %vm4964_vm4 = vcmp.gt.f32.partialorder %v4914_v43, 0.0  ;;  %v4980_v26 = vmul.f32 0.02, %v4914_v43 }
 0x52b   :  { %v4917_v48 = vadd.f32 %v6014_v14, %v9239_v51  ;;  %v9267_v11 = vsel %vm4964_vm4, %v4914_v43, %v4980_v26  ;;  %vm5510_vm4 = vcmask 392512  }
 0x52c   :  { %5016 = vadd.xlane.f32.xlu0 %v9267_v11  ;;  %v5044_v2 = vmul.f32 %v9267_v11, %v9267_v11 }
 0x52d   :  { %vm4965_vm5 = vcmp.gt.f32.partialorder %v4917_v48, 0.0  ;;  %v4981_v12 = vmul.f32 0.02, %v4917_v48 }
 0x52e   :  { %5064 = vadd.xlane.f32.xlu1 %v5044_v2  ;;  %v6015_v1 = vpop.f32.mrf.mxu0 }
 0x52f   :  { %v9272_v15 = vsel %vm4965_vm5, %v4917_v48, %v4981_v12  ;;  %vm5517_vm5 = vcmask 458112  }
 0x530   :  { %5018 = vadd.xlane.f32.xlu0 %v9272_v15  ;;  %v5045_v28 = vmul.f32 %v9272_v15, %v9272_v15  ;;  %v6016_v61 = vpop.f32.mrf.mxu0 }
 0x531   :  { %v6017_v31 = vadd.f32 %v6016_v61, %v6015_v1 }
 0x532   :  { %5066 = vadd.xlane.f32.xlu1 %v5045_v28  ;;  %v6018_v59 = vpop.f32.mrf.mxu0 }
 0x533   :  { %v4922_v0 = vadd.f32 %v6017_v31, %v9239_v51 }
 0x534   :  { %v6019_v39 = vpop.f32.mrf.mxu0 }
 0x535   :  { %v6020_v38 = vadd.f32 %v6019_v39, %v6018_v59  ;;  %vm4966_vm6 = vcmp.gt.f32.partialorder %v4922_v0, 0.0  ;;  %v4982_v60 = vmul.f32 0.02, %v4922_v0 }
 0x537   :  { %v4925_v17 = vadd.f32 %v6020_v38, %v9239_v51  ;;  %v9279_v22 = vsel %vm4966_vm6, %v4922_v0, %v4982_v60  ;;  %vm5524_vm6 = vcmask 523712  }
 0x538   :  { %5020 = vadd.xlane.f32.xlu0 %v9279_v22  ;;  %v5046_v27 = vmul.f32 %v9279_v22, %v9279_v22 }
 0x539   :  { %vm4967_vm7 = vcmp.gt.f32.partialorder %v4925_v17, 0.0  ;;  %v4983_v25 = vmul.f32 0.02, %v4925_v17 }
 0x53a   :  { %v6021_v49 = vpop.f32.mrf.mxu1  ;;  %5068 = vadd.xlane.f32.xlu1 %v5046_v27 }
 0x53b   :  { %v9285_v23 = vsel %vm4967_vm7, %v4925_v17, %v4983_v25  ;;  %vm5531_vm7 = vcmask 589312  }
 0x53c   :  { %v6022_v20 = vpop.f32.mrf.mxu1  ;;  %5022 = vadd.xlane.f32.xlu0 %v9285_v23  ;;  %v5047_v18 = vmul.f32 %v9285_v23, %v9285_v23 }
 0x53d   :  { %v6023_v13 = vadd.f32 %v6022_v20, %v6021_v49 }
 0x53e   :  { %v6024_v41 = vpop.f32.mrf.mxu1  ;;  %5070 = vadd.xlane.f32.xlu1 %v5047_v18 }
 0x53f   :  { %v4930_v34 = vadd.f32 %v6023_v13, %v9239_v51 }
 0x540   :  { %v6025_v19 = vpop.f32.mrf.mxu1 }
 0x541   :  { %v6026_v33 = vadd.f32 %v6025_v19, %v6024_v41  ;;  %vm4968_vm8 = vcmp.gt.f32.partialorder %v4930_v34, 0.0  ;;  %v4984_v44 = vmul.f32 0.02, %v4930_v34 }
 0x542   :  { %v6027_v16 = vpop.f32.mrf.mxu1 }
 0x543   :  { %v4933_v52 = vadd.f32 %v6026_v33, %v9239_v51  ;;  %v9291_v63 = vsel %vm4968_vm8, %v4930_v34, %v4984_v44  ;;  %vm5538_vm8 = vcmask 654912  }
 0x544   :  { %5024 = vadd.xlane.f32.xlu0 %v9291_v63  ;;  %v6028_v57 = vpop.f32.mrf.mxu1  ;;  %v5048_v47 = vmul.f32 %v9291_v63, %v9291_v63 }
 0x545   :  { %v6029_v10 = vadd.f32 %v6028_v57, %v6027_v16  ;;  %vm4969_vm9 = vcmp.gt.f32.partialorder %v4933_v52, 0.0  ;;  %v4985_v35 = vmul.f32 0.02, %v4933_v52 }
 0x546   :  { %v6030_v36 = vpop.f32.mrf.mxu1  ;;  %5072 = vadd.xlane.f32.xlu1 %v5048_v47 }
 0x547   :  { %v4938_v53 = vadd.f32 %v6029_v10, %v9239_v51  ;;  %v9297_v50 = vsel %vm4969_vm9, %v4933_v52, %v4985_v35  ;;  %vm5545_vm9 = vcmask 720512  }
 0x548   :  { %5026 = vadd.xlane.f32.xlu0 %v9297_v50  ;;  %v6031_v4 = vpop.f32.mrf.mxu1  ;;  %v5049_v30 = vmul.f32 %v9297_v50, %v9297_v50 }
 0x549   :  { %v6032_v46 = vadd.f32 %v6031_v4, %v6030_v36  ;;  %vm4970_vm10 = vcmp.gt.f32.partialorder %v4938_v53, 0.0  ;;  %v4986_v37 = vmul.f32 0.02, %v4938_v53 }
 0x54a   :  { %v6033_v40 = vpop.f32.mrf.mxu1  ;;  %5074 = vadd.xlane.f32.xlu1 %v5049_v30 }
 0x54b   :  { %v4941_v7 = vadd.f32 %v6032_v46, %v9239_v51  ;;  %v9303_v45 = vsel %vm4970_vm10, %v4938_v53, %v4986_v37  ;;  %vm5552_vm10 = vcmask 786112  }
 0x54c   :  { %5028 = vadd.xlane.f32.xlu0 %v9303_v45  ;;  %v6034_v62 = vpop.f32.mrf.mxu1  ;;  %v5050_v21 = vmul.f32 %v9303_v45, %v9303_v45 }
 0x54d   :  { %v6035_v32 = vadd.f32 %v6034_v62, %v6033_v40  ;;  %vm4971_vm11 = vcmp.gt.f32.partialorder %v4941_v7, 0.0  ;;  %v4987_v3 = vmul.f32 0.02, %v4941_v7 }
 0x54e   :  { %v6036_v5 = vpop.f32.mrf.mxu1  ;;  %5076 = vadd.xlane.f32.xlu1 %v5050_v21 }
 0x54f   :  { %v4946_v9 = vadd.f32 %v6035_v32, %v9239_v51  ;;  %v9309_v24 = vsel %vm4971_vm11, %v4941_v7, %v4987_v3  ;;  %vm5559_vm11 = vcmask 851712  }
 0x550   :  { %5030 = vadd.xlane.f32.xlu0 %v9309_v24  ;;  %v6037_v29 = vpop.f32.mrf.mxu1  ;;  %v5051_v43 = vmul.f32 %v9309_v24, %v9309_v24 }
 0x551   :  { %v6038_v8 = vadd.f32 %v6037_v29, %v6036_v5  ;;  %vm4972_vm12 = vcmp.gt.f32.partialorder %v4946_v9, 0.0  ;;  %v4988_v6 = vmul.f32 0.02, %v4946_v9 }
 0x552   :  { %v6039_v14 = vpop.f32.mrf.mxu1  ;;  %5078 = vadd.xlane.f32.xlu1 %v5051_v43 }
 0x553   :  { %v4949_v26 = vadd.f32 %v6038_v8, %v9239_v51  ;;  %v9315_v48 = vsel %vm4972_vm12, %v4946_v9, %v4988_v6  ;;  %vm5566_vm12 = vcmask 917312  }
 0x554   :  { %5032 = vadd.xlane.f32.xlu0 %v9315_v48  ;;  %v6040_v2 = vpop.f32.mrf.mxu1  ;;  %v5052_v12 = vmul.f32 %v9315_v48, %v9315_v48 }
 0x555   :  { %v6041_v1 = vadd.f32 %v6040_v2, %v6039_v14  ;;  %vm4973_vm13 = vcmp.gt.f32.partialorder %v4949_v26, 0.0  ;;  %v4989_v28 = vmul.f32 0.02, %v4949_v26 }
 0x556   :  { %v6042_v61 = vpop.f32.mrf.mxu1  ;;  %5080 = vadd.xlane.f32.xlu1 %v5052_v12 }
 0x557   :  { %v4954_v31 = vadd.f32 %v6041_v1, %v9239_v51  ;;  %v9321_v59 = vsel %vm4973_vm13, %v4949_v26, %v4989_v28  ;;  %v9347_v1 = vld [vmem:[%s9539_s11] ss:$0 sm:$0xff]  ;;  %vm5573_vm13 = vcmask 982912  }
 0x558   :  { %5034 = vadd.xlane.f32.xlu0 %v9321_v59  ;;  %v6043_v0 = vpop.f32.mrf.mxu1  ;;  %v5053_v39 = vmul.f32 %v9321_v59, %v9321_v59 }
 0x559   :  { %v6044_v38 = vadd.f32 %v6043_v0, %v6042_v61  ;;  %vm4974_vm14 = vcmp.gt.f32.partialorder %v4954_v31, 0.0  ;;  %v4990_v60 = vmul.f32 0.02, %v4954_v31 }
 0x55a   :  { %5082 = vadd.xlane.f32.xlu1 %v5053_v39  ;;  %v9355_v39 = vld [vmem:[%s9540_s12] ss:$0 sm:$0xff]  ;;  %s6941_s12 = smov [#allocation12]  }
 0x55b   :  { %v4957_v49 = vadd.f32 %v6044_v38, %v9239_v51  ;;  %v9327_v17 = vsel %vm4974_vm14, %v4954_v31, %v4990_v60  ;;  %vm5580_vm14 = vcmask 1048512  }
 0x55c   :  { %5036 = vadd.xlane.f32.xlu0 %v9327_v17  ;;  %v5054_v25 = vmul.f32 %v9327_v17, %v9327_v17 }
 0x55d   :  { %vm4975_vm15 = vcmp.gt.f32.partialorder %v4957_v49, 0.0  ;;  %v4991_v20 = vmul.f32 0.02, %v4957_v49 }
 0x55f   :  { %v9330_v27 = vsel %vm4975_vm15, %v4957_v49, %v4991_v20 }
 0x560   :  { %5038 = vadd.xlane.f32.xlu0 %v9330_v27  ;;  %v5055_v13 = vmul.f32 %v9330_v27, %v9330_v27 }
 0x562   :  { %5086 = vadd.xlane.f32.xlu1 %v5055_v13 }
 0x564   :  { %5084 = vadd.xlane.f32.xlu0 %v5054_v25 }
 0x597   :  { %v5009_v41 = vpop.xlane.xlu0 %5008 }
 0x598   :  { %v5088_v51 = vmul.f32 0.0078125, %v5009_v41 }
 0x59a   :  { %v5120_v18 = vmul.f32 %v5088_v51, %v5088_v51  ;;  %v5168_v29 = vsub.f32 %v9243_v55, %v5088_v51 }
 0x59b   :  { %v5011_v34 = vpop.xlane.xlu1 %5010  ;;  %v5057_v19 = vpop.xlane.xlu0 %5056 }
 0x59c   :  { %v5089_v33 = vmul.f32 0.0078125, %v5011_v34  ;;  %v5104_v44 = vmul.f32 0.0078125, %v5057_v19 }
 0x59e   :  { %v5136_v16 = vsub.f32 %v5104_v44, %v5120_v18  ;;  %v5121_v57 = vmul.f32 %v5089_v33, %v5089_v33  ;;  %v5169_v61 = vsub.f32 %v9248_v58, %v5089_v33  ;;  %v9363_v58 = vld [vmem:[%s9541_s13] ss:$0 sm:$0xff]  ;;  %s5590_s13 = sshll.u32 %s6941_s12, 4  ;;  %s5591_s13 = int_to_ptr.vmem [resolvable:$true] %s5590_s13 }
 0x59f   :  { %v5059_v52 = vpop.xlane.xlu1 %5058  ;;  %s6899_s5 = scalar_lea.vmem %s5591_s13, 16  ;;  %s6903_s26 = scalar_lea.vmem %s5591_s13, 32 }
 0x5a0   :  { %v5152_v47 = vmax.f32 %v5136_v16, 0.0  ;;  %v5105_v10 = vmul.f32 0.0078125, %v5059_v52  ;;  %p6900_p11 = scmp.ne.s32.totalorder %s5591_s13, %s6899_s5  ;;  %p6904_p12 = scmp.lt.s32.totalorder %s5591_s13, %s5591_s13 }
 0x5a1   :  { %p6905_p13 = scmp.lt.s32.totalorder %s6903_s26, %s6899_s5 }
 0x5a2   :  { %v5184_v35 = vadd.f32 1e-05, %v5152_v47  ;;  %v5137_v36 = vsub.f32 %v5105_v10, %v5121_v57 }
 0x5a3   :  { %p6906_p0 = por %p6905_p13, %p6904_p12 }
 0x5a4   :  { %6670 = vrsqrt.f32 %v5184_v35  ;;  %v5153_v53 = vmax.f32 %v5137_v36, 0.0 }
 0x5a5   :  { %p6907_p1 = pnand %p6906_p0, %p6900_p11 }
 0x5a6   :  { %v5013_v4 = vpop.xlane.xlu0 %5012  ;;  %v5185_v30 = vadd.f32 1e-05, %v5153_v53 }
 0x5a7   :  { %v5090_v46 = vmul.f32 0.0078125, %v5013_v4 }
 0x5a8   :  { %v5061_v37 = vpop.xlane.xlu1 %5060  ;;  %6672 = vrsqrt.f32 %v5185_v30 }
 0x5a9   :  { %v5122_v40 = vmul.f32 %v5090_v46, %v5090_v46  ;;  %v5106_v7 = vmul.f32 0.0078125, %v5061_v37  ;;  %v5170_v10 = vsub.f32 %v9255_v56, %v5090_v46 }
 0x5ab   :  { %v5138_v62 = vsub.f32 %v5106_v7, %v5122_v40 }
 0x5ac   :  { %v5015_v21 = vpop.xlane.xlu1 %5014 }
 0x5ad   :  { %v5154_v32 = vmax.f32 %v5138_v62, 0.0  ;;  %v9337_v3 = vmul.f32 0.0078125, %v5015_v21 }
 0x5af   :  { %v5186_v5 = vadd.f32 1e-05, %v5154_v32  ;;  %v5123_v43 = vmul.f32 %v9337_v3, %v9337_v3 }
 0x5b0   :  { %v5063_v9 = vpop.xlane.xlu1 %5062 }
 0x5b1   :  { %6674 = vrsqrt.f32 %v5186_v5  ;;  %v5107_v8 = vmul.f32 0.0078125, %v5063_v9  ;;  %v6671_v6 = vpop.eup %6670 }
 0x5b2   :  { %v5216_v12 = vmul.f32 %v6671_v6, %v5168_v29 }
 0x5b3   :  { %v5139_v2 = vsub.f32 %v5107_v8, %v5123_v43  ;;  %v5171_v8 = vsub.f32 %v9260_v54, %v9337_v3 }
 0x5b4   :  { %v5239_v49 = vmul.f32 %v9347_v1, %v5216_v12 }
 0x5b5   :  { %v5017_v14 = vpop.xlane.xlu0 %5016  ;;  %v5155_v31 = vmax.f32 %v5139_v2, 0.0  ;;  %v6673_v38 = vpop.eup %6672 }
 0x5b6   :  { %v9342_v26 = vmul.f32 0.0078125, %v5017_v14  ;;  %v5217_v41 = vmul.f32 %v6673_v38, %v5169_v61  ;;  %v5262_v34 = vadd.f32 %v9355_v39, %v5239_v49 }
 0x5b7   :  { %v5065_v28 = vpop.xlane.xlu1 %5064  ;;  %v5187_v20 = vadd.f32 1e-05, %v5155_v31 }
 0x5b8   :  { %v5124_v55 = vmul.f32 %v9342_v26, %v9342_v26  ;;  %v5108_v0 = vmul.f32 0.0078125, %v5065_v28  ;;  %v5285_v44 = vmul.f32 %v9363_v58, %v5262_v34  ;;  %v5240_v16 = vmul.f32 %v9347_v1, %v5217_v41 }
 0x5b9   :  { %v5019_v60 = vpop.xlane.xlu0 %5018  ;;  %6676 = vrsqrt.f32 %v5187_v20 }
 0x5ba   :  { %v9358_v13 = vmul.f32 0.0078125, %v5019_v60  ;;  %v5140_v25 = vsub.f32 %v5108_v0, %v5124_v55  ;;  %5301 = vadd.xlane.f32.xlu0 %v5285_v44  ;;  %v5263_v47 = vadd.f32 %v9355_v39, %v5240_v16  ;;  %v5172_v60 = vsub.f32 %v9267_v11, %v9342_v26 }
 0x5bb   :  { %v5067_v51 = vpop.xlane.xlu1 %5066 }
 0x5bc   :  { %v5156_v19 = vmax.f32 %v5140_v25, 0.0  ;;  %v5125_v18 = vmul.f32 %v9358_v13, %v9358_v13  ;;  %v5109_v33 = vmul.f32 0.0078125, %v5067_v51  ;;  %v5286_v53 = vmul.f32 %v9363_v58, %v5263_v47 }
 0x5be   :  { %v5188_v52 = vadd.f32 1e-05, %v5156_v19  ;;  %v5141_v57 = vsub.f32 %v5109_v33, %v5125_v18  ;;  %v6675_v35 = vpop.eup %6674  ;;  %5303 = vadd.xlane.f32.xlu1 %v5286_v53  ;;  %v5173_v33 = vsub.f32 %v9272_v15, %v9358_v13 }
 0x5bf   :  { %v5218_v4 = vmul.f32 %v6675_v35, %v5170_v10 }
 0x5c0   :  { %6678 = vrsqrt.f32 %v5188_v52  ;;  %v5157_v36 = vmax.f32 %v5141_v57, 0.0 }
 0x5c1   :  { %v5021_v30 = vpop.xlane.xlu0 %5020  ;;  %v5241_v7 = vmul.f32 %v9347_v1, %v5218_v4 }
 0x5c2   :  { %v5189_v37 = vadd.f32 1e-05, %v5157_v36  ;;  %v9373_v40 = vmul.f32 0.0078125, %v5021_v30 }
 0x5c3   :  { %v5069_v62 = vpop.xlane.xlu1 %5068  ;;  %v5264_v56 = vadd.f32 %v9355_v39, %v5241_v7 }
 0x5c4   :  { %6680 = vrsqrt.f32 %v5189_v37  ;;  %v5126_v21 = vmul.f32 %v9373_v40, %v9373_v40  ;;  %v5110_v32 = vmul.f32 0.0078125, %v5069_v62 }
 0x5c5   :  { %v5023_v46 = vpop.xlane.xlu0 %5022  ;;  %v5287_v29 = vmul.f32 %v9363_v58, %v5264_v56 }
 0x5c6   :  { %v9379_v5 = vmul.f32 0.0078125, %v5023_v46  ;;  %v5142_v9 = vsub.f32 %v5110_v32, %v5126_v21  ;;  %v6677_v43 = vpop.eup %6676 }
 0x5c7   :  { %v5071_v6 = vpop.xlane.xlu1 %5070  ;;  %5305 = vadd.xlane.f32.xlu0 %v5287_v29  ;;  %v5219_v61 = vmul.f32 %v6677_v43, %v5171_v8 }
 0x5c8   :  { %v5127_v14 = vmul.f32 %v9379_v5, %v9379_v5  ;;  %v5158_v2 = vmax.f32 %v5142_v9, 0.0  ;;  %v5111_v12 = vmul.f32 0.0078125, %v5071_v6  ;;  %v5174_v6 = vsub.f32 %v9279_v22, %v9373_v40 }
 0x5c9   :  { %v5242_v54 = vmul.f32 %v9347_v1, %v5219_v61 }
 0x5ca   :  { %v5190_v55 = vadd.f32 1e-05, %v5158_v2  ;;  %v5143_v0 = vsub.f32 %v5111_v12, %v5127_v14 }
 0x5cb   :  { %v5265_v51 = vadd.f32 %v9355_v39, %v5242_v54 }
 0x5cc   :  { %6682 = vrsqrt.f32 %v5190_v55  ;;  %v5159_v3 = vmax.f32 %v5143_v0, 0.0 }
 0x5cd   :  { %v5025_v28 = vpop.xlane.xlu0 %5024  ;;  %v6679_v38 = vpop.eup %6678  ;;  %v5288_v44 = vmul.f32 %v9363_v58, %v5265_v51 }
 0x5ce   :  { %v9386_v31 = vmul.f32 0.0078125, %v5025_v28  ;;  %v5220_v34 = vmul.f32 %v6679_v38, %v5172_v60  ;;  %v5191_v19 = vadd.f32 1e-05, %v5159_v3  ;;  %v5175_v38 = vsub.f32 %v9285_v23, %v9379_v5 }
 0x5cf   :  { %v5073_v49 = vpop.xlane.xlu1 %5072  ;;  %5307 = vadd.xlane.f32.xlu1 %v5288_v44 }
 0x5d0   :  { %v5128_v20 = vmul.f32 %v9386_v31, %v9386_v31  ;;  %v5112_v41 = vmul.f32 0.0078125, %v5073_v49  ;;  %v5243_v16 = vmul.f32 %v9347_v1, %v5220_v34  ;;  %6684 = vrsqrt.f32 %v5191_v19 }
 0x5d1   :  { %v5027_v25 = vpop.xlane.xlu0 %5026  ;;  %v6681_v52 = vpop.eup %6680 }
 0x5d2   :  { %v9394_v18 = vmul.f32 0.0078125, %v5027_v25  ;;  %v5144_v11 = vsub.f32 %v5112_v41, %v5128_v20  ;;  %v5266_v36 = vadd.f32 %v9355_v39, %v5243_v16  ;;  %v5221_v53 = vmul.f32 %v6681_v52, %v5173_v33 }
 0x5d3   :  { %v5075_v26 = vpop.xlane.xlu1 %5074 }
 0x5d4   :  { %v5129_v57 = vmul.f32 %v9394_v18, %v9394_v18  ;;  %v5113_v47 = vmul.f32 0.0078125, %v5075_v26  ;;  %v5160_v10 = vmax.f32 %v5144_v11, 0.0  ;;  %v5289_v37 = vmul.f32 %v9363_v58, %v5266_v36 }
 0x5d5   :  { %v5029_v35 = vpop.xlane.xlu0 %5028  ;;  %v5244_v7 = vmul.f32 %v9347_v1, %v5221_v53  ;;  %v5176_v11 = vsub.f32 %v9291_v63, %v9386_v31 }
 0x5d6   :  { %v9403_v4 = vmul.f32 0.0078125, %v5029_v35  ;;  %v5145_v15 = vsub.f32 %v5113_v47, %v5129_v57  ;;  %v5192_v13 = vadd.f32 1e-05, %v5160_v10  ;;  %5309 = vadd.xlane.f32.xlu0 %v5289_v37 }
 0x5d7   :  { %v5077_v30 = vpop.xlane.xlu1 %5076  ;;  %v5267_v46 = vadd.f32 %v9355_v39, %v5244_v7 }
 0x5d8   :  { %v5130_v62 = vmul.f32 %v9403_v4, %v9403_v4  ;;  %v5161_v21 = vmax.f32 %v5145_v15, 0.0  ;;  %v5114_v32 = vmul.f32 0.0078125, %v5077_v30  ;;  %6686 = vrsqrt.f32 %v5192_v13 }
 0x5d9   :  { %v5031_v56 = vpop.xlane.xlu0 %5030  ;;  %v5290_v8 = vmul.f32 %v9363_v58, %v5267_v46  ;;  %v6683_v2 = vpop.eup %6682  ;;  %v5177_v15 = vsub.f32 %v9297_v50, %v9394_v18  ;;  %v5178_v50 = vsub.f32 %v9303_v45, %v9403_v4 }
 0x5da   :  { %v5193_v9 = vadd.f32 1e-05, %v5161_v21  ;;  %v5146_v29 = vsub.f32 %v5114_v32, %v5130_v62  ;;  %v5222_v55 = vmul.f32 %v6683_v2, %v5174_v6  ;;  %v9419_v22 = vmul.f32 0.0078125, %v5031_v56 }
 0x5db   :  { %v5079_v43 = vpop.xlane.xlu1 %5078  ;;  %5311 = vadd.xlane.f32.xlu1 %v5290_v8 }
 0x5dc   :  { %6688 = vrsqrt.f32 %v5193_v9  ;;  %v5162_v14 = vmax.f32 %v5146_v29, 0.0  ;;  %v5245_v3 = vmul.f32 %v9347_v1, %v5222_v55  ;;  %v5115_v51 = vmul.f32 0.0078125, %v5079_v43  ;;  %v5333_v29 = vld [vmem:[#allocation2] sm:$0x1] }
 0x5dd   :  { %v5033_v12 = vpop.xlane.xlu0 %5032  ;;  %v6685_v54 = vpop.eup %6684  ;;  %v5131_v26 = vmul.f32 %v9419_v22, %v9419_v22 }
 0x5de   :  { %v5194_v28 = vadd.f32 1e-05, %v5162_v14  ;;  %v9413_v61 = vmul.f32 0.0078125, %v5033_v12  ;;  %v5223_v41 = vmul.f32 %v6685_v54, %v5175_v38  ;;  %v5268_v19 = vadd.f32 %v9355_v39, %v5245_v3 }
 0x5df   :  { %v5081_v0 = vpop.xlane.xlu1 %5080  ;;  %v5147_v35 = vsub.f32 %v5115_v51, %v5131_v26 }
 0x5e0   :  { %6690 = vrsqrt.f32 %v5194_v28  ;;  %v5132_v60 = vmul.f32 %v9413_v61, %v9413_v61  ;;  %v5116_v49 = vmul.f32 0.0078125, %v5081_v0  ;;  %v5291_v16 = vmul.f32 %v9363_v58, %v5268_v19 }
 0x5e1   :  { %v5035_v40 = vpop.xlane.xlu0 %5034  ;;  %v5246_v52 = vmul.f32 %v9347_v1, %v5223_v41  ;;  %v5163_v56 = vmax.f32 %v5147_v35, 0.0  ;;  %v5180_v41 = vsub.f32 %v9315_v48, %v9413_v61 }
 0x5e2   :  { %v9422_v20 = vmul.f32 0.0078125, %v5035_v40  ;;  %v5148_v25 = vsub.f32 %v5116_v49, %v5132_v60  ;;  %5313 = vadd.xlane.f32.xlu0 %v5291_v16 }
 0x5e3   :  { %v5083_v34 = vpop.xlane.xlu1 %5082  ;;  %v5269_v36 = vadd.f32 %v9355_v39, %v5246_v52  ;;  %v5195_v38 = vadd.f32 1e-05, %v5163_v56 }
 0x5e4   :  { %v5133_v23 = vmul.f32 %v9422_v20, %v9422_v20  ;;  %v5164_v5 = vmax.f32 %v5148_v25, 0.0  ;;  %v5117_v33 = vmul.f32 0.0078125, %v5083_v34 }
 0x5e5   :  { %v5037_v44 = vpop.xlane.xlu0 %5036  ;;  %v6687_v57 = vpop.eup %6686  ;;  %v5292_v30 = vmul.f32 %v9363_v58, %v5269_v36 }
 0x5e6   :  { %v5196_v47 = vadd.f32 1e-05, %v5164_v5  ;;  %v5149_v10 = vsub.f32 %v5117_v33, %v5133_v23  ;;  %v5224_v53 = vmul.f32 %v6687_v57, %v5176_v11  ;;  %v5102_v7 = vmul.f32 0.0078125, %v5037_v44 }
 0x5e7   :  { %5315 = vadd.xlane.f32.xlu0 %v5292_v30  ;;  %v5181_v5 = vsub.f32 %v9321_v59, %v9422_v20  ;;  %v5179_v59 = vsub.f32 %v9309_v24, %v9419_v22 }
 0x5e8   :  { %6692 = vrsqrt.f32 %v5196_v47  ;;  %v5165_v63 = vmax.f32 %v5149_v10, 0.0  ;;  %v5247_v37 = vmul.f32 %v9347_v1, %v5224_v53  ;;  %v5134_v12 = vmul.f32 %v5102_v7, %v5102_v7 }
 0x5e9   :  { %v6689_v31 = vpop.eup %6688  ;;  %v5039_v13 = vpop.xlane.xlu0 %5038  ;;  %v5182_v20 = vsub.f32 %v9327_v17, %v5102_v7 }
 0x5ea   :  { %v5197_v62 = vadd.f32 1e-05, %v5165_v63  ;;  %v5103_v21 = vmul.f32 0.0078125, %v5039_v13  ;;  %v5225_v32 = vmul.f32 %v6689_v31, %v5177_v15  ;;  %v5270_v9 = vadd.f32 %v9355_v39, %v5247_v37 }
 0x5eb   :  { %v5087_v46 = vpop.xlane.xlu1 %5086 }
 0x5ec   :  { %6694 = vrsqrt.f32 %v5197_v62  ;;  %v5135_v18 = vmul.f32 %v5103_v21, %v5103_v21  ;;  %v5119_v43 = vmul.f32 0.0078125, %v5087_v46  ;;  %v5293_v14 = vmul.f32 %v9363_v58, %v5270_v9  ;;  %5336 = vperm.xlu1 %6076, %v5333_v29  }
 0x5ed   :  { %v6691_v8 = vpop.eup %6690  ;;  %v5085_v6 = vpop.xlane.xlu0 %5084  ;;  %v5248_v2 = vmul.f32 %v9347_v1, %v5225_v32  ;;  %6696 = vrsqrt.f32 %v5195_v38  ;;  %v5183_v57 = vsub.f32 %v9330_v27, %v5103_v21 }
 0x5ee   :  { %v5151_v28 = vsub.f32 %v5119_v43, %v5135_v18  ;;  %v5118_v55 = vmul.f32 0.0078125, %v5085_v6  ;;  %v5226_v0 = vmul.f32 %v6691_v8, %v5178_v50  ;;  %5317 = vadd.xlane.f32.xlu0 %v5293_v14 }
 0x5ef   :  { %v5271_v60 = vadd.f32 %v9355_v39, %v5248_v2 }
 0x5f0   :  { %v5167_v49 = vmax.f32 %v5151_v28, 0.0  ;;  %v5150_v45 = vsub.f32 %v5118_v55, %v5134_v12  ;;  %v5249_v4 = vmul.f32 %v9347_v1, %v5226_v0 }
 0x5f1   :  { %v5294_v54 = vmul.f32 %v9363_v58, %v5271_v60 }
 0x5f2   :  { %v5199_v40 = vadd.f32 1e-05, %v5167_v49  ;;  %v5166_v3 = vmax.f32 %v5150_v45, 0.0  ;;  %v5272_v25 = vadd.f32 %v9355_v39, %v5249_v4 }
 0x5f3   :  { %5319 = vadd.xlane.f32.xlu0 %v5294_v54 }
 0x5f4   :  { %6698 = vrsqrt.f32 %v5199_v40  ;;  %v5198_v51 = vadd.f32 1e-05, %v5166_v3  ;;  %v5295_v34 = vmul.f32 %v9363_v58, %v5272_v25 }
 0x5f5   :  { %v6693_v19 = vpop.eup %6692 }
 0x5f6   :  { %6700 = vrsqrt.f32 %v5198_v51  ;;  %v5228_v23 = vmul.f32 %v6693_v19, %v5180_v41 }
 0x5f7   :  { %5321 = vadd.xlane.f32.xlu0 %v5295_v34 }
 0x5f8   :  { %v5251_v33 = vmul.f32 %v9347_v1, %v5228_v23 }
 0x5f9   :  { %v6695_v11 = vpop.eup %6694 }
 0x5fa   :  { %v5274_v26 = vadd.f32 %v9355_v39, %v5251_v33  ;;  %v5229_v44 = vmul.f32 %v6695_v11, %v5181_v5  ;;  %v6697_v52 = vpop.eup %6696 }
 0x5fb   :  { %v5227_v15 = vmul.f32 %v6697_v52, %v5179_v59 }
 0x5fc   :  { %v5297_v16 = vmul.f32 %v9363_v58, %v5274_v26  ;;  %v5252_v48 = vmul.f32 %v9347_v1, %v5229_v44 }
 0x5fd   :  { %v5250_v27 = vmul.f32 %v9347_v1, %v5227_v15 }
 0x5fe   :  { %5325 = vadd.xlane.f32.xlu0 %v5297_v16  ;;  %v5275_v61 = vadd.f32 %v9355_v39, %v5252_v48 }
 0x5ff   :  { %v5273_v24 = vadd.f32 %v9355_v39, %v5250_v27 }
 0x600   :  { %v5298_v47 = vmul.f32 %v9363_v58, %v5275_v61 }
 0x601   :  { %v6699_v10 = vpop.eup %6698  ;;  %v5296_v22 = vmul.f32 %v9363_v58, %v5273_v24 }
 0x602   :  { %5327 = vadd.xlane.f32.xlu0 %v5298_v47  ;;  %v5231_v35 = vmul.f32 %v6699_v10, %v5183_v57 }
 0x603   :  { %v6701_v36 = vpop.eup %6700 }
 0x604   :  { %v5230_v53 = vmul.f32 %v6701_v36, %v5182_v20  ;;  %v5254_v31 = vmul.f32 %v9347_v1, %v5231_v35  ;;  %v9871_v35 = vlaneseq }
 0x606   :  { %v5253_v63 = vmul.f32 %v9347_v1, %v5230_v53  ;;  %v5277_v37 = vadd.f32 %v9355_v39, %v5254_v31  ;;  %v9489_v36 = vand.u32 127, %v9871_v35 }
 0x608   :  { %v5276_v13 = vadd.f32 %v9355_v39, %v5253_v63  ;;  %v5300_v17 = vmul.f32 %v9363_v58, %v5277_v37 }
 0x60a   :  { %v5299_v30 = vmul.f32 %v9363_v58, %v5276_v13 }
 0x60c   :  { %5329 = vadd.xlane.f32.xlu0 %v5299_v30 }
 0x610   :  { %5331 = vadd.xlane.f32.xlu0 %v5300_v17  ;;  %5323 = vadd.xlane.f32.xlu1 %v5296_v22  ;;  %v5477_v17 = vadd.s32 4294967288, %v9489_v36 }
 0x643   :  { %v5302_v62 = vpop.xlane.xlu0 %5301 }
 0x647   :  { %v5304_v7 = vpop.xlane.xlu1 %5303 }
 0x650   :  { %v5306_v32 = vpop.xlane.xlu0 %5305 }
 0x658   :  { %v5308_v21 = vpop.xlane.xlu1 %5307 }
 0x65f   :  { %v5310_v46 = vpop.xlane.xlu0 %5309 }
 0x664   :  { %v5312_v56 = vpop.xlane.xlu1 %5311 }
 0x668   :  { %v5337_v9 = vpop.permute.xlu1 %5336 }
 0x669   :  { %v9472_v29 = vrot.slane %v5337_v9, %v9869_v42 }
 0x66b   :  { %v5314_v1 = vpop.xlane.xlu0 %5313  ;;  %v5343_v39 = vadd.f32 %v9472_v29, %v5302_v62  ;;  %v5344_v18 = vadd.f32 %v9472_v29, %v5304_v7  ;;  %v5345_v58 = vadd.f32 %v9472_v29, %v5306_v32  ;;  %v5346_v12 = vadd.f32 %v9472_v29, %v5308_v21 }
 0x66c   :  { %v5347_v42 = vadd.f32 %v9472_v29, %v5310_v46  ;;  %v5348_v0 = vadd.f32 %v9472_v29, %v5312_v56  ;;  %v5349_v60 = vadd.f32 %v9472_v29, %v5314_v1  ;;  %v5484_v56 = vadd.s32 4294967280, %v9489_v36  ;;  %v9872_v1 = vld [vmem:[#allocation17_spill] sm:$0xff] }
 0x66d   :  { %v5965_v8 = vmul.f32 -1.442695, %v5343_v39  ;;  %v5966_v6 = vmul.f32 -1.442695, %v5344_v18  ;;  %v5967_v14 = vmul.f32 -1.442695, %v5345_v58  ;;  %v5475_v9 = vsub.s32 %v9489_v36, %v9872_v1 }
 0x66e   :  { %v5968_v28 = vmul.f32 -1.442695, %v5346_v12  ;;  %v5969_v38 = vmul.f32 -1.442695, %v5347_v42  ;;  %v5970_v54 = vmul.f32 -1.442695, %v5348_v0  ;;  %v5487_v58 = vsub.s32 %v5484_v56, %v9872_v1 }
 0x66f   :  { %6702 = vpow2.f32 %v5965_v8  ;;  %v5971_v3 = vmul.f32 -1.442695, %v5349_v60  ;;  %v5491_v12 = vadd.s32 4294967272, %v9489_v36 }
 0x670   :  { %v5316_v50 = vpop.xlane.xlu0 %5315  ;;  %6704 = vpow2.f32 %v5966_v6 }
 0x671   :  { %6706 = vpow2.f32 %v5967_v14  ;;  %v5350_v49 = vadd.f32 %v9472_v29, %v5316_v50 }
 0x672   :  { %6708 = vpow2.f32 %v5968_v28 }
 0x673   :  { %6710 = vpow2.f32 %v5969_v38  ;;  %v5972_v41 = vmul.f32 -1.442695, %v5350_v49 }
 0x674   :  { %6712 = vpow2.f32 %v5970_v54 }
 0x675   :  { %6714 = vpow2.f32 %v5971_v3 }
 0x676   :  { %6716 = vpow2.f32 %v5972_v41 }
 0x677   :  { %v5318_v43 = vpop.xlane.xlu0 %5317 }
 0x678   :  { %v5351_v45 = vadd.f32 %v9472_v29, %v5318_v43 }
 0x67a   :  { %v5973_v34 = vmul.f32 -1.442695, %v5351_v45 }
 0x67c   :  { %v5320_v2 = vpop.xlane.xlu0 %5319  ;;  %v6703_v40 = vpop.eup %6702  ;;  %6718 = vpow2.f32 %v5973_v34 }
 0x67d   :  { %v6705_v25 = vpop.eup %6704  ;;  %v5352_v51 = vadd.f32 %v9472_v29, %v5320_v2  ;;  %v5407_v5 = vadd.f32 1.0, %v6703_v40  ;;  %v5505_v40 = vadd.s32 4294967256, %v9489_v36 }
 0x67e   :  { %v6707_v19 = vpop.eup %6706  ;;  %v5408_v11 = vadd.f32 1.0, %v6705_v25 }
 0x67f   :  { %v5974_v26 = vmul.f32 -1.442695, %v5352_v51  ;;  %v5409_v16 = vadd.f32 1.0, %v6707_v19  ;;  %6720 = vrcp.f32 %v5407_v5  ;;  %v6709_v57 = vpop.eup %6708  ;;  %v5512_v5 = vadd.s32 4294967248, %v9489_v36 }
 0x680   :  { %v5322_v55 = vpop.xlane.xlu0 %5321  ;;  %6722 = vrcp.f32 %v5408_v11  ;;  %v6711_v20 = vpop.eup %6710  ;;  %v5410_v15 = vadd.f32 1.0, %v6709_v57 }
 0x681   :  { %v5353_v23 = vadd.f32 %v9472_v29, %v5322_v55  ;;  %6724 = vpow2.f32 %v5974_v26  ;;  %v6713_v27 = vpop.eup %6712  ;;  %v5411_v24 = vadd.f32 1.0, %v6711_v20  ;;  %v5498_v55 = vadd.s32 4294967264, %v9489_v36 }
 0x682   :  { %6726 = vrcp.f32 %v5409_v16  ;;  %v6715_v22 = vpop.eup %6714  ;;  %v5412_v21 = vadd.f32 1.0, %v6713_v27 }
 0x683   :  { %v5975_v48 = vmul.f32 -1.442695, %v5353_v23  ;;  %v6717_v62 = vpop.eup %6716  ;;  %v5413_v39 = vadd.f32 1.0, %v6715_v22  ;;  %v5501_v41 = vsub.s32 %v5498_v55, %v9872_v1  ;;  %v5547_v22 = vadd.s32 4294967208, %v9489_v36 }
 0x684   :  { %v5414_v6 = vadd.f32 1.0, %v6717_v62 }
 0x685   :  { %6728 = vpow2.f32 %v5975_v48 }
 0x687   :  { %v5326_v4 = vpop.xlane.xlu0 %5325 }
 0x688   :  { %v5355_v44 = vadd.f32 %v9472_v29, %v5326_v4  ;;  %v5494_v4 = vsub.s32 %v5491_v12, %v9872_v1 }
 0x689   :  { %v6719_v32 = vpop.eup %6718 }
 0x68a   :  { %v5977_v10 = vmul.f32 -1.442695, %v5355_v44  ;;  %v5415_v42 = vadd.f32 1.0, %v6719_v32  ;;  %v5508_v44 = vsub.s32 %v5505_v40, %v9872_v1  ;;  %v5554_v32 = vadd.s32 4294967200, %v9489_v36 }
 0x68b   :  { %v5328_v33 = vpop.xlane.xlu0 %5327 }
 0x68c   :  { %v5356_v61 = vadd.f32 %v9472_v29, %v5328_v33  ;;  %6730 = vpow2.f32 %v5977_v10  ;;  %v6721_v46 = vpop.eup %6720  ;;  %v5519_v10 = vadd.s32 4294967240, %v9489_v36 }
 0x68d   :  { %v6723_v50 = vpop.eup %6722  ;;  %v5476_v14 = vrot.slane %v6721_v46, %v5475_v9  ;;  %v5561_v9 = vadd.s32 4294967192, %v9489_v36 }
 0x68e   :  { %v5978_v59 = vmul.f32 -1.442695, %v5356_v61  ;;  %v6725_v18 = vpop.eup %6724 }
 0x68f   :  { %v6727_v43 = vpop.eup %6726  ;;  %v5416_v28 = vadd.f32 1.0, %v6725_v18  ;;  %v5564_v12 = vsub.s32 %v5561_v9, %v9872_v1 }
 0x690   :  { %6732 = vpow2.f32 %v5978_v59  ;;  %v5488_v60 = vrot.slane %v6727_v43, %v5487_v58  ;;  %v5526_v59 = vadd.s32 4294967232, %v9489_v36  ;;  %v5550_v43 = vsub.s32 %v5547_v22, %v9872_v1 }
 0x691   :  { %6734 = vrcp.f32 %v5410_v15  ;;  %v5575_v58 = vadd.s32 4294967176, %v9489_v36 }
 0x692   :  { %v6729_v8 = vpop.eup %6728 }
 0x693   :  { %v5417_v38 = vadd.f32 1.0, %v6729_v8 }
 0x695   :  { %v5330_v52 = vpop.xlane.xlu0 %5329 }
 0x696   :  { %v5357_v47 = vadd.f32 %v9472_v29, %v5330_v52 }
 0x698   :  { %v5979_v63 = vmul.f32 -1.442695, %v5357_v47  ;;  %v5515_v47 = vsub.s32 %v5512_v5, %v9872_v1 }
 0x699   :  { %v5332_v53 = vpop.xlane.xlu0 %5331  ;;  %v5324_v13 = vpop.xlane.xlu1 %5323 }
 0x69a   :  { %v5358_v31 = vadd.f32 %v9472_v29, %v5332_v53  ;;  %v5354_v37 = vadd.f32 %v9472_v29, %v5324_v13  ;;  %6736 = vpow2.f32 %v5979_v63  ;;  %v5480_v29 = vsub.s32 %v5477_v17, %v9872_v1  ;;  %v6731_v0 = vpop.eup %6730 }
 0x69b   :  { %v5419_v25 = vadd.f32 1.0, %v6731_v0  ;;  %v5533_v53 = vadd.s32 4294967224, %v9489_v36  ;;  %v5540_v63 = vadd.s32 4294967216, %v9489_v36 }
 0x69c   :  { %v5980_v30 = vmul.f32 -1.442695, %v5358_v31  ;;  %v5976_v7 = vmul.f32 -1.442695, %v5354_v37  ;;  %v5481_v2 = vrot.slane %v6723_v50, %v5480_v29  ;;  %v5522_v31 = vsub.s32 %v5519_v10, %v9872_v1 }
 0x69d   :  { %v6733_v49 = vpop.eup %6732  ;;  %v5529_v37 = vsub.s32 %v5526_v59, %v9872_v1  ;;  %v5536_v17 = vsub.s32 %v5533_v53, %v9872_v1  ;;  %v5568_v50 = vadd.s32 4294967184, %v9489_v36  ;;  %v5578_v36 = vsub.s32 %v5575_v58, %v9872_v1 }
 0x69e   :  { %6738 = vpow2.f32 %v5980_v30  ;;  %v5483_v45 = vsel %vm5482_vm0, %v5481_v2, %v5476_v14  ;;  %v6735_v54 = vpop.eup %6734  ;;  %v5420_v34 = vadd.f32 1.0, %v6733_v49  ;;  %v5557_v14 = vsub.s32 %v5554_v32, %v9872_v1 }
 0x69f   :  { %6740 = vrcp.f32 %v5411_v24  ;;  %v5490_v19 = vsel %vm5489_vm1, %v5488_v60, %v5483_v45  ;;  %v5495_v33 = vrot.slane %v6735_v54, %v5494_v4  ;;  %v5571_v55 = vsub.s32 %v5568_v50, %v9872_v1 }
 0x6a0   :  { %6742 = vpow2.f32 %v5976_v7 }
 0x6a1   :  { %6744 = vrcp.f32 %v5412_v21  ;;  %v5497_v61 = vsel %vm5496_vm2, %v5495_v33, %v5490_v19  ;;  %v5543_v21 = vsub.s32 %v5540_v63, %v9872_v1 }
 0x6a2   :  { %6746 = vrcp.f32 %v5413_v39 }
 0x6a3   :  { %6748 = vrcp.f32 %v5414_v6 }
 0x6a4   :  { %6750 = vrcp.f32 %v5415_v42 }
 0x6a5   :  { %6752 = vrcp.f32 %v5416_v28 }
 0x6a6   :  { %6754 = vrcp.f32 %v5417_v38 }
 0x6a7   :  { %v6737_v3 = vpop.eup %6736  ;;  %6756 = vrcp.f32 %v5419_v25 }
 0x6a8   :  { %v5421_v26 = vadd.f32 1.0, %v6737_v3  ;;  %6758 = vrcp.f32 %v5420_v34 }
 0x6ab   :  { %v6739_v51 = vpop.eup %6738 }
 0x6ac   :  { %v6741_v23 = vpop.eup %6740  ;;  %v5422_v16 = vadd.f32 1.0, %v6739_v51 }
 0x6ad   :  { %v6743_v11 = vpop.eup %6742  ;;  %v5502_v57 = vrot.slane %v6741_v23, %v5501_v41 }
 0x6ae   :  { %v5418_v48 = vadd.f32 1.0, %v6743_v11  ;;  %v6745_v52 = vpop.eup %6744 }
 0x6af   :  { %v5504_v20 = vsel %vm5503_vm3, %v5502_v57, %v5497_v61  ;;  %v6747_v35 = vpop.eup %6746  ;;  %v5509_v15 = vrot.slane %v6745_v52, %v5508_v44 }
 0x6b0   :  { %6760 = vrcp.f32 %v5418_v48  ;;  %v6749_v27 = vpop.eup %6748  ;;  %v5516_v30 = vrot.slane %v6747_v35, %v5515_v47 }
 0x6b1   :  { %6762 = vrcp.f32 %v5421_v26  ;;  %v5511_v13 = vsel %vm5510_vm4, %v5509_v15, %v5504_v20  ;;  %v6751_v24 = vpop.eup %6750  ;;  %v5523_v46 = vrot.slane %v6749_v27, %v5522_v31 }
 0x6b2   :  { %6764 = vrcp.f32 %v5422_v16  ;;  %v6753_v7 = vpop.eup %6752  ;;  %v5518_v62 = vsel %vm5517_vm5, %v5516_v30, %v5511_v13  ;;  %v5530_v29 = vrot.slane %v6751_v24, %v5529_v37 }
 0x6b3   :  { %v6755_v56 = vpop.eup %6754  ;;  %v5537_v39 = vrot.slane %v6753_v7, %v5536_v17  ;;  %v5525_v18 = vsel %vm5524_vm6, %v5523_v46, %v5518_v62 }
 0x6b4   :  { %v6757_v8 = vpop.eup %6756  ;;  %v5544_v6 = vrot.slane %v6755_v56, %v5543_v21  ;;  %v5532_v28 = vsel %vm5531_vm7, %v5530_v29, %v5525_v18 }
 0x6b5   :  { %v6759_v2 = vpop.eup %6758  ;;  %v5539_v38 = vsel %vm5538_vm8, %v5537_v39, %v5532_v28  ;;  %v5558_v4 = vrot.slane %v6757_v8, %v5557_v14 }
 0x6b6   :  { %v5546_v45 = vsel %vm5545_vm9, %v5544_v6, %v5539_v38  ;;  %v5565_v40 = vrot.slane %v6759_v2, %v5564_v12 }
 0x6bd   :  { %v6761_v42 = vpop.eup %6760 }
 0x6be   :  { %v6763_v0 = vpop.eup %6762  ;;  %v5551_v60 = vrot.slane %v6761_v42, %v5550_v43 }
 0x6bf   :  { %v6765_v49 = vpop.eup %6764  ;;  %v5572_v25 = vrot.slane %v6763_v0, %v5571_v55 }
 0x6c0   :  { %v5553_v54 = vsel %vm5552_vm10, %v5551_v60, %v5546_v45  ;;  %v5579_v51 = vrot.slane %v6765_v49, %v5578_v36 }
 0x6c1   :  { %v5560_v3 = vsel %vm5559_vm11, %v5558_v4, %v5553_v54 }
 0x6c2   :  { %v5567_v41 = vsel %vm5566_vm12, %v5565_v40, %v5560_v3 }
 0x6c3   :  { %v5574_v34 = vsel %vm5573_vm13, %v5572_v25, %v5567_v41 }
 0x6c4   :  { %v5581_v19 = vsel %vm5580_vm14, %v5579_v51, %v5574_v34 }
 0x6c5   :  { %5583 = vst [vmem:[#allocation12] sm:$0x1] %v5581_v19 }
 0x6c6   :  { %6910 = shalt.err (!%p6907_p1)
}
 0x6c7   :  { %5593 = dma.vmem_to_hbm [thread:$0]  %s5591_s13, 16, %s9543_s15, [#allocation5]  }
 0x6c8   :  { %6925 = dma.done.wait [#allocation5], 16  }
 0x6c9   :  { %6926 = vsyncadd [#allocation5], 4294967280 }
 0x6ca   :  { %5597 = vsyncpa [#allocation4], 1 }
 0x6cb   :  { %5598 = vsyncpa [#allocation7], 1 }
 0x6cc   :  { %5599 = vsyncpa [#allocation10], 1 }
 0x6cd   :  { %5600 = vsyncpa [#allocation5], 1 }

</bundles_post_ra>
